<compile_context>
chip_gen: v5e
topology: v5e:2x2
jax: 0.10.0
libtpu: 0.0.40
codegen_flags: <defaults>
</compile_context>

<pallas_src>
import jax
import jax.numpy as jnp
from jax import lax
from jax.experimental import pallas as pl
from jax.experimental.pallas import tpu as pltpu

KH = KW = 3  # kernel_size = 3, padding = 1 -> "same" conv


def residual_block_forward(x_nchw, w1_oihw, b1, w2_oihw, b2):
    """Matches ResidualBlock.forward.  x_nchw: (N, C, H, W) float32."""
    N, C, H, W = x_nchw.shape
    P = H * W                      # flattened plane on the lane axis (256)
    NC = N * C
    BASE = 128                     # lane offset of real data (vreg aligned)
    L = BASE + P + W + 16          # padded-flat row length (416 here)
    assert BASE >= W + 1 and L >= BASE + P + W

    # --- cheap relayouts: pure reshapes + a tiny (C, 9C) weight transpose ----
    x_flat = x_nchw.reshape(NC, P).astype(jnp.float32)               # (8, 256)
    # weight columns: wc[co, k*C + ci] = w[co, ci, ky, kx],  k = ky*KW + kx
    w1c = jnp.transpose(w1_oihw, (0, 2, 3, 1)).reshape(C, KH * KW * C).astype(jnp.float32)
    w2c = jnp.transpose(w2_oihw, (0, 2, 3, 1)).reshape(C, KH * KW * C).astype(jnp.float32)
    b1c = b1.reshape(C, 1).astype(jnp.float32)
    b2c = b2.reshape(C, 1).astype(jnp.float32)

    # 0/1 lane masks for the horizontal halo (invalid reads at w==0 / w==W-1).
    wpos = jnp.arange(P, dtype=jnp.int32).reshape(1, P) % W
    mask_left = (wpos > 0).astype(jnp.float32)        # taps with dx = -1
    mask_right = (wpos < W - 1).astype(jnp.float32)   # taps with dx = +1

    def kernel(x_ref, w1_ref, b1_ref, w2_ref, b2_ref, ml_ref, mr_ref,
               out_ref, pad_ref):
        # Zero the padded-flat scratch once (single grid step -> once total)
        # and stage the input; interior store starts at lane BASE=128.
        pad_ref[...] = jnp.zeros((NC, L), jnp.float32)
        pad_ref[:, BASE:BASE + P] = x_ref[...]

        mask_l = ml_ref[...]       # hoisted: loaded once, reused by both convs
        mask_r = mr_ref[...]

        def conv3x3(wc_ref, b_ref, n):
            """3x3 same-conv of image n, pure-VPU broadcast-MAC -> (C, P)."""
            # Bias folded into the accumulator init (broadcast hoisted out of
            # the tap loop).
            acc = jnp.broadcast_to(b_ref[...], (C, P))
            for k in range(KH * KW):
                dy, dx = k // KW - 1, k % KW - 1
                start = BASE + dy * W + dx            # static lane offset
                contrib = jnp.zeros((C, P), jnp.float32)
                for ci in range(C):
                    # (1, P) shifted input row and (C, 1) weight column,
                    # both plain ref slices (no value reshape / relayout).
                    row = pad_ref[n * C + ci:n * C + ci + 1, start:start + P]
                    col = wc_ref[:, k * C + ci:k * C + ci + 1]
                    contrib = contrib + col * row     # outer-product MAC (VPU)
                if dx == -1:
                    contrib = contrib * mask_l
                elif dx == 1:
                    contrib = contrib * mask_r
                acc = acc + contrib
            return acc

        for n in range(N):
            r0 = n * C
            h1 = jnp.maximum(conv3x3(w1_ref, b1_ref, n), 0.0)
            # Reuse the same padded scratch: conv1 of image n is done, so its
            # interior rows can be overwritten with relu(conv1); the halo
            # lanes stay zero from the one-time clear above.
            pad_ref[r0:r0 + C, BASE:BASE + P] = h1
            c2 = conv3x3(w2_ref, b2_ref, n)
            out_ref[r0:r0 + C, :] = jnp.maximum(
                x_ref[r0:r0 + C, :] + c2, 0.0).astype(out_ref.dtype)

    out_flat = pl.pallas_call(
        kernel,
        out_shape=jax.ShapeDtypeStruct((NC, P), jnp.float32),
        grid=(1,),                                          # whole batch per step
        in_specs=[
            pl.BlockSpec((NC, P), lambda i: (0, 0)),            # x, lane-dense
            pl.BlockSpec((C, KH * KW * C), lambda i: (0, 0)),   # conv1 weight cols
            pl.BlockSpec((C, 1), lambda i: (0, 0)),             # conv1 bias
            pl.BlockSpec((C, KH * KW * C), lambda i: (0, 0)),   # conv2 weight cols
            pl.BlockSpec((C, 1), lambda i: (0, 0)),             # conv2 bias
            pl.BlockSpec((1, P), lambda i: (0, 0)),             # left-edge mask
            pl.BlockSpec((1, P), lambda i: (0, 0)),             # right-edge mask
        ],
        out_specs=pl.BlockSpec((NC, P), lambda i: (0, 0)),      # lane-dense out
        scratch_shapes=[pltpu.VMEM((NC, L), jnp.float32)],      # padded x / h1
        compiler_params=pltpu.CompilerParams(
            dimension_semantics=("arbitrary",)),
    )(x_flat, w1c, b1c, w2c, b2c, mask_left, mask_right)

    return out_flat.reshape(N, C, H, W)


def reference_forward(x_nchw, w1, b1, w2, b2):
    """Pure-JAX reference (mirrors PyTorch Conv2d + ReLU + residual)."""
    dn = ('NCHW', 'OIHW', 'NCHW')
    h = lax.conv_general_dilated(x_nchw, w1, (1, 1), ((1, 1), (1, 1)),
                                 dimension_numbers=dn) + b1[None, :, None, None]
    h = jnp.maximum(h, 0.0)
    h = lax.conv_general_dilated(h, w2, (1, 1), ((1, 1), (1, 1)),
                                 dimension_numbers=dn) + b2[None, :, None, None]
    return jnp.maximum(x_nchw + h, 0.0)


if __name__ == "__main__":
    # Small shapes consistent with the module: num_filters=4, kernel_size=3.
    N, C, H, W = 2, 4, 16, 16

    key = jax.random.PRNGKey(0)
    kx, kw1, kb1, kw2, kb2 = jax.random.split(key, 5)

    x = jax.random.normal(kx, (N, C, H, W), jnp.float32)
    # Deterministic synthetic Conv2d parameters (OIHW, like PyTorch).
    fan_in = C * KH * KW
    scale = 1.0 / jnp.sqrt(jnp.float32(fan_in))
    w1 = jax.random.uniform(kw1, (C, C, KH, KW), jnp.float32, -scale, scale)
    b1 = jax.random.uniform(kb1, (C,), jnp.float32, -scale, scale)
    w2 = jax.random.uniform(kw2, (C, C, KH, KW), jnp.float32, -scale, scale)
    b2 = jax.random.uniform(kb2, (C,), jnp.float32, -scale, scale)

    # TODO(synk): nn.Dropout2d output is discarded in the original forward and
    # the BatchNorm2d layers are never called, so neither is part of the kernel.

    out = residual_block_forward(x, w1, b1, w2, b2)
    out = jax.block_until_ready(out)

    ref = reference_forward(x, w1, b1, w2, b2)
    assert out.shape == (N, C, H, W)
    assert jnp.allclose(out, ref, atol=1e-4, rtol=1e-4), "mismatch vs reference"

    print("KERNEL_OK")
</pallas_src>

<mosaic_0001>
module attributes {stable_mosaic.version = 11 : i64} {
  func.func @kernel(%arg0: i32, %arg1: memref<8x256xf32, #tpu.memory_space<vmem>>, %arg2: memref<4x36xf32, #tpu.memory_space<vmem>>, %arg3: memref<4x1xf32, #tpu.memory_space<vmem>>, %arg4: memref<4x36xf32, #tpu.memory_space<vmem>>, %arg5: memref<4x1xf32, #tpu.memory_space<vmem>>, %arg6: memref<1x256xf32, #tpu.memory_space<vmem>>, %arg7: memref<1x256xf32, #tpu.memory_space<vmem>>, %arg8: memref<8x256xf32, #tpu.memory_space<vmem>>, %arg9: memref<8x416xf32, #tpu.memory_space<vmem>>) attributes {dimension_semantics = [#tpu.dimension_semantics<arbitrary>], iteration_bounds = array<i64: 1>, scalar_prefetch = 0 : i64, scratch_operands = 1 : i64, tpu.core_type = #tpu.core_type<tc>, window_params = [{pipeline_mode = #tpu.pipeline_mode<synchronous>, transform_indices = @transform_0, window_bounds = array<i64: 8, 256>}, {pipeline_mode = #tpu.pipeline_mode<synchronous>, transform_indices = @transform_1, window_bounds = array<i64: 4, 36>}, {pipeline_mode = #tpu.pipeline_mode<synchronous>, transform_indices = @transform_2, window_bounds = array<i64: 4, 1>}, {pipeline_mode = #tpu.pipeline_mode<synchronous>, transform_indices = @transform_3, window_bounds = array<i64: 4, 36>}, {pipeline_mode = #tpu.pipeline_mode<synchronous>, transform_indices = @transform_4, window_bounds = array<i64: 4, 1>}, {pipeline_mode = #tpu.pipeline_mode<synchronous>, transform_indices = @transform_5, window_bounds = array<i64: 1, 256>}, {pipeline_mode = #tpu.pipeline_mode<synchronous>, transform_indices = @transform_6, window_bounds = array<i64: 1, 256>}, {pipeline_mode = #tpu.pipeline_mode<synchronous>, transform_indices = @transform_7, window_bounds = array<i64: 8, 256>}]} {
    %cst = arith.constant 0.000000e+00 : f32
    %0 = vector.broadcast %cst : f32 to vector<8x416xf32>
    %c0 = arith.constant 0 : index
    %c0_0 = arith.constant 0 : index
    %1 = vector.load %arg9[%c0, %c0_0] : memref<8x416xf32, #tpu.memory_space<vmem>>, vector<8x416xf32>
    tpu.vector_store %arg9[%c0, %c0_0], %0 {strides = array<i32>} : memref<8x416xf32, #tpu.memory_space<vmem>>, vector<8x416xf32>,
    %c0_1 = arith.constant 0 : index
    %c0_2 = arith.constant 0 : index
    %2 = vector.load %arg1[%c0_1, %c0_2] : memref<8x256xf32, #tpu.memory_space<vmem>>, vector<8x256xf32>
    %c0_3 = arith.constant 0 : index
    %c128 = arith.constant 128 : index
    %3 = vector.load %arg9[%c0_3, %c128] : memref<8x416xf32, #tpu.memory_space<vmem>>, vector<8x256xf32>
    tpu.vector_store %arg9[%c0_3, %c128], %2 {strides = array<i32>} : memref<8x416xf32, #tpu.memory_space<vmem>>, vector<8x256xf32>,
    %c0_4 = arith.constant 0 : index
    %c0_5 = arith.constant 0 : index
    %4 = vector.load %arg6[%c0_4, %c0_5] : memref<1x256xf32, #tpu.memory_space<vmem>>, vector<1x256xf32>
    %c0_6 = arith.constant 0 : index
    %c0_7 = arith.constant 0 : index
    %5 = vector.load %arg7[%c0_6, %c0_7] : memref<1x256xf32, #tpu.memory_space<vmem>>, vector<1x256xf32>
    %c0_8 = arith.constant 0 : index
    %c0_9 = arith.constant 0 : index
    %6 = vector.load %arg3[%c0_8, %c0_9] : memref<4x1xf32, #tpu.memory_space<vmem>>, vector<4x1xf32>
    %7 = vector.shape_cast %6 : vector<4x1xf32> to vector<4x1xf32>
    %8 = vector.broadcast %7 : vector<4x1xf32> to vector<4x256xf32>
    %cst_10 = arith.constant 0.000000e+00 : f32
    %9 = vector.broadcast %cst_10 : f32 to vector<4x256xf32>
    %c0_11 = arith.constant 0 : index
    %c111 = arith.constant 111 : index
    %10 = vector.load %arg9[%c0_11, %c111] : memref<8x416xf32, #tpu.memory_space<vmem>>, vector<1x256xf32>
    %c0_12 = arith.constant 0 : index
    %c0_13 = arith.constant 0 : index
    %11 = vector.load %arg2[%c0_12, %c0_13] : memref<4x36xf32, #tpu.memory_space<vmem>>, vector<4x1xf32>
    %12 = vector.broadcast %11 : vector<4x1xf32> to vector<4x256xf32>
    %13 = vector.broadcast %10 : vector<1x256xf32> to vector<4x256xf32>
    %14 = arith.mulf %12, %13 : vector<4x256xf32>
    %15 = arith.addf %9, %14 : vector<4x256xf32>
    %c1 = arith.constant 1 : index
    %c111_14 = arith.constant 111 : index
    %16 = vector.load %arg9[%c1, %c111_14] : memref<8x416xf32, #tpu.memory_space<vmem>>, vector<1x256xf32>
    %c0_15 = arith.constant 0 : index
    %c1_16 = arith.constant 1 : index
    %17 = vector.load %arg2[%c0_15, %c1_16] : memref<4x36xf32, #tpu.memory_space<vmem>>, vector<4x1xf32>
    %18 = vector.broadcast %17 : vector<4x1xf32> to vector<4x256xf32>
    %19 = vector.broadcast %16 : vector<1x256xf32> to vector<4x256xf32>
    %20 = arith.mulf %18, %19 : vector<4x256xf32>
    %21 = arith.addf %15, %20 : vector<4x256xf32>
    %c2 = arith.constant 2 : index
    %c111_17 = arith.constant 111 : index
    %22 = vector.load %arg9[%c2, %c111_17] : memref<8x416xf32, #tpu.memory_space<vmem>>, vector<1x256xf32>
    %c0_18 = arith.constant 0 : index
    %c2_19 = arith.constant 2 : index
    %23 = vector.load %arg2[%c0_18, %c2_19] : memref<4x36xf32, #tpu.memory_space<vmem>>, vector<4x1xf32>
    %24 = vector.broadcast %23 : vector<4x1xf32> to vector<4x256xf32>
    %25 = vector.broadcast %22 : vector<1x256xf32> to vector<4x256xf32>
    %26 = arith.mulf %24, %25 : vector<4x256xf32>
    %27 = arith.addf %21, %26 : vector<4x256xf32>
    %c3 = arith.constant 3 : index
    %c111_20 = arith.constant 111 : index
    %28 = vector.load %arg9[%c3, %c111_20] : memref<8x416xf32, #tpu.memory_space<vmem>>, vector<1x256xf32>
    %c0_21 = arith.constant 0 : index
    %c3_22 = arith.constant 3 : index
    %29 = vector.load %arg2[%c0_21, %c3_22] : memref<4x36xf32, #tpu.memory_space<vmem>>, vector<4x1xf32>
    %30 = vector.broadcast %29 : vector<4x1xf32> to vector<4x256xf32>
    %31 = vector.broadcast %28 : vector<1x256xf32> to vector<4x256xf32>
    %32 = arith.mulf %30, %31 : vector<4x256xf32>
    %33 = arith.addf %27, %32 : vector<4x256xf32>
    %34 = vector.broadcast %4 : vector<1x256xf32> to vector<4x256xf32>
    %35 = arith.mulf %33, %34 : vector<4x256xf32>
    %36 = arith.addf %8, %35 : vector<4x256xf32>
    %cst_23 = arith.constant 0.000000e+00 : f32
    %37 = vector.broadcast %cst_23 : f32 to vector<4x256xf32>
    %c0_24 = arith.constant 0 : index
    %c112 = arith.constant 112 : index
    %38 = vector.load %arg9[%c0_24, %c112] : memref<8x416xf32, #tpu.memory_space<vmem>>, vector<1x256xf32>
    %c0_25 = arith.constant 0 : index
    %c4 = arith.constant 4 : index
    %39 = vector.load %arg2[%c0_25, %c4] : memref<4x36xf32, #tpu.memory_space<vmem>>, vector<4x1xf32>
    %40 = vector.broadcast %39 : vector<4x1xf32> to vector<4x256xf32>
    %41 = vector.broadcast %38 : vector<1x256xf32> to vector<4x256xf32>
    %42 = arith.mulf %40, %41 : vector<4x256xf32>
    %43 = arith.addf %37, %42 : vector<4x256xf32>
    %c1_26 = arith.constant 1 : index
    %c112_27 = arith.constant 112 : index
    %44 = vector.load %arg9[%c1_26, %c112_27] : memref<8x416xf32, #tpu.memory_space<vmem>>, vector<1x256xf32>
    %c0_28 = arith.constant 0 : index
    %c5 = arith.constant 5 : index
    %45 = vector.load %arg2[%c0_28, %c5] : memref<4x36xf32, #tpu.memory_space<vmem>>, vector<4x1xf32>
    %46 = vector.broadcast %45 : vector<4x1xf32> to vector<4x256xf32>
    %47 = vector.broadcast %44 : vector<1x256xf32> to vector<4x256xf32>
    %48 = arith.mulf %46, %47 : vector<4x256xf32>
    %49 = arith.addf %43, %48 : vector<4x256xf32>
    %c2_29 = arith.constant 2 : index
    %c112_30 = arith.constant 112 : index
    %50 = vector.load %arg9[%c2_29, %c112_30] : memref<8x416xf32, #tpu.memory_space<vmem>>, vector<1x256xf32>
    %c0_31 = arith.constant 0 : index
    %c6 = arith.constant 6 : index
    %51 = vector.load %arg2[%c0_31, %c6] : memref<4x36xf32, #tpu.memory_space<vmem>>, vector<4x1xf32>
    %52 = vector.broadcast %51 : vector<4x1xf32> to vector<4x256xf32>
    %53 = vector.broadcast %50 : vector<1x256xf32> to vector<4x256xf32>
    %54 = arith.mulf %52, %53 : vector<4x256xf32>
    %55 = arith.addf %49, %54 : vector<4x256xf32>
    %c3_32 = arith.constant 3 : index
    %c112_33 = arith.constant 112 : index
    %56 = vector.load %arg9[%c3_32, %c112_33] : memref<8x416xf32, #tpu.memory_space<vmem>>, vector<1x256xf32>
    %c0_34 = arith.constant 0 : index
    %c7 = arith.constant 7 : index
    %57 = vector.load %arg2[%c0_34, %c7] : memref<4x36xf32, #tpu.memory_space<vmem>>, vector<4x1xf32>
    %58 = vector.broadcast %57 : vector<4x1xf32> to vector<4x256xf32>
    %59 = vector.broadcast %56 : vector<1x256xf32> to vector<4x256xf32>
    %60 = arith.mulf %58, %59 : vector<4x256xf32>
    %61 = arith.addf %55, %60 : vector<4x256xf32>
    %62 = arith.addf %36, %61 : vector<4x256xf32>
    %cst_35 = arith.constant 0.000000e+00 : f32
    %63 = vector.broadcast %cst_35 : f32 to vector<4x256xf32>
    %c0_36 = arith.constant 0 : index
    %c113 = arith.constant 113 : index
    %64 = vector.load %arg9[%c0_36, %c113] : memref<8x416xf32, #tpu.memory_space<vmem>>, vector<1x256xf32>
    %c0_37 = arith.constant 0 : index
    %c8 = arith.constant 8 : index
    %65 = vector.load %arg2[%c0_37, %c8] : memref<4x36xf32, #tpu.memory_space<vmem>>, vector<4x1xf32>
    %66 = vector.broadcast %65 : vector<4x1xf32> to vector<4x256xf32>
    %67 = vector.broadcast %64 : vector<1x256xf32> to vector<4x256xf32>
    %68 = arith.mulf %66, %67 : vector<4x256xf32>
    %69 = arith.addf %63, %68 : vector<4x256xf32>
    %c1_38 = arith.constant 1 : index
    %c113_39 = arith.constant 113 : index
    %70 = vector.load %arg9[%c1_38, %c113_39] : memref<8x416xf32, #tpu.memory_space<vmem>>, vector<1x256xf32>
    %c0_40 = arith.constant 0 : index
    %c9 = arith.constant 9 : index
    %71 = vector.load %arg2[%c0_40, %c9] : memref<4x36xf32, #tpu.memory_space<vmem>>, vector<4x1xf32>
    %72 = vector.broadcast %71 : vector<4x1xf32> to vector<4x256xf32>
    %73 = vector.broadcast %70 : vector<1x256xf32> to vector<4x256xf32>
    %74 = arith.mulf %72, %73 : vector<4x256xf32>
    %75 = arith.addf %69, %74 : vector<4x256xf32>
    %c2_41 = arith.constant 2 : index
    %c113_42 = arith.constant 113 : index
    %76 = vector.load %arg9[%c2_41, %c113_42] : memref<8x416xf32, #tpu.memory_space<vmem>>, vector<1x256xf32>
    %c0_43 = arith.constant 0 : index
    %c10 = arith.constant 10 : index
    %77 = vector.load %arg2[%c0_43, %c10] : memref<4x36xf32, #tpu.memory_space<vmem>>, vector<4x1xf32>
    %78 = vector.broadcast %77 : vector<4x1xf32> to vector<4x256xf32>
    %79 = vector.broadcast %76 : vector<1x256xf32> to vector<4x256xf32>
    %80 = arith.mulf %78, %79 : vector<4x256xf32>
    %81 = arith.addf %75, %80 : vector<4x256xf32>
    %c3_44 = arith.constant 3 : index
    %c113_45 = arith.constant 113 : index
    %82 = vector.load %arg9[%c3_44, %c113_45] : memref<8x416xf32, #tpu.memory_space<vmem>>, vector<1x256xf32>
    %c0_46 = arith.constant 0 : index
    %c11 = arith.constant 11 : index
    %83 = vector.load %arg2[%c0_46, %c11] : memref<4x36xf32, #tpu.memory_space<vmem>>, vector<4x1xf32>
    %84 = vector.broadcast %83 : vector<4x1xf32> to vector<4x256xf32>
    %85 = vector.broadcast %82 : vector<1x256xf32> to vector<4x256xf32>
    %86 = arith.mulf %84, %85 : vector<4x256xf32>
    %87 = arith.addf %81, %86 : vector<4x256xf32>
    %88 = vector.broadcast %5 : vector<1x256xf32> to vector<4x256xf32>
    %89 = arith.mulf %87, %88 : vector<4x256xf32>
    %90 = arith.addf %62, %89 : vector<4x256xf32>
    %cst_47 = arith.constant 0.000000e+00 : f32
    %91 = vector.broadcast %cst_47 : f32 to vector<4x256xf32>
    %c0_48 = arith.constant 0 : index
    %c127 = arith.constant 127 : index
    %92 = vector.load %arg9[%c0_48, %c127] : memref<8x416xf32, #tpu.memory_space<vmem>>, vector<1x256xf32>
    %c0_49 = arith.constant 0 : index
    %c12 = arith.constant 12 : index
    %93 = vector.load %arg2[%c0_49, %c12] : memref<4x36xf32, #tpu.memory_space<vmem>>, vector<4x1xf32>
    %94 = vector.broadcast %93 : vector<4x1xf32> to vector<4x256xf32>
    %95 = vector.broadcast %92 : vector<1x256xf32> to vector<4x256xf32>
    %96 = arith.mulf %94, %95 : vector<4x256xf32>
    %97 = arith.addf %91, %96 : vector<4x256xf32>
    %c1_50 = arith.constant 1 : index
    %c127_51 = arith.constant 127 : index
    %98 = vector.load %arg9[%c1_50, %c127_51] : memref<8x416xf32, #tpu.memory_space<vmem>>, vector<1x256xf32>
    %c0_52 = arith.constant 0 : index
    %c13 = arith.constant 13 : index
    %99 = vector.load %arg2[%c0_52, %c13] : memref<4x36xf32, #tpu.memory_space<vmem>>, vector<4x1xf32>
    %100 = vector.broadcast %99 : vector<4x1xf32> to vector<4x256xf32>
    %101 = vector.broadcast %98 : vector<1x256xf32> to vector<4x256xf32>
    %102 = arith.mulf %100, %101 : vector<4x256xf32>
    %103 = arith.addf %97, %102 : vector<4x256xf32>
    %c2_53 = arith.constant 2 : index
    %c127_54 = arith.constant 127 : index
    %104 = vector.load %arg9[%c2_53, %c127_54] : memref<8x416xf32, #tpu.memory_space<vmem>>, vector<1x256xf32>
    %c0_55 = arith.constant 0 : index
    %c14 = arith.constant 14 : index
    %105 = vector.load %arg2[%c0_55, %c14] : memref<4x36xf32, #tpu.memory_space<vmem>>, vector<4x1xf32>
    %106 = vector.broadcast %105 : vector<4x1xf32> to vector<4x256xf32>
    %107 = vector.broadcast %104 : vector<1x256xf32> to vector<4x256xf32>
    %108 = arith.mulf %106, %107 : vector<4x256xf32>
    %109 = arith.addf %103, %108 : vector<4x256xf32>
    %c3_56 = arith.constant 3 : index
    %c127_57 = arith.constant 127 : index
    %110 = vector.load %arg9[%c3_56, %c127_57] : memref<8x416xf32, #tpu.memory_space<vmem>>, vector<1x256xf32>
    %c0_58 = arith.constant 0 : index
    %c15 = arith.constant 15 : index
    %111 = vector.load %arg2[%c0_58, %c15] : memref<4x36xf32, #tpu.memory_space<vmem>>, vector<4x1xf32>
    %112 = vector.broadcast %111 : vector<4x1xf32> to vector<4x256xf32>
    %113 = vector.broadcast %110 : vector<1x256xf32> to vector<4x256xf32>
    %114 = arith.mulf %112, %113 : vector<4x256xf32>
    %115 = arith.addf %109, %114 : vector<4x256xf32>
    %116 = vector.broadcast %4 : vector<1x256xf32> to vector<4x256xf32>
    %117 = arith.mulf %115, %116 : vector<4x256xf32>
    %118 = arith.addf %90, %117 : vector<4x256xf32>
    %cst_59 = arith.constant 0.000000e+00 : f32
    %119 = vector.broadcast %cst_59 : f32 to vector<4x256xf32>
    %c0_60 = arith.constant 0 : index
    %c128_61 = arith.constant 128 : index
    %120 = vector.load %arg9[%c0_60, %c128_61] : memref<8x416xf32, #tpu.memory_space<vmem>>, vector<1x256xf32>
    %c0_62 = arith.constant 0 : index
    %c16 = arith.constant 16 : index
    %121 = vector.load %arg2[%c0_62, %c16] : memref<4x36xf32, #tpu.memory_space<vmem>>, vector<4x1xf32>
    %122 = vector.broadcast %121 : vector<4x1xf32> to vector<4x256xf32>
    %123 = vector.broadcast %120 : vector<1x256xf32> to vector<4x256xf32>
    %124 = arith.mulf %122, %123 : vector<4x256xf32>
    %125 = arith.addf %119, %124 : vector<4x256xf32>
    %c1_63 = arith.constant 1 : index
    %c128_64 = arith.constant 128 : index
    %126 = vector.load %arg9[%c1_63, %c128_64] : memref<8x416xf32, #tpu.memory_space<vmem>>, vector<1x256xf32>
    %c0_65 = arith.constant 0 : index
    %c17 = arith.constant 17 : index
    %127 = vector.load %arg2[%c0_65, %c17] : memref<4x36xf32, #tpu.memory_space<vmem>>, vector<4x1xf32>
    %128 = vector.broadcast %127 : vector<4x1xf32> to vector<4x256xf32>
    %129 = vector.broadcast %126 : vector<1x256xf32> to vector<4x256xf32>
    %130 = arith.mulf %128, %129 : vector<4x256xf32>
    %131 = arith.addf %125, %130 : vector<4x256xf32>
    %c2_66 = arith.constant 2 : index
    %c128_67 = arith.constant 128 : index
    %132 = vector.load %arg9[%c2_66, %c128_67] : memref<8x416xf32, #tpu.memory_space<vmem>>, vector<1x256xf32>
    %c0_68 = arith.constant 0 : index
    %c18 = arith.constant 18 : index
    %133 = vector.load %arg2[%c0_68, %c18] : memref<4x36xf32, #tpu.memory_space<vmem>>, vector<4x1xf32>
    %134 = vector.broadcast %133 : vector<4x1xf32> to vector<4x256xf32>
    %135 = vector.broadcast %132 : vector<1x256xf32> to vector<4x256xf32>
    %136 = arith.mulf %134, %135 : vector<4x256xf32>
    %137 = arith.addf %131, %136 : vector<4x256xf32>
    %c3_69 = arith.constant 3 : index
    %c128_70 = arith.constant 128 : index
    %138 = vector.load %arg9[%c3_69, %c128_70] : memref<8x416xf32, #tpu.memory_space<vmem>>, vector<1x256xf32>
    %c0_71 = arith.constant 0 : index
    %c19 = arith.constant 19 : index
    %139 = vector.load %arg2[%c0_71, %c19] : memref<4x36xf32, #tpu.memory_space<vmem>>, vector<4x1xf32>
    %140 = vector.broadcast %139 : vector<4x1xf32> to vector<4x256xf32>
    %141 = vector.broadcast %138 : vector<1x256xf32> to vector<4x256xf32>
    %142 = arith.mulf %140, %141 : vector<4x256xf32>
    %143 = arith.addf %137, %142 : vector<4x256xf32>
    %144 = arith.addf %118, %143 : vector<4x256xf32>
    %cst_72 = arith.constant 0.000000e+00 : f32
    %145 = vector.broadcast %cst_72 : f32 to vector<4x256xf32>
    %c0_73 = arith.constant 0 : index
    %c129 = arith.constant 129 : index
    %146 = vector.load %arg9[%c0_73, %c129] : memref<8x416xf32, #tpu.memory_space<vmem>>, vector<1x256xf32>
    %c0_74 = arith.constant 0 : index
    %c20 = arith.constant 20 : index
    %147 = vector.load %arg2[%c0_74, %c20] : memref<4x36xf32, #tpu.memory_space<vmem>>, vector<4x1xf32>
    %148 = vector.broadcast %147 : vector<4x1xf32> to vector<4x256xf32>
    %149 = vector.broadcast %146 : vector<1x256xf32> to vector<4x256xf32>
    %150 = arith.mulf %148, %149 : vector<4x256xf32>
    %151 = arith.addf %145, %150 : vector<4x256xf32>
    %c1_75 = arith.constant 1 : index
    %c129_76 = arith.constant 129 : index
    %152 = vector.load %arg9[%c1_75, %c129_76] : memref<8x416xf32, #tpu.memory_space<vmem>>, vector<1x256xf32>
    %c0_77 = arith.constant 0 : index
    %c21 = arith.constant 21 : index
    %153 = vector.load %arg2[%c0_77, %c21] : memref<4x36xf32, #tpu.memory_space<vmem>>, vector<4x1xf32>
    %154 = vector.broadcast %153 : vector<4x1xf32> to vector<4x256xf32>
    %155 = vector.broadcast %152 : vector<1x256xf32> to vector<4x256xf32>
    %156 = arith.mulf %154, %155 : vector<4x256xf32>
    %157 = arith.addf %151, %156 : vector<4x256xf32>
    %c2_78 = arith.constant 2 : index
    %c129_79 = arith.constant 129 : index
    %158 = vector.load %arg9[%c2_78, %c129_79] : memref<8x416xf32, #tpu.memory_space<vmem>>, vector<1x256xf32>
    %c0_80 = arith.constant 0 : index
    %c22 = arith.constant 22 : index
    %159 = vector.load %arg2[%c0_80, %c22] : memref<4x36xf32, #tpu.memory_space<vmem>>, vector<4x1xf32>
    %160 = vector.broadcast %159 : vector<4x1xf32> to vector<4x256xf32>
    %161 = vector.broadcast %158 : vector<1x256xf32> to vector<4x256xf32>
    %162 = arith.mulf %160, %161 : vector<4x256xf32>
    %163 = arith.addf %157, %162 : vector<4x256xf32>
    %c3_81 = arith.constant 3 : index
    %c129_82 = arith.constant 129 : index
    %164 = vector.load %arg9[%c3_81, %c129_82] : memref<8x416xf32, #tpu.memory_space<vmem>>, vector<1x256xf32>
    %c0_83 = arith.constant 0 : index
    %c23 = arith.constant 23 : index
    %165 = vector.load %arg2[%c0_83, %c23] : memref<4x36xf32, #tpu.memory_space<vmem>>, vector<4x1xf32>
    %166 = vector.broadcast %165 : vector<4x1xf32> to vector<4x256xf32>
    %167 = vector.broadcast %164 : vector<1x256xf32> to vector<4x256xf32>
    %168 = arith.mulf %166, %167 : vector<4x256xf32>
    %169 = arith.addf %163, %168 : vector<4x256xf32>
    %170 = vector.broadcast %5 : vector<1x256xf32> to vector<4x256xf32>
    %171 = arith.mulf %169, %170 : vector<4x256xf32>
    %172 = arith.addf %144, %171 : vector<4x256xf32>
    %cst_84 = arith.constant 0.000000e+00 : f32
    %173 = vector.broadcast %cst_84 : f32 to vector<4x256xf32>
    %c0_85 = arith.constant 0 : index
    %c143 = arith.constant 143 : index
    %174 = vector.load %arg9[%c0_85, %c143] : memref<8x416xf32, #tpu.memory_space<vmem>>, vector<1x256xf32>
    %c0_86 = arith.constant 0 : index
    %c24 = arith.constant 24 : index
    %175 = vector.load %arg2[%c0_86, %c24] : memref<4x36xf32, #tpu.memory_space<vmem>>, vector<4x1xf32>
    %176 = vector.broadcast %175 : vector<4x1xf32> to vector<4x256xf32>
    %177 = vector.broadcast %174 : vector<1x256xf32> to vector<4x256xf32>
    %178 = arith.mulf %176, %177 : vector<4x256xf32>
    %179 = arith.addf %173, %178 : vector<4x256xf32>
    %c1_87 = arith.constant 1 : index
    %c143_88 = arith.constant 143 : index
    %180 = vector.load %arg9[%c1_87, %c143_88] : memref<8x416xf32, #tpu.memory_space<vmem>>, vector<1x256xf32>
    %c0_89 = arith.constant 0 : index
    %c25 = arith.constant 25 : index
    %181 = vector.load %arg2[%c0_89, %c25] : memref<4x36xf32, #tpu.memory_space<vmem>>, vector<4x1xf32>
    %182 = vector.broadcast %181 : vector<4x1xf32> to vector<4x256xf32>
    %183 = vector.broadcast %180 : vector<1x256xf32> to vector<4x256xf32>
    %184 = arith.mulf %182, %183 : vector<4x256xf32>
    %185 = arith.addf %179, %184 : vector<4x256xf32>
    %c2_90 = arith.constant 2 : index
    %c143_91 = arith.constant 143 : index
    %186 = vector.load %arg9[%c2_90, %c143_91] : memref<8x416xf32, #tpu.memory_space<vmem>>, vector<1x256xf32>
    %c0_92 = arith.constant 0 : index
    %c26 = arith.constant 26 : index
    %187 = vector.load %arg2[%c0_92, %c26] : memref<4x36xf32, #tpu.memory_space<vmem>>, vector<4x1xf32>
    %188 = vector.broadcast %187 : vector<4x1xf32> to vector<4x256xf32>
    %189 = vector.broadcast %186 : vector<1x256xf32> to vector<4x256xf32>
    %190 = arith.mulf %188, %189 : vector<4x256xf32>
    %191 = arith.addf %185, %190 : vector<4x256xf32>
    %c3_93 = arith.constant 3 : index
    %c143_94 = arith.constant 143 : index
    %192 = vector.load %arg9[%c3_93, %c143_94] : memref<8x416xf32, #tpu.memory_space<vmem>>, vector<1x256xf32>
    %c0_95 = arith.constant 0 : index
    %c27 = arith.constant 27 : index
    %193 = vector.load %arg2[%c0_95, %c27] : memref<4x36xf32, #tpu.memory_space<vmem>>, vector<4x1xf32>
    %194 = vector.broadcast %193 : vector<4x1xf32> to vector<4x256xf32>
    %195 = vector.broadcast %192 : vector<1x256xf32> to vector<4x256xf32>
    %196 = arith.mulf %194, %195 : vector<4x256xf32>
    %197 = arith.addf %191, %196 : vector<4x256xf32>
    %198 = vector.broadcast %4 : vector<1x256xf32> to vector<4x256xf32>
    %199 = arith.mulf %197, %198 : vector<4x256xf32>
    %200 = arith.addf %172, %199 : vector<4x256xf32>
    %cst_96 = arith.constant 0.000000e+00 : f32
    %201 = vector.broadcast %cst_96 : f32 to vector<4x256xf32>
    %c0_97 = arith.constant 0 : index
    %c144 = arith.constant 144 : index
    %202 = vector.load %arg9[%c0_97, %c144] : memref<8x416xf32, #tpu.memory_space<vmem>>, vector<1x256xf32>
    %c0_98 = arith.constant 0 : index
    %c28 = arith.constant 28 : index
    %203 = vector.load %arg2[%c0_98, %c28] : memref<4x36xf32, #tpu.memory_space<vmem>>, vector<4x1xf32>
    %204 = vector.broadcast %203 : vector<4x1xf32> to vector<4x256xf32>
    %205 = vector.broadcast %202 : vector<1x256xf32> to vector<4x256xf32>
    %206 = arith.mulf %204, %205 : vector<4x256xf32>
    %207 = arith.addf %201, %206 : vector<4x256xf32>
    %c1_99 = arith.constant 1 : index
    %c144_100 = arith.constant 144 : index
    %208 = vector.load %arg9[%c1_99, %c144_100] : memref<8x416xf32, #tpu.memory_space<vmem>>, vector<1x256xf32>
    %c0_101 = arith.constant 0 : index
    %c29 = arith.constant 29 : index
    %209 = vector.load %arg2[%c0_101, %c29] : memref<4x36xf32, #tpu.memory_space<vmem>>, vector<4x1xf32>
    %210 = vector.broadcast %209 : vector<4x1xf32> to vector<4x256xf32>
    %211 = vector.broadcast %208 : vector<1x256xf32> to vector<4x256xf32>
    %212 = arith.mulf %210, %211 : vector<4x256xf32>
    %213 = arith.addf %207, %212 : vector<4x256xf32>
    %c2_102 = arith.constant 2 : index
    %c144_103 = arith.constant 144 : index
    %214 = vector.load %arg9[%c2_102, %c144_103] : memref<8x416xf32, #tpu.memory_space<vmem>>, vector<1x256xf32>
    %c0_104 = arith.constant 0 : index
    %c30 = arith.constant 30 : index
    %215 = vector.load %arg2[%c0_104, %c30] : memref<4x36xf32, #tpu.memory_space<vmem>>, vector<4x1xf32>
    %216 = vector.broadcast %215 : vector<4x1xf32> to vector<4x256xf32>
    %217 = vector.broadcast %214 : vector<1x256xf32> to vector<4x256xf32>
    %218 = arith.mulf %216, %217 : vector<4x256xf32>
    %219 = arith.addf %213, %218 : vector<4x256xf32>
    %c3_105 = arith.constant 3 : index
    %c144_106 = arith.constant 144 : index
    %220 = vector.load %arg9[%c3_105, %c144_106] : memref<8x416xf32, #tpu.memory_space<vmem>>, vector<1x256xf32>
    %c0_107 = arith.constant 0 : index
    %c31 = arith.constant 31 : index
    %221 = vector.load %arg2[%c0_107, %c31] : memref<4x36xf32, #tpu.memory_space<vmem>>, vector<4x1xf32>
    %222 = vector.broadcast %221 : vector<4x1xf32> to vector<4x256xf32>
    %223 = vector.broadcast %220 : vector<1x256xf32> to vector<4x256xf32>
    %224 = arith.mulf %222, %223 : vector<4x256xf32>
    %225 = arith.addf %219, %224 : vector<4x256xf32>
    %226 = arith.addf %200, %225 : vector<4x256xf32>
    %cst_108 = arith.constant 0.000000e+00 : f32
    %227 = vector.broadcast %cst_108 : f32 to vector<4x256xf32>
    %c0_109 = arith.constant 0 : index
    %c145 = arith.constant 145 : index
    %228 = vector.load %arg9[%c0_109, %c145] : memref<8x416xf32, #tpu.memory_space<vmem>>, vector<1x256xf32>
    %c0_110 = arith.constant 0 : index
    %c32 = arith.constant 32 : index
    %229 = vector.load %arg2[%c0_110, %c32] : memref<4x36xf32, #tpu.memory_space<vmem>>, vector<4x1xf32>
    %230 = vector.broadcast %229 : vector<4x1xf32> to vector<4x256xf32>
    %231 = vector.broadcast %228 : vector<1x256xf32> to vector<4x256xf32>
    %232 = arith.mulf %230, %231 : vector<4x256xf32>
    %233 = arith.addf %227, %232 : vector<4x256xf32>
    %c1_111 = arith.constant 1 : index
    %c145_112 = arith.constant 145 : index
    %234 = vector.load %arg9[%c1_111, %c145_112] : memref<8x416xf32, #tpu.memory_space<vmem>>, vector<1x256xf32>
    %c0_113 = arith.constant 0 : index
    %c33 = arith.constant 33 : index
    %235 = vector.load %arg2[%c0_113, %c33] : memref<4x36xf32, #tpu.memory_space<vmem>>, vector<4x1xf32>
    %236 = vector.broadcast %235 : vector<4x1xf32> to vector<4x256xf32>
    %237 = vector.broadcast %234 : vector<1x256xf32> to vector<4x256xf32>
    %238 = arith.mulf %236, %237 : vector<4x256xf32>
    %239 = arith.addf %233, %238 : vector<4x256xf32>
    %c2_114 = arith.constant 2 : index
    %c145_115 = arith.constant 145 : index
    %240 = vector.load %arg9[%c2_114, %c145_115] : memref<8x416xf32, #tpu.memory_space<vmem>>, vector<1x256xf32>
    %c0_116 = arith.constant 0 : index
    %c34 = arith.constant 34 : index
    %241 = vector.load %arg2[%c0_116, %c34] : memref<4x36xf32, #tpu.memory_space<vmem>>, vector<4x1xf32>
    %242 = vector.broadcast %241 : vector<4x1xf32> to vector<4x256xf32>
    %243 = vector.broadcast %240 : vector<1x256xf32> to vector<4x256xf32>
    %244 = arith.mulf %242, %243 : vector<4x256xf32>
    %245 = arith.addf %239, %244 : vector<4x256xf32>
    %c3_117 = arith.constant 3 : index
    %c145_118 = arith.constant 145 : index
    %246 = vector.load %arg9[%c3_117, %c145_118] : memref<8x416xf32, #tpu.memory_space<vmem>>, vector<1x256xf32>
    %c0_119 = arith.constant 0 : index
    %c35 = arith.constant 35 : index
    %247 = vector.load %arg2[%c0_119, %c35] : memref<4x36xf32, #tpu.memory_space<vmem>>, vector<4x1xf32>
    %248 = vector.broadcast %247 : vector<4x1xf32> to vector<4x256xf32>
    %249 = vector.broadcast %246 : vector<1x256xf32> to vector<4x256xf32>
    %250 = arith.mulf %248, %249 : vector<4x256xf32>
    %251 = arith.addf %245, %250 : vector<4x256xf32>
    %252 = vector.broadcast %5 : vector<1x256xf32> to vector<4x256xf32>
    %253 = arith.mulf %251, %252 : vector<4x256xf32>
    %254 = arith.addf %226, %253 : vector<4x256xf32>
    %cst_120 = arith.constant 0.000000e+00 : f32
    %255 = vector.broadcast %cst_120 : f32 to vector<4x256xf32>
    %256 = arith.maximumf %254, %255 : vector<4x256xf32>
    %c0_121 = arith.constant 0 : index
    %c128_122 = arith.constant 128 : index
    %257 = vector.load %arg9[%c0_121, %c128_122] : memref<8x416xf32, #tpu.memory_space<vmem>>, vector<4x256xf32>
    tpu.vector_store %arg9[%c0_121, %c128_122], %256 {strides = array<i32>} : memref<8x416xf32, #tpu.memory_space<vmem>>, vector<4x256xf32>,
    %c0_123 = arith.constant 0 : index
    %c0_124 = arith.constant 0 : index
    %258 = vector.load %arg5[%c0_123, %c0_124] : memref<4x1xf32, #tpu.memory_space<vmem>>, vector<4x1xf32>
    %259 = vector.shape_cast %258 : vector<4x1xf32> to vector<4x1xf32>
    %260 = vector.broadcast %259 : vector<4x1xf32> to vector<4x256xf32>
    %cst_125 = arith.constant 0.000000e+00 : f32
    %261 = vector.broadcast %cst_125 : f32 to vector<4x256xf32>
    %c0_126 = arith.constant 0 : index
    %c111_127 = arith.constant 111 : index
    %262 = vector.load %arg9[%c0_126, %c111_127] : memref<8x416xf32, #tpu.memory_space<vmem>>, vector<1x256xf32>
    %c0_128 = arith.constant 0 : index
    %c0_129 = arith.constant 0 : index
    %263 = vector.load %arg4[%c0_128, %c0_129] : memref<4x36xf32, #tpu.memory_space<vmem>>, vector<4x1xf32>
    %264 = vector.broadcast %263 : vector<4x1xf32> to vector<4x256xf32>
    %265 = vector.broadcast %262 : vector<1x256xf32> to vector<4x256xf32>
    %266 = arith.mulf %264, %265 : vector<4x256xf32>
    %267 = arith.addf %261, %266 : vector<4x256xf32>
    %c1_130 = arith.constant 1 : index
    %c111_131 = arith.constant 111 : index
    %268 = vector.load %arg9[%c1_130, %c111_131] : memref<8x416xf32, #tpu.memory_space<vmem>>, vector<1x256xf32>
    %c0_132 = arith.constant 0 : index
    %c1_133 = arith.constant 1 : index
    %269 = vector.load %arg4[%c0_132, %c1_133] : memref<4x36xf32, #tpu.memory_space<vmem>>, vector<4x1xf32>
    %270 = vector.broadcast %269 : vector<4x1xf32> to vector<4x256xf32>
    %271 = vector.broadcast %268 : vector<1x256xf32> to vector<4x256xf32>
    %272 = arith.mulf %270, %271 : vector<4x256xf32>
    %273 = arith.addf %267, %272 : vector<4x256xf32>
    %c2_134 = arith.constant 2 : index
    %c111_135 = arith.constant 111 : index
    %274 = vector.load %arg9[%c2_134, %c111_135] : memref<8x416xf32, #tpu.memory_space<vmem>>, vector<1x256xf32>
    %c0_136 = arith.constant 0 : index
    %c2_137 = arith.constant 2 : index
    %275 = vector.load %arg4[%c0_136, %c2_137] : memref<4x36xf32, #tpu.memory_space<vmem>>, vector<4x1xf32>
    %276 = vector.broadcast %275 : vector<4x1xf32> to vector<4x256xf32>
    %277 = vector.broadcast %274 : vector<1x256xf32> to vector<4x256xf32>
    %278 = arith.mulf %276, %277 : vector<4x256xf32>
    %279 = arith.addf %273, %278 : vector<4x256xf32>
    %c3_138 = arith.constant 3 : index
    %c111_139 = arith.constant 111 : index
    %280 = vector.load %arg9[%c3_138, %c111_139] : memref<8x416xf32, #tpu.memory_space<vmem>>, vector<1x256xf32>
    %c0_140 = arith.constant 0 : index
    %c3_141 = arith.constant 3 : index
    %281 = vector.load %arg4[%c0_140, %c3_141] : memref<4x36xf32, #tpu.memory_space<vmem>>, vector<4x1xf32>
    %282 = vector.broadcast %281 : vector<4x1xf32> to vector<4x256xf32>
    %283 = vector.broadcast %280 : vector<1x256xf32> to vector<4x256xf32>
    %284 = arith.mulf %282, %283 : vector<4x256xf32>
    %285 = arith.addf %279, %284 : vector<4x256xf32>
    %286 = vector.broadcast %4 : vector<1x256xf32> to vector<4x256xf32>
    %287 = arith.mulf %285, %286 : vector<4x256xf32>
    %288 = arith.addf %260, %287 : vector<4x256xf32>
    %cst_142 = arith.constant 0.000000e+00 : f32
    %289 = vector.broadcast %cst_142 : f32 to vector<4x256xf32>
    %c0_143 = arith.constant 0 : index
    %c112_144 = arith.constant 112 : index
    %290 = vector.load %arg9[%c0_143, %c112_144] : memref<8x416xf32, #tpu.memory_space<vmem>>, vector<1x256xf32>
    %c0_145 = arith.constant 0 : index
    %c4_146 = arith.constant 4 : index
    %291 = vector.load %arg4[%c0_145, %c4_146] : memref<4x36xf32, #tpu.memory_space<vmem>>, vector<4x1xf32>
    %292 = vector.broadcast %291 : vector<4x1xf32> to vector<4x256xf32>
    %293 = vector.broadcast %290 : vector<1x256xf32> to vector<4x256xf32>
    %294 = arith.mulf %292, %293 : vector<4x256xf32>
    %295 = arith.addf %289, %294 : vector<4x256xf32>
    %c1_147 = arith.constant 1 : index
    %c112_148 = arith.constant 112 : index
    %296 = vector.load %arg9[%c1_147, %c112_148] : memref<8x416xf32, #tpu.memory_space<vmem>>, vector<1x256xf32>
    %c0_149 = arith.constant 0 : index
    %c5_150 = arith.constant 5 : index
    %297 = vector.load %arg4[%c0_149, %c5_150] : memref<4x36xf32, #tpu.memory_space<vmem>>, vector<4x1xf32>
    %298 = vector.broadcast %297 : vector<4x1xf32> to vector<4x256xf32>
    %299 = vector.broadcast %296 : vector<1x256xf32> to vector<4x256xf32>
    %300 = arith.mulf %298, %299 : vector<4x256xf32>
    %301 = arith.addf %295, %300 : vector<4x256xf32>
    %c2_151 = arith.constant 2 : index
    %c112_152 = arith.constant 112 : index
    %302 = vector.load %arg9[%c2_151, %c112_152] : memref<8x416xf32, #tpu.memory_space<vmem>>, vector<1x256xf32>
    %c0_153 = arith.constant 0 : index
    %c6_154 = arith.constant 6 : index
    %303 = vector.load %arg4[%c0_153, %c6_154] : memref<4x36xf32, #tpu.memory_space<vmem>>, vector<4x1xf32>
    %304 = vector.broadcast %303 : vector<4x1xf32> to vector<4x256xf32>
    %305 = vector.broadcast %302 : vector<1x256xf32> to vector<4x256xf32>
    %306 = arith.mulf %304, %305 : vector<4x256xf32>
    %307 = arith.addf %301, %306 : vector<4x256xf32>
    %c3_155 = arith.constant 3 : index
    %c112_156 = arith.constant 112 : index
    %308 = vector.load %arg9[%c3_155, %c112_156] : memref<8x416xf32, #tpu.memory_space<vmem>>, vector<1x256xf32>
    %c0_157 = arith.constant 0 : index
    %c7_158 = arith.constant 7 : index
    %309 = vector.load %arg4[%c0_157, %c7_158] : memref<4x36xf32, #tpu.memory_space<vmem>>, vector<4x1xf32>
    %310 = vector.broadcast %309 : vector<4x1xf32> to vector<4x256xf32>
    %311 = vector.broadcast %308 : vector<1x256xf32> to vector<4x256xf32>
    %312 = arith.mulf %310, %311 : vector<4x256xf32>
    %313 = arith.addf %307, %312 : vector<4x256xf32>
    %314 = arith.addf %288, %313 : vector<4x256xf32>
    %cst_159 = arith.constant 0.000000e+00 : f32
    %315 = vector.broadcast %cst_159 : f32 to vector<4x256xf32>
    %c0_160 = arith.constant 0 : index
    %c113_161 = arith.constant 113 : index
    %316 = vector.load %arg9[%c0_160, %c113_161] : memref<8x416xf32, #tpu.memory_space<vmem>>, vector<1x256xf32>
    %c0_162 = arith.constant 0 : index
    %c8_163 = arith.constant 8 : index
    %317 = vector.load %arg4[%c0_162, %c8_163] : memref<4x36xf32, #tpu.memory_space<vmem>>, vector<4x1xf32>
    %318 = vector.broadcast %317 : vector<4x1xf32> to vector<4x256xf32>
    %319 = vector.broadcast %316 : vector<1x256xf32> to vector<4x256xf32>
    %320 = arith.mulf %318, %319 : vector<4x256xf32>
    %321 = arith.addf %315, %320 : vector<4x256xf32>
    %c1_164 = arith.constant 1 : index
    %c113_165 = arith.constant 113 : index
    %322 = vector.load %arg9[%c1_164, %c113_165] : memref<8x416xf32, #tpu.memory_space<vmem>>, vector<1x256xf32>
    %c0_166 = arith.constant 0 : index
    %c9_167 = arith.constant 9 : index
    %323 = vector.load %arg4[%c0_166, %c9_167] : memref<4x36xf32, #tpu.memory_space<vmem>>, vector<4x1xf32>
    %324 = vector.broadcast %323 : vector<4x1xf32> to vector<4x256xf32>
    %325 = vector.broadcast %322 : vector<1x256xf32> to vector<4x256xf32>
    %326 = arith.mulf %324, %325 : vector<4x256xf32>
    %327 = arith.addf %321, %326 : vector<4x256xf32>
    %c2_168 = arith.constant 2 : index
    %c113_169 = arith.constant 113 : index
    %328 = vector.load %arg9[%c2_168, %c113_169] : memref<8x416xf32, #tpu.memory_space<vmem>>, vector<1x256xf32>
    %c0_170 = arith.constant 0 : index
    %c10_171 = arith.constant 10 : index
    %329 = vector.load %arg4[%c0_170, %c10_171] : memref<4x36xf32, #tpu.memory_space<vmem>>, vector<4x1xf32>
    %330 = vector.broadcast %329 : vector<4x1xf32> to vector<4x256xf32>
    %331 = vector.broadcast %328 : vector<1x256xf32> to vector<4x256xf32>
    %332 = arith.mulf %330, %331 : vector<4x256xf32>
    %333 = arith.addf %327, %332 : vector<4x256xf32>
    %c3_172 = arith.constant 3 : index
    %c113_173 = arith.constant 113 : index
    %334 = vector.load %arg9[%c3_172, %c113_173] : memref<8x416xf32, #tpu.memory_space<vmem>>, vector<1x256xf32>
    %c0_174 = arith.constant 0 : index
    %c11_175 = arith.constant 11 : index
    %335 = vector.load %arg4[%c0_174, %c11_175] : memref<4x36xf32, #tpu.memory_space<vmem>>, vector<4x1xf32>
    %336 = vector.broadcast %335 : vector<4x1xf32> to vector<4x256xf32>
    %337 = vector.broadcast %334 : vector<1x256xf32> to vector<4x256xf32>
    %338 = arith.mulf %336, %337 : vector<4x256xf32>
    %339 = arith.addf %333, %338 : vector<4x256xf32>
    %340 = vector.broadcast %5 : vector<1x256xf32> to vector<4x256xf32>
    %341 = arith.mulf %339, %340 : vector<4x256xf32>
    %342 = arith.addf %314, %341 : vector<4x256xf32>
    %cst_176 = arith.constant 0.000000e+00 : f32
    %343 = vector.broadcast %cst_176 : f32 to vector<4x256xf32>
    %c0_177 = arith.constant 0 : index
    %c127_178 = arith.constant 127 : index
    %344 = vector.load %arg9[%c0_177, %c127_178] : memref<8x416xf32, #tpu.memory_space<vmem>>, vector<1x256xf32>
    %c0_179 = arith.constant 0 : index
    %c12_180 = arith.constant 12 : index
    %345 = vector.load %arg4[%c0_179, %c12_180] : memref<4x36xf32, #tpu.memory_space<vmem>>, vector<4x1xf32>
    %346 = vector.broadcast %345 : vector<4x1xf32> to vector<4x256xf32>
    %347 = vector.broadcast %344 : vector<1x256xf32> to vector<4x256xf32>
    %348 = arith.mulf %346, %347 : vector<4x256xf32>
    %349 = arith.addf %343, %348 : vector<4x256xf32>
    %c1_181 = arith.constant 1 : index
    %c127_182 = arith.constant 127 : index
    %350 = vector.load %arg9[%c1_181, %c127_182] : memref<8x416xf32, #tpu.memory_space<vmem>>, vector<1x256xf32>
    %c0_183 = arith.constant 0 : index
    %c13_184 = arith.constant 13 : index
    %351 = vector.load %arg4[%c0_183, %c13_184] : memref<4x36xf32, #tpu.memory_space<vmem>>, vector<4x1xf32>
    %352 = vector.broadcast %351 : vector<4x1xf32> to vector<4x256xf32>
    %353 = vector.broadcast %350 : vector<1x256xf32> to vector<4x256xf32>
    %354 = arith.mulf %352, %353 : vector<4x256xf32>
    %355 = arith.addf %349, %354 : vector<4x256xf32>
    %c2_185 = arith.constant 2 : index
    %c127_186 = arith.constant 127 : index
    %356 = vector.load %arg9[%c2_185, %c127_186] : memref<8x416xf32, #tpu.memory_space<vmem>>, vector<1x256xf32>
    %c0_187 = arith.constant 0 : index
    %c14_188 = arith.constant 14 : index
    %357 = vector.load %arg4[%c0_187, %c14_188] : memref<4x36xf32, #tpu.memory_space<vmem>>, vector<4x1xf32>
    %358 = vector.broadcast %357 : vector<4x1xf32> to vector<4x256xf32>
    %359 = vector.broadcast %356 : vector<1x256xf32> to vector<4x256xf32>
    %360 = arith.mulf %358, %359 : vector<4x256xf32>
    %361 = arith.addf %355, %360 : vector<4x256xf32>
    %c3_189 = arith.constant 3 : index
    %c127_190 = arith.constant 127 : index
    %362 = vector.load %arg9[%c3_189, %c127_190] : memref<8x416xf32, #tpu.memory_space<vmem>>, vector<1x256xf32>
    %c0_191 = arith.constant 0 : index
    %c15_192 = arith.constant 15 : index
    %363 = vector.load %arg4[%c0_191, %c15_192] : memref<4x36xf32, #tpu.memory_space<vmem>>, vector<4x1xf32>
    %364 = vector.broadcast %363 : vector<4x1xf32> to vector<4x256xf32>
    %365 = vector.broadcast %362 : vector<1x256xf32> to vector<4x256xf32>
    %366 = arith.mulf %364, %365 : vector<4x256xf32>
    %367 = arith.addf %361, %366 : vector<4x256xf32>
    %368 = vector.broadcast %4 : vector<1x256xf32> to vector<4x256xf32>
    %369 = arith.mulf %367, %368 : vector<4x256xf32>
    %370 = arith.addf %342, %369 : vector<4x256xf32>
    %cst_193 = arith.constant 0.000000e+00 : f32
    %371 = vector.broadcast %cst_193 : f32 to vector<4x256xf32>
    %c0_194 = arith.constant 0 : index
    %c128_195 = arith.constant 128 : index
    %372 = vector.load %arg9[%c0_194, %c128_195] : memref<8x416xf32, #tpu.memory_space<vmem>>, vector<1x256xf32>
    %c0_196 = arith.constant 0 : index
    %c16_197 = arith.constant 16 : index
    %373 = vector.load %arg4[%c0_196, %c16_197] : memref<4x36xf32, #tpu.memory_space<vmem>>, vector<4x1xf32>
    %374 = vector.broadcast %373 : vector<4x1xf32> to vector<4x256xf32>
    %375 = vector.broadcast %372 : vector<1x256xf32> to vector<4x256xf32>
    %376 = arith.mulf %374, %375 : vector<4x256xf32>
    %377 = arith.addf %371, %376 : vector<4x256xf32>
    %c1_198 = arith.constant 1 : index
    %c128_199 = arith.constant 128 : index
    %378 = vector.load %arg9[%c1_198, %c128_199] : memref<8x416xf32, #tpu.memory_space<vmem>>, vector<1x256xf32>
    %c0_200 = arith.constant 0 : index
    %c17_201 = arith.constant 17 : index
    %379 = vector.load %arg4[%c0_200, %c17_201] : memref<4x36xf32, #tpu.memory_space<vmem>>, vector<4x1xf32>
    %380 = vector.broadcast %379 : vector<4x1xf32> to vector<4x256xf32>
    %381 = vector.broadcast %378 : vector<1x256xf32> to vector<4x256xf32>
    %382 = arith.mulf %380, %381 : vector<4x256xf32>
    %383 = arith.addf %377, %382 : vector<4x256xf32>
    %c2_202 = arith.constant 2 : index
    %c128_203 = arith.constant 128 : index
    %384 = vector.load %arg9[%c2_202, %c128_203] : memref<8x416xf32, #tpu.memory_space<vmem>>, vector<1x256xf32>
    %c0_204 = arith.constant 0 : index
    %c18_205 = arith.constant 18 : index
    %385 = vector.load %arg4[%c0_204, %c18_205] : memref<4x36xf32, #tpu.memory_space<vmem>>, vector<4x1xf32>
    %386 = vector.broadcast %385 : vector<4x1xf32> to vector<4x256xf32>
    %387 = vector.broadcast %384 : vector<1x256xf32> to vector<4x256xf32>
    %388 = arith.mulf %386, %387 : vector<4x256xf32>
    %389 = arith.addf %383, %388 : vector<4x256xf32>
    %c3_206 = arith.constant 3 : index
    %c128_207 = arith.constant 128 : index
    %390 = vector.load %arg9[%c3_206, %c128_207] : memref<8x416xf32, #tpu.memory_space<vmem>>, vector<1x256xf32>
    %c0_208 = arith.constant 0 : index
    %c19_209 = arith.constant 19 : index
    %391 = vector.load %arg4[%c0_208, %c19_209] : memref<4x36xf32, #tpu.memory_space<vmem>>, vector<4x1xf32>
    %392 = vector.broadcast %391 : vector<4x1xf32> to vector<4x256xf32>
    %393 = vector.broadcast %390 : vector<1x256xf32> to vector<4x256xf32>
    %394 = arith.mulf %392, %393 : vector<4x256xf32>
    %395 = arith.addf %389, %394 : vector<4x256xf32>
    %396 = arith.addf %370, %395 : vector<4x256xf32>
    %cst_210 = arith.constant 0.000000e+00 : f32
    %397 = vector.broadcast %cst_210 : f32 to vector<4x256xf32>
    %c0_211 = arith.constant 0 : index
    %c129_212 = arith.constant 129 : index
    %398 = vector.load %arg9[%c0_211, %c129_212] : memref<8x416xf32, #tpu.memory_space<vmem>>, vector<1x256xf32>
    %c0_213 = arith.constant 0 : index
    %c20_214 = arith.constant 20 : index
    %399 = vector.load %arg4[%c0_213, %c20_214] : memref<4x36xf32, #tpu.memory_space<vmem>>, vector<4x1xf32>
    %400 = vector.broadcast %399 : vector<4x1xf32> to vector<4x256xf32>
    %401 = vector.broadcast %398 : vector<1x256xf32> to vector<4x256xf32>
    %402 = arith.mulf %400, %401 : vector<4x256xf32>
    %403 = arith.addf %397, %402 : vector<4x256xf32>
    %c1_215 = arith.constant 1 : index
    %c129_216 = arith.constant 129 : index
    %404 = vector.load %arg9[%c1_215, %c129_216] : memref<8x416xf32, #tpu.memory_space<vmem>>, vector<1x256xf32>
    %c0_217 = arith.constant 0 : index
    %c21_218 = arith.constant 21 : index
    %405 = vector.load %arg4[%c0_217, %c21_218] : memref<4x36xf32, #tpu.memory_space<vmem>>, vector<4x1xf32>
    %406 = vector.broadcast %405 : vector<4x1xf32> to vector<4x256xf32>
    %407 = vector.broadcast %404 : vector<1x256xf32> to vector<4x256xf32>
    %408 = arith.mulf %406, %407 : vector<4x256xf32>
    %409 = arith.addf %403, %408 : vector<4x256xf32>
    %c2_219 = arith.constant 2 : index
    %c129_220 = arith.constant 129 : index
    %410 = vector.load %arg9[%c2_219, %c129_220] : memref<8x416xf32, #tpu.memory_space<vmem>>, vector<1x256xf32>
    %c0_221 = arith.constant 0 : index
    %c22_222 = arith.constant 22 : index
    %411 = vector.load %arg4[%c0_221, %c22_222] : memref<4x36xf32, #tpu.memory_space<vmem>>, vector<4x1xf32>
    %412 = vector.broadcast %411 : vector<4x1xf32> to vector<4x256xf32>
    %413 = vector.broadcast %410 : vector<1x256xf32> to vector<4x256xf32>
    %414 = arith.mulf %412, %413 : vector<4x256xf32>
    %415 = arith.addf %409, %414 : vector<4x256xf32>
    %c3_223 = arith.constant 3 : index
    %c129_224 = arith.constant 129 : index
    %416 = vector.load %arg9[%c3_223, %c129_224] : memref<8x416xf32, #tpu.memory_space<vmem>>, vector<1x256xf32>
    %c0_225 = arith.constant 0 : index
    %c23_226 = arith.constant 23 : index
    %417 = vector.load %arg4[%c0_225, %c23_226] : memref<4x36xf32, #tpu.memory_space<vmem>>, vector<4x1xf32>
    %418 = vector.broadcast %417 : vector<4x1xf32> to vector<4x256xf32>
    %419 = vector.broadcast %416 : vector<1x256xf32> to vector<4x256xf32>
    %420 = arith.mulf %418, %419 : vector<4x256xf32>
    %421 = arith.addf %415, %420 : vector<4x256xf32>
    %422 = vector.broadcast %5 : vector<1x256xf32> to vector<4x256xf32>
    %423 = arith.mulf %421, %422 : vector<4x256xf32>
    %424 = arith.addf %396, %423 : vector<4x256xf32>
    %cst_227 = arith.constant 0.000000e+00 : f32
    %425 = vector.broadcast %cst_227 : f32 to vector<4x256xf32>
    %c0_228 = arith.constant 0 : index
    %c143_229 = arith.constant 143 : index
    %426 = vector.load %arg9[%c0_228, %c143_229] : memref<8x416xf32, #tpu.memory_space<vmem>>, vector<1x256xf32>
    %c0_230 = arith.constant 0 : index
    %c24_231 = arith.constant 24 : index
    %427 = vector.load %arg4[%c0_230, %c24_231] : memref<4x36xf32, #tpu.memory_space<vmem>>, vector<4x1xf32>
    %428 = vector.broadcast %427 : vector<4x1xf32> to vector<4x256xf32>
    %429 = vector.broadcast %426 : vector<1x256xf32> to vector<4x256xf32>
    %430 = arith.mulf %428, %429 : vector<4x256xf32>
    %431 = arith.addf %425, %430 : vector<4x256xf32>
    %c1_232 = arith.constant 1 : index
    %c143_233 = arith.constant 143 : index
    %432 = vector.load %arg9[%c1_232, %c143_233] : memref<8x416xf32, #tpu.memory_space<vmem>>, vector<1x256xf32>
    %c0_234 = arith.constant 0 : index
    %c25_235 = arith.constant 25 : index
    %433 = vector.load %arg4[%c0_234, %c25_235] : memref<4x36xf32, #tpu.memory_space<vmem>>, vector<4x1xf32>
    %434 = vector.broadcast %433 : vector<4x1xf32> to vector<4x256xf32>
    %435 = vector.broadcast %432 : vector<1x256xf32> to vector<4x256xf32>
    %436 = arith.mulf %434, %435 : vector<4x256xf32>
    %437 = arith.addf %431, %436 : vector<4x256xf32>
    %c2_236 = arith.constant 2 : index
    %c143_237 = arith.constant 143 : index
    %438 = vector.load %arg9[%c2_236, %c143_237] : memref<8x416xf32, #tpu.memory_space<vmem>>, vector<1x256xf32>
    %c0_238 = arith.constant 0 : index
    %c26_239 = arith.constant 26 : index
    %439 = vector.load %arg4[%c0_238, %c26_239] : memref<4x36xf32, #tpu.memory_space<vmem>>, vector<4x1xf32>
    %440 = vector.broadcast %439 : vector<4x1xf32> to vector<4x256xf32>
    %441 = vector.broadcast %438 : vector<1x256xf32> to vector<4x256xf32>
    %442 = arith.mulf %440, %441 : vector<4x256xf32>
    %443 = arith.addf %437, %442 : vector<4x256xf32>
    %c3_240 = arith.constant 3 : index
    %c143_241 = arith.constant 143 : index
    %444 = vector.load %arg9[%c3_240, %c143_241] : memref<8x416xf32, #tpu.memory_space<vmem>>, vector<1x256xf32>
    %c0_242 = arith.constant 0 : index
    %c27_243 = arith.constant 27 : index
    %445 = vector.load %arg4[%c0_242, %c27_243] : memref<4x36xf32, #tpu.memory_space<vmem>>, vector<4x1xf32>
    %446 = vector.broadcast %445 : vector<4x1xf32> to vector<4x256xf32>
    %447 = vector.broadcast %444 : vector<1x256xf32> to vector<4x256xf32>
    %448 = arith.mulf %446, %447 : vector<4x256xf32>
    %449 = arith.addf %443, %448 : vector<4x256xf32>
    %450 = vector.broadcast %4 : vector<1x256xf32> to vector<4x256xf32>
    %451 = arith.mulf %449, %450 : vector<4x256xf32>
    %452 = arith.addf %424, %451 : vector<4x256xf32>
    %cst_244 = arith.constant 0.000000e+00 : f32
    %453 = vector.broadcast %cst_244 : f32 to vector<4x256xf32>
    %c0_245 = arith.constant 0 : index
    %c144_246 = arith.constant 144 : index
    %454 = vector.load %arg9[%c0_245, %c144_246] : memref<8x416xf32, #tpu.memory_space<vmem>>, vector<1x256xf32>
    %c0_247 = arith.constant 0 : index
    %c28_248 = arith.constant 28 : index
    %455 = vector.load %arg4[%c0_247, %c28_248] : memref<4x36xf32, #tpu.memory_space<vmem>>, vector<4x1xf32>
    %456 = vector.broadcast %455 : vector<4x1xf32> to vector<4x256xf32>
    %457 = vector.broadcast %454 : vector<1x256xf32> to vector<4x256xf32>
    %458 = arith.mulf %456, %457 : vector<4x256xf32>
    %459 = arith.addf %453, %458 : vector<4x256xf32>
    %c1_249 = arith.constant 1 : index
    %c144_250 = arith.constant 144 : index
    %460 = vector.load %arg9[%c1_249, %c144_250] : memref<8x416xf32, #tpu.memory_space<vmem>>, vector<1x256xf32>
    %c0_251 = arith.constant 0 : index
    %c29_252 = arith.constant 29 : index
    %461 = vector.load %arg4[%c0_251, %c29_252] : memref<4x36xf32, #tpu.memory_space<vmem>>, vector<4x1xf32>
    %462 = vector.broadcast %461 : vector<4x1xf32> to vector<4x256xf32>
    %463 = vector.broadcast %460 : vector<1x256xf32> to vector<4x256xf32>
    %464 = arith.mulf %462, %463 : vector<4x256xf32>
    %465 = arith.addf %459, %464 : vector<4x256xf32>
    %c2_253 = arith.constant 2 : index
    %c144_254 = arith.constant 144 : index
    %466 = vector.load %arg9[%c2_253, %c144_254] : memref<8x416xf32, #tpu.memory_space<vmem>>, vector<1x256xf32>
    %c0_255 = arith.constant 0 : index
    %c30_256 = arith.constant 30 : index
    %467 = vector.load %arg4[%c0_255, %c30_256] : memref<4x36xf32, #tpu.memory_space<vmem>>, vector<4x1xf32>
    %468 = vector.broadcast %467 : vector<4x1xf32> to vector<4x256xf32>
    %469 = vector.broadcast %466 : vector<1x256xf32> to vector<4x256xf32>
    %470 = arith.mulf %468, %469 : vector<4x256xf32>
    %471 = arith.addf %465, %470 : vector<4x256xf32>
    %c3_257 = arith.constant 3 : index
    %c144_258 = arith.constant 144 : index
    %472 = vector.load %arg9[%c3_257, %c144_258] : memref<8x416xf32, #tpu.memory_space<vmem>>, vector<1x256xf32>
    %c0_259 = arith.constant 0 : index
    %c31_260 = arith.constant 31 : index
    %473 = vector.load %arg4[%c0_259, %c31_260] : memref<4x36xf32, #tpu.memory_space<vmem>>, vector<4x1xf32>
    %474 = vector.broadcast %473 : vector<4x1xf32> to vector<4x256xf32>
    %475 = vector.broadcast %472 : vector<1x256xf32> to vector<4x256xf32>
    %476 = arith.mulf %474, %475 : vector<4x256xf32>
    %477 = arith.addf %471, %476 : vector<4x256xf32>
    %478 = arith.addf %452, %477 : vector<4x256xf32>
    %cst_261 = arith.constant 0.000000e+00 : f32
    %479 = vector.broadcast %cst_261 : f32 to vector<4x256xf32>
    %c0_262 = arith.constant 0 : index
    %c145_263 = arith.constant 145 : index
    %480 = vector.load %arg9[%c0_262, %c145_263] : memref<8x416xf32, #tpu.memory_space<vmem>>, vector<1x256xf32>
    %c0_264 = arith.constant 0 : index
    %c32_265 = arith.constant 32 : index
    %481 = vector.load %arg4[%c0_264, %c32_265] : memref<4x36xf32, #tpu.memory_space<vmem>>, vector<4x1xf32>
    %482 = vector.broadcast %481 : vector<4x1xf32> to vector<4x256xf32>
    %483 = vector.broadcast %480 : vector<1x256xf32> to vector<4x256xf32>
    %484 = arith.mulf %482, %483 : vector<4x256xf32>
    %485 = arith.addf %479, %484 : vector<4x256xf32>
    %c1_266 = arith.constant 1 : index
    %c145_267 = arith.constant 145 : index
    %486 = vector.load %arg9[%c1_266, %c145_267] : memref<8x416xf32, #tpu.memory_space<vmem>>, vector<1x256xf32>
    %c0_268 = arith.constant 0 : index
    %c33_269 = arith.constant 33 : index
    %487 = vector.load %arg4[%c0_268, %c33_269] : memref<4x36xf32, #tpu.memory_space<vmem>>, vector<4x1xf32>
    %488 = vector.broadcast %487 : vector<4x1xf32> to vector<4x256xf32>
    %489 = vector.broadcast %486 : vector<1x256xf32> to vector<4x256xf32>
    %490 = arith.mulf %488, %489 : vector<4x256xf32>
    %491 = arith.addf %485, %490 : vector<4x256xf32>
    %c2_270 = arith.constant 2 : index
    %c145_271 = arith.constant 145 : index
    %492 = vector.load %arg9[%c2_270, %c145_271] : memref<8x416xf32, #tpu.memory_space<vmem>>, vector<1x256xf32>
    %c0_272 = arith.constant 0 : index
    %c34_273 = arith.constant 34 : index
    %493 = vector.load %arg4[%c0_272, %c34_273] : memref<4x36xf32, #tpu.memory_space<vmem>>, vector<4x1xf32>
    %494 = vector.broadcast %493 : vector<4x1xf32> to vector<4x256xf32>
    %495 = vector.broadcast %492 : vector<1x256xf32> to vector<4x256xf32>
    %496 = arith.mulf %494, %495 : vector<4x256xf32>
    %497 = arith.addf %491, %496 : vector<4x256xf32>
    %c3_274 = arith.constant 3 : index
    %c145_275 = arith.constant 145 : index
    %498 = vector.load %arg9[%c3_274, %c145_275] : memref<8x416xf32, #tpu.memory_space<vmem>>, vector<1x256xf32>
    %c0_276 = arith.constant 0 : index
    %c35_277 = arith.constant 35 : index
    %499 = vector.load %arg4[%c0_276, %c35_277] : memref<4x36xf32, #tpu.memory_space<vmem>>, vector<4x1xf32>
    %500 = vector.broadcast %499 : vector<4x1xf32> to vector<4x256xf32>
    %501 = vector.broadcast %498 : vector<1x256xf32> to vector<4x256xf32>
    %502 = arith.mulf %500, %501 : vector<4x256xf32>
    %503 = arith.addf %497, %502 : vector<4x256xf32>
    %504 = vector.broadcast %5 : vector<1x256xf32> to vector<4x256xf32>
    %505 = arith.mulf %503, %504 : vector<4x256xf32>
    %506 = arith.addf %478, %505 : vector<4x256xf32>
    %c0_278 = arith.constant 0 : index
    %c0_279 = arith.constant 0 : index
    %507 = vector.load %arg1[%c0_278, %c0_279] : memref<8x256xf32, #tpu.memory_space<vmem>>, vector<4x256xf32>
    %508 = arith.addf %507, %506 : vector<4x256xf32>
    %cst_280 = arith.constant 0.000000e+00 : f32
    %509 = vector.broadcast %cst_280 : f32 to vector<4x256xf32>
    %510 = arith.maximumf %508, %509 : vector<4x256xf32>
    %c0_281 = arith.constant 0 : index
    %c0_282 = arith.constant 0 : index
    %511 = vector.load %arg8[%c0_281, %c0_282] : memref<8x256xf32, #tpu.memory_space<vmem>>, vector<4x256xf32>
    tpu.vector_store %arg8[%c0_281, %c0_282], %510 {strides = array<i32>} : memref<8x256xf32, #tpu.memory_space<vmem>>, vector<4x256xf32>,
    %c0_283 = arith.constant 0 : index
    %c0_284 = arith.constant 0 : index
    %512 = vector.load %arg3[%c0_283, %c0_284] : memref<4x1xf32, #tpu.memory_space<vmem>>, vector<4x1xf32>
    %513 = vector.shape_cast %512 : vector<4x1xf32> to vector<4x1xf32>
    %514 = vector.broadcast %513 : vector<4x1xf32> to vector<4x256xf32>
    %cst_285 = arith.constant 0.000000e+00 : f32
    %515 = vector.broadcast %cst_285 : f32 to vector<4x256xf32>
    %c4_286 = arith.constant 4 : index
    %c111_287 = arith.constant 111 : index
    %516 = vector.load %arg9[%c4_286, %c111_287] : memref<8x416xf32, #tpu.memory_space<vmem>>, vector<1x256xf32>
    %c0_288 = arith.constant 0 : index
    %c0_289 = arith.constant 0 : index
    %517 = vector.load %arg2[%c0_288, %c0_289] : memref<4x36xf32, #tpu.memory_space<vmem>>, vector<4x1xf32>
    %518 = vector.broadcast %517 : vector<4x1xf32> to vector<4x256xf32>
    %519 = vector.broadcast %516 : vector<1x256xf32> to vector<4x256xf32>
    %520 = arith.mulf %518, %519 : vector<4x256xf32>
    %521 = arith.addf %515, %520 : vector<4x256xf32>
    %c5_290 = arith.constant 5 : index
    %c111_291 = arith.constant 111 : index
    %522 = vector.load %arg9[%c5_290, %c111_291] : memref<8x416xf32, #tpu.memory_space<vmem>>, vector<1x256xf32>
    %c0_292 = arith.constant 0 : index
    %c1_293 = arith.constant 1 : index
    %523 = vector.load %arg2[%c0_292, %c1_293] : memref<4x36xf32, #tpu.memory_space<vmem>>, vector<4x1xf32>
    %524 = vector.broadcast %523 : vector<4x1xf32> to vector<4x256xf32>
    %525 = vector.broadcast %522 : vector<1x256xf32> to vector<4x256xf32>
    %526 = arith.mulf %524, %525 : vector<4x256xf32>
    %527 = arith.addf %521, %526 : vector<4x256xf32>
    %c6_294 = arith.constant 6 : index
    %c111_295 = arith.constant 111 : index
    %528 = vector.load %arg9[%c6_294, %c111_295] : memref<8x416xf32, #tpu.memory_space<vmem>>, vector<1x256xf32>
    %c0_296 = arith.constant 0 : index
    %c2_297 = arith.constant 2 : index
    %529 = vector.load %arg2[%c0_296, %c2_297] : memref<4x36xf32, #tpu.memory_space<vmem>>, vector<4x1xf32>
    %530 = vector.broadcast %529 : vector<4x1xf32> to vector<4x256xf32>
    %531 = vector.broadcast %528 : vector<1x256xf32> to vector<4x256xf32>
    %532 = arith.mulf %530, %531 : vector<4x256xf32>
    %533 = arith.addf %527, %532 : vector<4x256xf32>
    %c7_298 = arith.constant 7 : index
    %c111_299 = arith.constant 111 : index
    %534 = vector.load %arg9[%c7_298, %c111_299] : memref<8x416xf32, #tpu.memory_space<vmem>>, vector<1x256xf32>
    %c0_300 = arith.constant 0 : index
    %c3_301 = arith.constant 3 : index
    %535 = vector.load %arg2[%c0_300, %c3_301] : memref<4x36xf32, #tpu.memory_space<vmem>>, vector<4x1xf32>
    %536 = vector.broadcast %535 : vector<4x1xf32> to vector<4x256xf32>
    %537 = vector.broadcast %534 : vector<1x256xf32> to vector<4x256xf32>
    %538 = arith.mulf %536, %537 : vector<4x256xf32>
    %539 = arith.addf %533, %538 : vector<4x256xf32>
    %540 = vector.broadcast %4 : vector<1x256xf32> to vector<4x256xf32>
    %541 = arith.mulf %539, %540 : vector<4x256xf32>
    %542 = arith.addf %514, %541 : vector<4x256xf32>
    %cst_302 = arith.constant 0.000000e+00 : f32
    %543 = vector.broadcast %cst_302 : f32 to vector<4x256xf32>
    %c4_303 = arith.constant 4 : index
    %c112_304 = arith.constant 112 : index
    %544 = vector.load %arg9[%c4_303, %c112_304] : memref<8x416xf32, #tpu.memory_space<vmem>>, vector<1x256xf32>
    %c0_305 = arith.constant 0 : index
    %c4_306 = arith.constant 4 : index
    %545 = vector.load %arg2[%c0_305, %c4_306] : memref<4x36xf32, #tpu.memory_space<vmem>>, vector<4x1xf32>
    %546 = vector.broadcast %545 : vector<4x1xf32> to vector<4x256xf32>
    %547 = vector.broadcast %544 : vector<1x256xf32> to vector<4x256xf32>
    %548 = arith.mulf %546, %547 : vector<4x256xf32>
    %549 = arith.addf %543, %548 : vector<4x256xf32>
    %c5_307 = arith.constant 5 : index
    %c112_308 = arith.constant 112 : index
    %550 = vector.load %arg9[%c5_307, %c112_308] : memref<8x416xf32, #tpu.memory_space<vmem>>, vector<1x256xf32>
    %c0_309 = arith.constant 0 : index
    %c5_310 = arith.constant 5 : index
    %551 = vector.load %arg2[%c0_309, %c5_310] : memref<4x36xf32, #tpu.memory_space<vmem>>, vector<4x1xf32>
    %552 = vector.broadcast %551 : vector<4x1xf32> to vector<4x256xf32>
    %553 = vector.broadcast %550 : vector<1x256xf32> to vector<4x256xf32>
    %554 = arith.mulf %552, %553 : vector<4x256xf32>
    %555 = arith.addf %549, %554 : vector<4x256xf32>
    %c6_311 = arith.constant 6 : index
    %c112_312 = arith.constant 112 : index
    %556 = vector.load %arg9[%c6_311, %c112_312] : memref<8x416xf32, #tpu.memory_space<vmem>>, vector<1x256xf32>
    %c0_313 = arith.constant 0 : index
    %c6_314 = arith.constant 6 : index
    %557 = vector.load %arg2[%c0_313, %c6_314] : memref<4x36xf32, #tpu.memory_space<vmem>>, vector<4x1xf32>
    %558 = vector.broadcast %557 : vector<4x1xf32> to vector<4x256xf32>
    %559 = vector.broadcast %556 : vector<1x256xf32> to vector<4x256xf32>
    %560 = arith.mulf %558, %559 : vector<4x256xf32>
    %561 = arith.addf %555, %560 : vector<4x256xf32>
    %c7_315 = arith.constant 7 : index
    %c112_316 = arith.constant 112 : index
    %562 = vector.load %arg9[%c7_315, %c112_316] : memref<8x416xf32, #tpu.memory_space<vmem>>, vector<1x256xf32>
    %c0_317 = arith.constant 0 : index
    %c7_318 = arith.constant 7 : index
    %563 = vector.load %arg2[%c0_317, %c7_318] : memref<4x36xf32, #tpu.memory_space<vmem>>, vector<4x1xf32>
    %564 = vector.broadcast %563 : vector<4x1xf32> to vector<4x256xf32>
    %565 = vector.broadcast %562 : vector<1x256xf32> to vector<4x256xf32>
    %566 = arith.mulf %564, %565 : vector<4x256xf32>
    %567 = arith.addf %561, %566 : vector<4x256xf32>
    %568 = arith.addf %542, %567 : vector<4x256xf32>
    %cst_319 = arith.constant 0.000000e+00 : f32
    %569 = vector.broadcast %cst_319 : f32 to vector<4x256xf32>
    %c4_320 = arith.constant 4 : index
    %c113_321 = arith.constant 113 : index
    %570 = vector.load %arg9[%c4_320, %c113_321] : memref<8x416xf32, #tpu.memory_space<vmem>>, vector<1x256xf32>
    %c0_322 = arith.constant 0 : index
    %c8_323 = arith.constant 8 : index
    %571 = vector.load %arg2[%c0_322, %c8_323] : memref<4x36xf32, #tpu.memory_space<vmem>>, vector<4x1xf32>
    %572 = vector.broadcast %571 : vector<4x1xf32> to vector<4x256xf32>
    %573 = vector.broadcast %570 : vector<1x256xf32> to vector<4x256xf32>
    %574 = arith.mulf %572, %573 : vector<4x256xf32>
    %575 = arith.addf %569, %574 : vector<4x256xf32>
    %c5_324 = arith.constant 5 : index
    %c113_325 = arith.constant 113 : index
    %576 = vector.load %arg9[%c5_324, %c113_325] : memref<8x416xf32, #tpu.memory_space<vmem>>, vector<1x256xf32>
    %c0_326 = arith.constant 0 : index
    %c9_327 = arith.constant 9 : index
    %577 = vector.load %arg2[%c0_326, %c9_327] : memref<4x36xf32, #tpu.memory_space<vmem>>, vector<4x1xf32>
    %578 = vector.broadcast %577 : vector<4x1xf32> to vector<4x256xf32>
    %579 = vector.broadcast %576 : vector<1x256xf32> to vector<4x256xf32>
    %580 = arith.mulf %578, %579 : vector<4x256xf32>
    %581 = arith.addf %575, %580 : vector<4x256xf32>
    %c6_328 = arith.constant 6 : index
    %c113_329 = arith.constant 113 : index
    %582 = vector.load %arg9[%c6_328, %c113_329] : memref<8x416xf32, #tpu.memory_space<vmem>>, vector<1x256xf32>
    %c0_330 = arith.constant 0 : index
    %c10_331 = arith.constant 10 : index
    %583 = vector.load %arg2[%c0_330, %c10_331] : memref<4x36xf32, #tpu.memory_space<vmem>>, vector<4x1xf32>
    %584 = vector.broadcast %583 : vector<4x1xf32> to vector<4x256xf32>
    %585 = vector.broadcast %582 : vector<1x256xf32> to vector<4x256xf32>
    %586 = arith.mulf %584, %585 : vector<4x256xf32>
    %587 = arith.addf %581, %586 : vector<4x256xf32>
    %c7_332 = arith.constant 7 : index
    %c113_333 = arith.constant 113 : index
    %588 = vector.load %arg9[%c7_332, %c113_333] : memref<8x416xf32, #tpu.memory_space<vmem>>, vector<1x256xf32>
    %c0_334 = arith.constant 0 : index
    %c11_335 = arith.constant 11 : index
    %589 = vector.load %arg2[%c0_334, %c11_335] : memref<4x36xf32, #tpu.memory_space<vmem>>, vector<4x1xf32>
    %590 = vector.broadcast %589 : vector<4x1xf32> to vector<4x256xf32>
    %591 = vector.broadcast %588 : vector<1x256xf32> to vector<4x256xf32>
    %592 = arith.mulf %590, %591 : vector<4x256xf32>
    %593 = arith.addf %587, %592 : vector<4x256xf32>
    %594 = vector.broadcast %5 : vector<1x256xf32> to vector<4x256xf32>
    %595 = arith.mulf %593, %594 : vector<4x256xf32>
    %596 = arith.addf %568, %595 : vector<4x256xf32>
    %cst_336 = arith.constant 0.000000e+00 : f32
    %597 = vector.broadcast %cst_336 : f32 to vector<4x256xf32>
    %c4_337 = arith.constant 4 : index
    %c127_338 = arith.constant 127 : index
    %598 = vector.load %arg9[%c4_337, %c127_338] : memref<8x416xf32, #tpu.memory_space<vmem>>, vector<1x256xf32>
    %c0_339 = arith.constant 0 : index
    %c12_340 = arith.constant 12 : index
    %599 = vector.load %arg2[%c0_339, %c12_340] : memref<4x36xf32, #tpu.memory_space<vmem>>, vector<4x1xf32>
    %600 = vector.broadcast %599 : vector<4x1xf32> to vector<4x256xf32>
    %601 = vector.broadcast %598 : vector<1x256xf32> to vector<4x256xf32>
    %602 = arith.mulf %600, %601 : vector<4x256xf32>
    %603 = arith.addf %597, %602 : vector<4x256xf32>
    %c5_341 = arith.constant 5 : index
    %c127_342 = arith.constant 127 : index
    %604 = vector.load %arg9[%c5_341, %c127_342] : memref<8x416xf32, #tpu.memory_space<vmem>>, vector<1x256xf32>
    %c0_343 = arith.constant 0 : index
    %c13_344 = arith.constant 13 : index
    %605 = vector.load %arg2[%c0_343, %c13_344] : memref<4x36xf32, #tpu.memory_space<vmem>>, vector<4x1xf32>
    %606 = vector.broadcast %605 : vector<4x1xf32> to vector<4x256xf32>
    %607 = vector.broadcast %604 : vector<1x256xf32> to vector<4x256xf32>
    %608 = arith.mulf %606, %607 : vector<4x256xf32>
    %609 = arith.addf %603, %608 : vector<4x256xf32>
    %c6_345 = arith.constant 6 : index
    %c127_346 = arith.constant 127 : index
    %610 = vector.load %arg9[%c6_345, %c127_346] : memref<8x416xf32, #tpu.memory_space<vmem>>, vector<1x256xf32>
    %c0_347 = arith.constant 0 : index
    %c14_348 = arith.constant 14 : index
    %611 = vector.load %arg2[%c0_347, %c14_348] : memref<4x36xf32, #tpu.memory_space<vmem>>, vector<4x1xf32>
    %612 = vector.broadcast %611 : vector<4x1xf32> to vector<4x256xf32>
    %613 = vector.broadcast %610 : vector<1x256xf32> to vector<4x256xf32>
    %614 = arith.mulf %612, %613 : vector<4x256xf32>
    %615 = arith.addf %609, %614 : vector<4x256xf32>
    %c7_349 = arith.constant 7 : index
    %c127_350 = arith.constant 127 : index
    %616 = vector.load %arg9[%c7_349, %c127_350] : memref<8x416xf32, #tpu.memory_space<vmem>>, vector<1x256xf32>
    %c0_351 = arith.constant 0 : index
    %c15_352 = arith.constant 15 : index
    %617 = vector.load %arg2[%c0_351, %c15_352] : memref<4x36xf32, #tpu.memory_space<vmem>>, vector<4x1xf32>
    %618 = vector.broadcast %617 : vector<4x1xf32> to vector<4x256xf32>
    %619 = vector.broadcast %616 : vector<1x256xf32> to vector<4x256xf32>
    %620 = arith.mulf %618, %619 : vector<4x256xf32>
    %621 = arith.addf %615, %620 : vector<4x256xf32>
    %622 = vector.broadcast %4 : vector<1x256xf32> to vector<4x256xf32>
    %623 = arith.mulf %621, %622 : vector<4x256xf32>
    %624 = arith.addf %596, %623 : vector<4x256xf32>
    %cst_353 = arith.constant 0.000000e+00 : f32
    %625 = vector.broadcast %cst_353 : f32 to vector<4x256xf32>
    %c4_354 = arith.constant 4 : index
    %c128_355 = arith.constant 128 : index
    %626 = vector.load %arg9[%c4_354, %c128_355] : memref<8x416xf32, #tpu.memory_space<vmem>>, vector<1x256xf32>
    %c0_356 = arith.constant 0 : index
    %c16_357 = arith.constant 16 : index
    %627 = vector.load %arg2[%c0_356, %c16_357] : memref<4x36xf32, #tpu.memory_space<vmem>>, vector<4x1xf32>
    %628 = vector.broadcast %627 : vector<4x1xf32> to vector<4x256xf32>
    %629 = vector.broadcast %626 : vector<1x256xf32> to vector<4x256xf32>
    %630 = arith.mulf %628, %629 : vector<4x256xf32>
    %631 = arith.addf %625, %630 : vector<4x256xf32>
    %c5_358 = arith.constant 5 : index
    %c128_359 = arith.constant 128 : index
    %632 = vector.load %arg9[%c5_358, %c128_359] : memref<8x416xf32, #tpu.memory_space<vmem>>, vector<1x256xf32>
    %c0_360 = arith.constant 0 : index
    %c17_361 = arith.constant 17 : index
    %633 = vector.load %arg2[%c0_360, %c17_361] : memref<4x36xf32, #tpu.memory_space<vmem>>, vector<4x1xf32>
    %634 = vector.broadcast %633 : vector<4x1xf32> to vector<4x256xf32>
    %635 = vector.broadcast %632 : vector<1x256xf32> to vector<4x256xf32>
    %636 = arith.mulf %634, %635 : vector<4x256xf32>
    %637 = arith.addf %631, %636 : vector<4x256xf32>
    %c6_362 = arith.constant 6 : index
    %c128_363 = arith.constant 128 : index
    %638 = vector.load %arg9[%c6_362, %c128_363] : memref<8x416xf32, #tpu.memory_space<vmem>>, vector<1x256xf32>
    %c0_364 = arith.constant 0 : index
    %c18_365 = arith.constant 18 : index
    %639 = vector.load %arg2[%c0_364, %c18_365] : memref<4x36xf32, #tpu.memory_space<vmem>>, vector<4x1xf32>
    %640 = vector.broadcast %639 : vector<4x1xf32> to vector<4x256xf32>
    %641 = vector.broadcast %638 : vector<1x256xf32> to vector<4x256xf32>
    %642 = arith.mulf %640, %641 : vector<4x256xf32>
    %643 = arith.addf %637, %642 : vector<4x256xf32>
    %c7_366 = arith.constant 7 : index
    %c128_367 = arith.constant 128 : index
    %644 = vector.load %arg9[%c7_366, %c128_367] : memref<8x416xf32, #tpu.memory_space<vmem>>, vector<1x256xf32>
    %c0_368 = arith.constant 0 : index
    %c19_369 = arith.constant 19 : index
    %645 = vector.load %arg2[%c0_368, %c19_369] : memref<4x36xf32, #tpu.memory_space<vmem>>, vector<4x1xf32>
    %646 = vector.broadcast %645 : vector<4x1xf32> to vector<4x256xf32>
    %647 = vector.broadcast %644 : vector<1x256xf32> to vector<4x256xf32>
    %648 = arith.mulf %646, %647 : vector<4x256xf32>
    %649 = arith.addf %643, %648 : vector<4x256xf32>
    %650 = arith.addf %624, %649 : vector<4x256xf32>
    %cst_370 = arith.constant 0.000000e+00 : f32
    %651 = vector.broadcast %cst_370 : f32 to vector<4x256xf32>
    %c4_371 = arith.constant 4 : index
    %c129_372 = arith.constant 129 : index
    %652 = vector.load %arg9[%c4_371, %c129_372] : memref<8x416xf32, #tpu.memory_space<vmem>>, vector<1x256xf32>
    %c0_373 = arith.constant 0 : index
    %c20_374 = arith.constant 20 : index
    %653 = vector.load %arg2[%c0_373, %c20_374] : memref<4x36xf32, #tpu.memory_space<vmem>>, vector<4x1xf32>
    %654 = vector.broadcast %653 : vector<4x1xf32> to vector<4x256xf32>
    %655 = vector.broadcast %652 : vector<1x256xf32> to vector<4x256xf32>
    %656 = arith.mulf %654, %655 : vector<4x256xf32>
    %657 = arith.addf %651, %656 : vector<4x256xf32>
    %c5_375 = arith.constant 5 : index
    %c129_376 = arith.constant 129 : index
    %658 = vector.load %arg9[%c5_375, %c129_376] : memref<8x416xf32, #tpu.memory_space<vmem>>, vector<1x256xf32>
    %c0_377 = arith.constant 0 : index
    %c21_378 = arith.constant 21 : index
    %659 = vector.load %arg2[%c0_377, %c21_378] : memref<4x36xf32, #tpu.memory_space<vmem>>, vector<4x1xf32>
    %660 = vector.broadcast %659 : vector<4x1xf32> to vector<4x256xf32>
    %661 = vector.broadcast %658 : vector<1x256xf32> to vector<4x256xf32>
    %662 = arith.mulf %660, %661 : vector<4x256xf32>
    %663 = arith.addf %657, %662 : vector<4x256xf32>
    %c6_379 = arith.constant 6 : index
    %c129_380 = arith.constant 129 : index
    %664 = vector.load %arg9[%c6_379, %c129_380] : memref<8x416xf32, #tpu.memory_space<vmem>>, vector<1x256xf32>
    %c0_381 = arith.constant 0 : index
    %c22_382 = arith.constant 22 : index
    %665 = vector.load %arg2[%c0_381, %c22_382] : memref<4x36xf32, #tpu.memory_space<vmem>>, vector<4x1xf32>
    %666 = vector.broadcast %665 : vector<4x1xf32> to vector<4x256xf32>
    %667 = vector.broadcast %664 : vector<1x256xf32> to vector<4x256xf32>
    %668 = arith.mulf %666, %667 : vector<4x256xf32>
    %669 = arith.addf %663, %668 : vector<4x256xf32>
    %c7_383 = arith.constant 7 : index
    %c129_384 = arith.constant 129 : index
    %670 = vector.load %arg9[%c7_383, %c129_384] : memref<8x416xf32, #tpu.memory_space<vmem>>, vector<1x256xf32>
    %c0_385 = arith.constant 0 : index
    %c23_386 = arith.constant 23 : index
    %671 = vector.load %arg2[%c0_385, %c23_386] : memref<4x36xf32, #tpu.memory_space<vmem>>, vector<4x1xf32>
    %672 = vector.broadcast %671 : vector<4x1xf32> to vector<4x256xf32>
    %673 = vector.broadcast %670 : vector<1x256xf32> to vector<4x256xf32>
    %674 = arith.mulf %672, %673 : vector<4x256xf32>
    %675 = arith.addf %669, %674 : vector<4x256xf32>
    %676 = vector.broadcast %5 : vector<1x256xf32> to vector<4x256xf32>
    %677 = arith.mulf %675, %676 : vector<4x256xf32>
    %678 = arith.addf %650, %677 : vector<4x256xf32>
    %cst_387 = arith.constant 0.000000e+00 : f32
    %679 = vector.broadcast %cst_387 : f32 to vector<4x256xf32>
    %c4_388 = arith.constant 4 : index
    %c143_389 = arith.constant 143 : index
    %680 = vector.load %arg9[%c4_388, %c143_389] : memref<8x416xf32, #tpu.memory_space<vmem>>, vector<1x256xf32>
    %c0_390 = arith.constant 0 : index
    %c24_391 = arith.constant 24 : index
    %681 = vector.load %arg2[%c0_390, %c24_391] : memref<4x36xf32, #tpu.memory_space<vmem>>, vector<4x1xf32>
    %682 = vector.broadcast %681 : vector<4x1xf32> to vector<4x256xf32>
    %683 = vector.broadcast %680 : vector<1x256xf32> to vector<4x256xf32>
    %684 = arith.mulf %682, %683 : vector<4x256xf32>
    %685 = arith.addf %679, %684 : vector<4x256xf32>
    %c5_392 = arith.constant 5 : index
    %c143_393 = arith.constant 143 : index
    %686 = vector.load %arg9[%c5_392, %c143_393] : memref<8x416xf32, #tpu.memory_space<vmem>>, vector<1x256xf32>
    %c0_394 = arith.constant 0 : index
    %c25_395 = arith.constant 25 : index
    %687 = vector.load %arg2[%c0_394, %c25_395] : memref<4x36xf32, #tpu.memory_space<vmem>>, vector<4x1xf32>
    %688 = vector.broadcast %687 : vector<4x1xf32> to vector<4x256xf32>
    %689 = vector.broadcast %686 : vector<1x256xf32> to vector<4x256xf32>
    %690 = arith.mulf %688, %689 : vector<4x256xf32>
    %691 = arith.addf %685, %690 : vector<4x256xf32>
    %c6_396 = arith.constant 6 : index
    %c143_397 = arith.constant 143 : index
    %692 = vector.load %arg9[%c6_396, %c143_397] : memref<8x416xf32, #tpu.memory_space<vmem>>, vector<1x256xf32>
    %c0_398 = arith.constant 0 : index
    %c26_399 = arith.constant 26 : index
    %693 = vector.load %arg2[%c0_398, %c26_399] : memref<4x36xf32, #tpu.memory_space<vmem>>, vector<4x1xf32>
    %694 = vector.broadcast %693 : vector<4x1xf32> to vector<4x256xf32>
    %695 = vector.broadcast %692 : vector<1x256xf32> to vector<4x256xf32>
    %696 = arith.mulf %694, %695 : vector<4x256xf32>
    %697 = arith.addf %691, %696 : vector<4x256xf32>
    %c7_400 = arith.constant 7 : index
    %c143_401 = arith.constant 143 : index
    %698 = vector.load %arg9[%c7_400, %c143_401] : memref<8x416xf32, #tpu.memory_space<vmem>>, vector<1x256xf32>
    %c0_402 = arith.constant 0 : index
    %c27_403 = arith.constant 27 : index
    %699 = vector.load %arg2[%c0_402, %c27_403] : memref<4x36xf32, #tpu.memory_space<vmem>>, vector<4x1xf32>
    %700 = vector.broadcast %699 : vector<4x1xf32> to vector<4x256xf32>
    %701 = vector.broadcast %698 : vector<1x256xf32> to vector<4x256xf32>
    %702 = arith.mulf %700, %701 : vector<4x256xf32>
    %703 = arith.addf %697, %702 : vector<4x256xf32>
    %704 = vector.broadcast %4 : vector<1x256xf32> to vector<4x256xf32>
    %705 = arith.mulf %703, %704 : vector<4x256xf32>
    %706 = arith.addf %678, %705 : vector<4x256xf32>
    %cst_404 = arith.constant 0.000000e+00 : f32
    %707 = vector.broadcast %cst_404 : f32 to vector<4x256xf32>
    %c4_405 = arith.constant 4 : index
    %c144_406 = arith.constant 144 : index
    %708 = vector.load %arg9[%c4_405, %c144_406] : memref<8x416xf32, #tpu.memory_space<vmem>>, vector<1x256xf32>
    %c0_407 = arith.constant 0 : index
    %c28_408 = arith.constant 28 : index
    %709 = vector.load %arg2[%c0_407, %c28_408] : memref<4x36xf32, #tpu.memory_space<vmem>>, vector<4x1xf32>
    %710 = vector.broadcast %709 : vector<4x1xf32> to vector<4x256xf32>
    %711 = vector.broadcast %708 : vector<1x256xf32> to vector<4x256xf32>
    %712 = arith.mulf %710, %711 : vector<4x256xf32>
    %713 = arith.addf %707, %712 : vector<4x256xf32>
    %c5_409 = arith.constant 5 : index
    %c144_410 = arith.constant 144 : index
    %714 = vector.load %arg9[%c5_409, %c144_410] : memref<8x416xf32, #tpu.memory_space<vmem>>, vector<1x256xf32>
    %c0_411 = arith.constant 0 : index
    %c29_412 = arith.constant 29 : index
    %715 = vector.load %arg2[%c0_411, %c29_412] : memref<4x36xf32, #tpu.memory_space<vmem>>, vector<4x1xf32>
    %716 = vector.broadcast %715 : vector<4x1xf32> to vector<4x256xf32>
    %717 = vector.broadcast %714 : vector<1x256xf32> to vector<4x256xf32>
    %718 = arith.mulf %716, %717 : vector<4x256xf32>
    %719 = arith.addf %713, %718 : vector<4x256xf32>
    %c6_413 = arith.constant 6 : index
    %c144_414 = arith.constant 144 : index
    %720 = vector.load %arg9[%c6_413, %c144_414] : memref<8x416xf32, #tpu.memory_space<vmem>>, vector<1x256xf32>
    %c0_415 = arith.constant 0 : index
    %c30_416 = arith.constant 30 : index
    %721 = vector.load %arg2[%c0_415, %c30_416] : memref<4x36xf32, #tpu.memory_space<vmem>>, vector<4x1xf32>
    %722 = vector.broadcast %721 : vector<4x1xf32> to vector<4x256xf32>
    %723 = vector.broadcast %720 : vector<1x256xf32> to vector<4x256xf32>
    %724 = arith.mulf %722, %723 : vector<4x256xf32>
    %725 = arith.addf %719, %724 : vector<4x256xf32>
    %c7_417 = arith.constant 7 : index
    %c144_418 = arith.constant 144 : index
    %726 = vector.load %arg9[%c7_417, %c144_418] : memref<8x416xf32, #tpu.memory_space<vmem>>, vector<1x256xf32>
    %c0_419 = arith.constant 0 : index
    %c31_420 = arith.constant 31 : index
    %727 = vector.load %arg2[%c0_419, %c31_420] : memref<4x36xf32, #tpu.memory_space<vmem>>, vector<4x1xf32>
    %728 = vector.broadcast %727 : vector<4x1xf32> to vector<4x256xf32>
    %729 = vector.broadcast %726 : vector<1x256xf32> to vector<4x256xf32>
    %730 = arith.mulf %728, %729 : vector<4x256xf32>
    %731 = arith.addf %725, %730 : vector<4x256xf32>
    %732 = arith.addf %706, %731 : vector<4x256xf32>
    %cst_421 = arith.constant 0.000000e+00 : f32
    %733 = vector.broadcast %cst_421 : f32 to vector<4x256xf32>
    %c4_422 = arith.constant 4 : index
    %c145_423 = arith.constant 145 : index
    %734 = vector.load %arg9[%c4_422, %c145_423] : memref<8x416xf32, #tpu.memory_space<vmem>>, vector<1x256xf32>
    %c0_424 = arith.constant 0 : index
    %c32_425 = arith.constant 32 : index
    %735 = vector.load %arg2[%c0_424, %c32_425] : memref<4x36xf32, #tpu.memory_space<vmem>>, vector<4x1xf32>
    %736 = vector.broadcast %735 : vector<4x1xf32> to vector<4x256xf32>
    %737 = vector.broadcast %734 : vector<1x256xf32> to vector<4x256xf32>
    %738 = arith.mulf %736, %737 : vector<4x256xf32>
    %739 = arith.addf %733, %738 : vector<4x256xf32>
    %c5_426 = arith.constant 5 : index
    %c145_427 = arith.constant 145 : index
    %740 = vector.load %arg9[%c5_426, %c145_427] : memref<8x416xf32, #tpu.memory_space<vmem>>, vector<1x256xf32>
    %c0_428 = arith.constant 0 : index
    %c33_429 = arith.constant 33 : index
    %741 = vector.load %arg2[%c0_428, %c33_429] : memref<4x36xf32, #tpu.memory_space<vmem>>, vector<4x1xf32>
    %742 = vector.broadcast %741 : vector<4x1xf32> to vector<4x256xf32>
    %743 = vector.broadcast %740 : vector<1x256xf32> to vector<4x256xf32>
    %744 = arith.mulf %742, %743 : vector<4x256xf32>
    %745 = arith.addf %739, %744 : vector<4x256xf32>
    %c6_430 = arith.constant 6 : index
    %c145_431 = arith.constant 145 : index
    %746 = vector.load %arg9[%c6_430, %c145_431] : memref<8x416xf32, #tpu.memory_space<vmem>>, vector<1x256xf32>
    %c0_432 = arith.constant 0 : index
    %c34_433 = arith.constant 34 : index
    %747 = vector.load %arg2[%c0_432, %c34_433] : memref<4x36xf32, #tpu.memory_space<vmem>>, vector<4x1xf32>
    %748 = vector.broadcast %747 : vector<4x1xf32> to vector<4x256xf32>
    %749 = vector.broadcast %746 : vector<1x256xf32> to vector<4x256xf32>
    %750 = arith.mulf %748, %749 : vector<4x256xf32>
    %751 = arith.addf %745, %750 : vector<4x256xf32>
    %c7_434 = arith.constant 7 : index
    %c145_435 = arith.constant 145 : index
    %752 = vector.load %arg9[%c7_434, %c145_435] : memref<8x416xf32, #tpu.memory_space<vmem>>, vector<1x256xf32>
    %c0_436 = arith.constant 0 : index
    %c35_437 = arith.constant 35 : index
    %753 = vector.load %arg2[%c0_436, %c35_437] : memref<4x36xf32, #tpu.memory_space<vmem>>, vector<4x1xf32>
    %754 = vector.broadcast %753 : vector<4x1xf32> to vector<4x256xf32>
    %755 = vector.broadcast %752 : vector<1x256xf32> to vector<4x256xf32>
    %756 = arith.mulf %754, %755 : vector<4x256xf32>
    %757 = arith.addf %751, %756 : vector<4x256xf32>
    %758 = vector.broadcast %5 : vector<1x256xf32> to vector<4x256xf32>
    %759 = arith.mulf %757, %758 : vector<4x256xf32>
    %760 = arith.addf %732, %759 : vector<4x256xf32>
    %cst_438 = arith.constant 0.000000e+00 : f32
    %761 = vector.broadcast %cst_438 : f32 to vector<4x256xf32>
    %762 = arith.maximumf %760, %761 : vector<4x256xf32>
    %c4_439 = arith.constant 4 : index
    %c128_440 = arith.constant 128 : index
    %763 = vector.load %arg9[%c4_439, %c128_440] : memref<8x416xf32, #tpu.memory_space<vmem>>, vector<4x256xf32>
    tpu.vector_store %arg9[%c4_439, %c128_440], %762 {strides = array<i32>} : memref<8x416xf32, #tpu.memory_space<vmem>>, vector<4x256xf32>,
    %c0_441 = arith.constant 0 : index
    %c0_442 = arith.constant 0 : index
    %764 = vector.load %arg5[%c0_441, %c0_442] : memref<4x1xf32, #tpu.memory_space<vmem>>, vector<4x1xf32>
    %765 = vector.shape_cast %764 : vector<4x1xf32> to vector<4x1xf32>
    %766 = vector.broadcast %765 : vector<4x1xf32> to vector<4x256xf32>
    %cst_443 = arith.constant 0.000000e+00 : f32
    %767 = vector.broadcast %cst_443 : f32 to vector<4x256xf32>
    %c4_444 = arith.constant 4 : index
    %c111_445 = arith.constant 111 : index
    %768 = vector.load %arg9[%c4_444, %c111_445] : memref<8x416xf32, #tpu.memory_space<vmem>>, vector<1x256xf32>
    %c0_446 = arith.constant 0 : index
    %c0_447 = arith.constant 0 : index
    %769 = vector.load %arg4[%c0_446, %c0_447] : memref<4x36xf32, #tpu.memory_space<vmem>>, vector<4x1xf32>
    %770 = vector.broadcast %769 : vector<4x1xf32> to vector<4x256xf32>
    %771 = vector.broadcast %768 : vector<1x256xf32> to vector<4x256xf32>
    %772 = arith.mulf %770, %771 : vector<4x256xf32>
    %773 = arith.addf %767, %772 : vector<4x256xf32>
    %c5_448 = arith.constant 5 : index
    %c111_449 = arith.constant 111 : index
    %774 = vector.load %arg9[%c5_448, %c111_449] : memref<8x416xf32, #tpu.memory_space<vmem>>, vector<1x256xf32>
    %c0_450 = arith.constant 0 : index
    %c1_451 = arith.constant 1 : index
    %775 = vector.load %arg4[%c0_450, %c1_451] : memref<4x36xf32, #tpu.memory_space<vmem>>, vector<4x1xf32>
    %776 = vector.broadcast %775 : vector<4x1xf32> to vector<4x256xf32>
    %777 = vector.broadcast %774 : vector<1x256xf32> to vector<4x256xf32>
    %778 = arith.mulf %776, %777 : vector<4x256xf32>
    %779 = arith.addf %773, %778 : vector<4x256xf32>
    %c6_452 = arith.constant 6 : index
    %c111_453 = arith.constant 111 : index
    %780 = vector.load %arg9[%c6_452, %c111_453] : memref<8x416xf32, #tpu.memory_space<vmem>>, vector<1x256xf32>
    %c0_454 = arith.constant 0 : index
    %c2_455 = arith.constant 2 : index
    %781 = vector.load %arg4[%c0_454, %c2_455] : memref<4x36xf32, #tpu.memory_space<vmem>>, vector<4x1xf32>
    %782 = vector.broadcast %781 : vector<4x1xf32> to vector<4x256xf32>
    %783 = vector.broadcast %780 : vector<1x256xf32> to vector<4x256xf32>
    %784 = arith.mulf %782, %783 : vector<4x256xf32>
    %785 = arith.addf %779, %784 : vector<4x256xf32>
    %c7_456 = arith.constant 7 : index
    %c111_457 = arith.constant 111 : index
    %786 = vector.load %arg9[%c7_456, %c111_457] : memref<8x416xf32, #tpu.memory_space<vmem>>, vector<1x256xf32>
    %c0_458 = arith.constant 0 : index
    %c3_459 = arith.constant 3 : index
    %787 = vector.load %arg4[%c0_458, %c3_459] : memref<4x36xf32, #tpu.memory_space<vmem>>, vector<4x1xf32>
    %788 = vector.broadcast %787 : vector<4x1xf32> to vector<4x256xf32>
    %789 = vector.broadcast %786 : vector<1x256xf32> to vector<4x256xf32>
    %790 = arith.mulf %788, %789 : vector<4x256xf32>
    %791 = arith.addf %785, %790 : vector<4x256xf32>
    %792 = vector.broadcast %4 : vector<1x256xf32> to vector<4x256xf32>
    %793 = arith.mulf %791, %792 : vector<4x256xf32>
    %794 = arith.addf %766, %793 : vector<4x256xf32>
    %cst_460 = arith.constant 0.000000e+00 : f32
    %795 = vector.broadcast %cst_460 : f32 to vector<4x256xf32>
    %c4_461 = arith.constant 4 : index
    %c112_462 = arith.constant 112 : index
    %796 = vector.load %arg9[%c4_461, %c112_462] : memref<8x416xf32, #tpu.memory_space<vmem>>, vector<1x256xf32>
    %c0_463 = arith.constant 0 : index
    %c4_464 = arith.constant 4 : index
    %797 = vector.load %arg4[%c0_463, %c4_464] : memref<4x36xf32, #tpu.memory_space<vmem>>, vector<4x1xf32>
    %798 = vector.broadcast %797 : vector<4x1xf32> to vector<4x256xf32>
    %799 = vector.broadcast %796 : vector<1x256xf32> to vector<4x256xf32>
    %800 = arith.mulf %798, %799 : vector<4x256xf32>
    %801 = arith.addf %795, %800 : vector<4x256xf32>
    %c5_465 = arith.constant 5 : index
    %c112_466 = arith.constant 112 : index
    %802 = vector.load %arg9[%c5_465, %c112_466] : memref<8x416xf32, #tpu.memory_space<vmem>>, vector<1x256xf32>
    %c0_467 = arith.constant 0 : index
    %c5_468 = arith.constant 5 : index
    %803 = vector.load %arg4[%c0_467, %c5_468] : memref<4x36xf32, #tpu.memory_space<vmem>>, vector<4x1xf32>
    %804 = vector.broadcast %803 : vector<4x1xf32> to vector<4x256xf32>
    %805 = vector.broadcast %802 : vector<1x256xf32> to vector<4x256xf32>
    %806 = arith.mulf %804, %805 : vector<4x256xf32>
    %807 = arith.addf %801, %806 : vector<4x256xf32>
    %c6_469 = arith.constant 6 : index
    %c112_470 = arith.constant 112 : index
    %808 = vector.load %arg9[%c6_469, %c112_470] : memref<8x416xf32, #tpu.memory_space<vmem>>, vector<1x256xf32>
    %c0_471 = arith.constant 0 : index
    %c6_472 = arith.constant 6 : index
    %809 = vector.load %arg4[%c0_471, %c6_472] : memref<4x36xf32, #tpu.memory_space<vmem>>, vector<4x1xf32>
    %810 = vector.broadcast %809 : vector<4x1xf32> to vector<4x256xf32>
    %811 = vector.broadcast %808 : vector<1x256xf32> to vector<4x256xf32>
    %812 = arith.mulf %810, %811 : vector<4x256xf32>
    %813 = arith.addf %807, %812 : vector<4x256xf32>
    %c7_473 = arith.constant 7 : index
    %c112_474 = arith.constant 112 : index
    %814 = vector.load %arg9[%c7_473, %c112_474] : memref<8x416xf32, #tpu.memory_space<vmem>>, vector<1x256xf32>
    %c0_475 = arith.constant 0 : index
    %c7_476 = arith.constant 7 : index
    %815 = vector.load %arg4[%c0_475, %c7_476] : memref<4x36xf32, #tpu.memory_space<vmem>>, vector<4x1xf32>
    %816 = vector.broadcast %815 : vector<4x1xf32> to vector<4x256xf32>
    %817 = vector.broadcast %814 : vector<1x256xf32> to vector<4x256xf32>
    %818 = arith.mulf %816, %817 : vector<4x256xf32>
    %819 = arith.addf %813, %818 : vector<4x256xf32>
    %820 = arith.addf %794, %819 : vector<4x256xf32>
    %cst_477 = arith.constant 0.000000e+00 : f32
    %821 = vector.broadcast %cst_477 : f32 to vector<4x256xf32>
    %c4_478 = arith.constant 4 : index
    %c113_479 = arith.constant 113 : index
    %822 = vector.load %arg9[%c4_478, %c113_479] : memref<8x416xf32, #tpu.memory_space<vmem>>, vector<1x256xf32>
    %c0_480 = arith.constant 0 : index
    %c8_481 = arith.constant 8 : index
    %823 = vector.load %arg4[%c0_480, %c8_481] : memref<4x36xf32, #tpu.memory_space<vmem>>, vector<4x1xf32>
    %824 = vector.broadcast %823 : vector<4x1xf32> to vector<4x256xf32>
    %825 = vector.broadcast %822 : vector<1x256xf32> to vector<4x256xf32>
    %826 = arith.mulf %824, %825 : vector<4x256xf32>
    %827 = arith.addf %821, %826 : vector<4x256xf32>
    %c5_482 = arith.constant 5 : index
    %c113_483 = arith.constant 113 : index
    %828 = vector.load %arg9[%c5_482, %c113_483] : memref<8x416xf32, #tpu.memory_space<vmem>>, vector<1x256xf32>
    %c0_484 = arith.constant 0 : index
    %c9_485 = arith.constant 9 : index
    %829 = vector.load %arg4[%c0_484, %c9_485] : memref<4x36xf32, #tpu.memory_space<vmem>>, vector<4x1xf32>
    %830 = vector.broadcast %829 : vector<4x1xf32> to vector<4x256xf32>
    %831 = vector.broadcast %828 : vector<1x256xf32> to vector<4x256xf32>
    %832 = arith.mulf %830, %831 : vector<4x256xf32>
    %833 = arith.addf %827, %832 : vector<4x256xf32>
    %c6_486 = arith.constant 6 : index
    %c113_487 = arith.constant 113 : index
    %834 = vector.load %arg9[%c6_486, %c113_487] : memref<8x416xf32, #tpu.memory_space<vmem>>, vector<1x256xf32>
    %c0_488 = arith.constant 0 : index
    %c10_489 = arith.constant 10 : index
    %835 = vector.load %arg4[%c0_488, %c10_489] : memref<4x36xf32, #tpu.memory_space<vmem>>, vector<4x1xf32>
    %836 = vector.broadcast %835 : vector<4x1xf32> to vector<4x256xf32>
    %837 = vector.broadcast %834 : vector<1x256xf32> to vector<4x256xf32>
    %838 = arith.mulf %836, %837 : vector<4x256xf32>
    %839 = arith.addf %833, %838 : vector<4x256xf32>
    %c7_490 = arith.constant 7 : index
    %c113_491 = arith.constant 113 : index
    %840 = vector.load %arg9[%c7_490, %c113_491] : memref<8x416xf32, #tpu.memory_space<vmem>>, vector<1x256xf32>
    %c0_492 = arith.constant 0 : index
    %c11_493 = arith.constant 11 : index
    %841 = vector.load %arg4[%c0_492, %c11_493] : memref<4x36xf32, #tpu.memory_space<vmem>>, vector<4x1xf32>
    %842 = vector.broadcast %841 : vector<4x1xf32> to vector<4x256xf32>
    %843 = vector.broadcast %840 : vector<1x256xf32> to vector<4x256xf32>
    %844 = arith.mulf %842, %843 : vector<4x256xf32>
    %845 = arith.addf %839, %844 : vector<4x256xf32>
    %846 = vector.broadcast %5 : vector<1x256xf32> to vector<4x256xf32>
    %847 = arith.mulf %845, %846 : vector<4x256xf32>
    %848 = arith.addf %820, %847 : vector<4x256xf32>
    %cst_494 = arith.constant 0.000000e+00 : f32
    %849 = vector.broadcast %cst_494 : f32 to vector<4x256xf32>
    %c4_495 = arith.constant 4 : index
    %c127_496 = arith.constant 127 : index
    %850 = vector.load %arg9[%c4_495, %c127_496] : memref<8x416xf32, #tpu.memory_space<vmem>>, vector<1x256xf32>
    %c0_497 = arith.constant 0 : index
    %c12_498 = arith.constant 12 : index
    %851 = vector.load %arg4[%c0_497, %c12_498] : memref<4x36xf32, #tpu.memory_space<vmem>>, vector<4x1xf32>
    %852 = vector.broadcast %851 : vector<4x1xf32> to vector<4x256xf32>
    %853 = vector.broadcast %850 : vector<1x256xf32> to vector<4x256xf32>
    %854 = arith.mulf %852, %853 : vector<4x256xf32>
    %855 = arith.addf %849, %854 : vector<4x256xf32>
    %c5_499 = arith.constant 5 : index
    %c127_500 = arith.constant 127 : index
    %856 = vector.load %arg9[%c5_499, %c127_500] : memref<8x416xf32, #tpu.memory_space<vmem>>, vector<1x256xf32>
    %c0_501 = arith.constant 0 : index
    %c13_502 = arith.constant 13 : index
    %857 = vector.load %arg4[%c0_501, %c13_502] : memref<4x36xf32, #tpu.memory_space<vmem>>, vector<4x1xf32>
    %858 = vector.broadcast %857 : vector<4x1xf32> to vector<4x256xf32>
    %859 = vector.broadcast %856 : vector<1x256xf32> to vector<4x256xf32>
    %860 = arith.mulf %858, %859 : vector<4x256xf32>
    %861 = arith.addf %855, %860 : vector<4x256xf32>
    %c6_503 = arith.constant 6 : index
    %c127_504 = arith.constant 127 : index
    %862 = vector.load %arg9[%c6_503, %c127_504] : memref<8x416xf32, #tpu.memory_space<vmem>>, vector<1x256xf32>
    %c0_505 = arith.constant 0 : index
    %c14_506 = arith.constant 14 : index
    %863 = vector.load %arg4[%c0_505, %c14_506] : memref<4x36xf32, #tpu.memory_space<vmem>>, vector<4x1xf32>
    %864 = vector.broadcast %863 : vector<4x1xf32> to vector<4x256xf32>
    %865 = vector.broadcast %862 : vector<1x256xf32> to vector<4x256xf32>
    %866 = arith.mulf %864, %865 : vector<4x256xf32>
    %867 = arith.addf %861, %866 : vector<4x256xf32>
    %c7_507 = arith.constant 7 : index
    %c127_508 = arith.constant 127 : index
    %868 = vector.load %arg9[%c7_507, %c127_508] : memref<8x416xf32, #tpu.memory_space<vmem>>, vector<1x256xf32>
    %c0_509 = arith.constant 0 : index
    %c15_510 = arith.constant 15 : index
    %869 = vector.load %arg4[%c0_509, %c15_510] : memref<4x36xf32, #tpu.memory_space<vmem>>, vector<4x1xf32>
    %870 = vector.broadcast %869 : vector<4x1xf32> to vector<4x256xf32>
    %871 = vector.broadcast %868 : vector<1x256xf32> to vector<4x256xf32>
    %872 = arith.mulf %870, %871 : vector<4x256xf32>
    %873 = arith.addf %867, %872 : vector<4x256xf32>
    %874 = vector.broadcast %4 : vector<1x256xf32> to vector<4x256xf32>
    %875 = arith.mulf %873, %874 : vector<4x256xf32>
    %876 = arith.addf %848, %875 : vector<4x256xf32>
    %cst_511 = arith.constant 0.000000e+00 : f32
    %877 = vector.broadcast %cst_511 : f32 to vector<4x256xf32>
    %c4_512 = arith.constant 4 : index
    %c128_513 = arith.constant 128 : index
    %878 = vector.load %arg9[%c4_512, %c128_513] : memref<8x416xf32, #tpu.memory_space<vmem>>, vector<1x256xf32>
    %c0_514 = arith.constant 0 : index
    %c16_515 = arith.constant 16 : index
    %879 = vector.load %arg4[%c0_514, %c16_515] : memref<4x36xf32, #tpu.memory_space<vmem>>, vector<4x1xf32>
    %880 = vector.broadcast %879 : vector<4x1xf32> to vector<4x256xf32>
    %881 = vector.broadcast %878 : vector<1x256xf32> to vector<4x256xf32>
    %882 = arith.mulf %880, %881 : vector<4x256xf32>
    %883 = arith.addf %877, %882 : vector<4x256xf32>
    %c5_516 = arith.constant 5 : index
    %c128_517 = arith.constant 128 : index
    %884 = vector.load %arg9[%c5_516, %c128_517] : memref<8x416xf32, #tpu.memory_space<vmem>>, vector<1x256xf32>
    %c0_518 = arith.constant 0 : index
    %c17_519 = arith.constant 17 : index
    %885 = vector.load %arg4[%c0_518, %c17_519] : memref<4x36xf32, #tpu.memory_space<vmem>>, vector<4x1xf32>
    %886 = vector.broadcast %885 : vector<4x1xf32> to vector<4x256xf32>
    %887 = vector.broadcast %884 : vector<1x256xf32> to vector<4x256xf32>
    %888 = arith.mulf %886, %887 : vector<4x256xf32>
    %889 = arith.addf %883, %888 : vector<4x256xf32>
    %c6_520 = arith.constant 6 : index
    %c128_521 = arith.constant 128 : index
    %890 = vector.load %arg9[%c6_520, %c128_521] : memref<8x416xf32, #tpu.memory_space<vmem>>, vector<1x256xf32>
    %c0_522 = arith.constant 0 : index
    %c18_523 = arith.constant 18 : index
    %891 = vector.load %arg4[%c0_522, %c18_523] : memref<4x36xf32, #tpu.memory_space<vmem>>, vector<4x1xf32>
    %892 = vector.broadcast %891 : vector<4x1xf32> to vector<4x256xf32>
    %893 = vector.broadcast %890 : vector<1x256xf32> to vector<4x256xf32>
    %894 = arith.mulf %892, %893 : vector<4x256xf32>
    %895 = arith.addf %889, %894 : vector<4x256xf32>
    %c7_524 = arith.constant 7 : index
    %c128_525 = arith.constant 128 : index
    %896 = vector.load %arg9[%c7_524, %c128_525] : memref<8x416xf32, #tpu.memory_space<vmem>>, vector<1x256xf32>
    %c0_526 = arith.constant 0 : index
    %c19_527 = arith.constant 19 : index
    %897 = vector.load %arg4[%c0_526, %c19_527] : memref<4x36xf32, #tpu.memory_space<vmem>>, vector<4x1xf32>
    %898 = vector.broadcast %897 : vector<4x1xf32> to vector<4x256xf32>
    %899 = vector.broadcast %896 : vector<1x256xf32> to vector<4x256xf32>
    %900 = arith.mulf %898, %899 : vector<4x256xf32>
    %901 = arith.addf %895, %900 : vector<4x256xf32>
    %902 = arith.addf %876, %901 : vector<4x256xf32>
    %cst_528 = arith.constant 0.000000e+00 : f32
    %903 = vector.broadcast %cst_528 : f32 to vector<4x256xf32>
    %c4_529 = arith.constant 4 : index
    %c129_530 = arith.constant 129 : index
    %904 = vector.load %arg9[%c4_529, %c129_530] : memref<8x416xf32, #tpu.memory_space<vmem>>, vector<1x256xf32>
    %c0_531 = arith.constant 0 : index
    %c20_532 = arith.constant 20 : index
    %905 = vector.load %arg4[%c0_531, %c20_532] : memref<4x36xf32, #tpu.memory_space<vmem>>, vector<4x1xf32>
    %906 = vector.broadcast %905 : vector<4x1xf32> to vector<4x256xf32>
    %907 = vector.broadcast %904 : vector<1x256xf32> to vector<4x256xf32>
    %908 = arith.mulf %906, %907 : vector<4x256xf32>
    %909 = arith.addf %903, %908 : vector<4x256xf32>
    %c5_533 = arith.constant 5 : index
    %c129_534 = arith.constant 129 : index
    %910 = vector.load %arg9[%c5_533, %c129_534] : memref<8x416xf32, #tpu.memory_space<vmem>>, vector<1x256xf32>
    %c0_535 = arith.constant 0 : index
    %c21_536 = arith.constant 21 : index
    %911 = vector.load %arg4[%c0_535, %c21_536] : memref<4x36xf32, #tpu.memory_space<vmem>>, vector<4x1xf32>
    %912 = vector.broadcast %911 : vector<4x1xf32> to vector<4x256xf32>
    %913 = vector.broadcast %910 : vector<1x256xf32> to vector<4x256xf32>
    %914 = arith.mulf %912, %913 : vector<4x256xf32>
    %915 = arith.addf %909, %914 : vector<4x256xf32>
    %c6_537 = arith.constant 6 : index
    %c129_538 = arith.constant 129 : index
    %916 = vector.load %arg9[%c6_537, %c129_538] : memref<8x416xf32, #tpu.memory_space<vmem>>, vector<1x256xf32>
    %c0_539 = arith.constant 0 : index
    %c22_540 = arith.constant 22 : index
    %917 = vector.load %arg4[%c0_539, %c22_540] : memref<4x36xf32, #tpu.memory_space<vmem>>, vector<4x1xf32>
    %918 = vector.broadcast %917 : vector<4x1xf32> to vector<4x256xf32>
    %919 = vector.broadcast %916 : vector<1x256xf32> to vector<4x256xf32>
    %920 = arith.mulf %918, %919 : vector<4x256xf32>
    %921 = arith.addf %915, %920 : vector<4x256xf32>
    %c7_541 = arith.constant 7 : index
    %c129_542 = arith.constant 129 : index
    %922 = vector.load %arg9[%c7_541, %c129_542] : memref<8x416xf32, #tpu.memory_space<vmem>>, vector<1x256xf32>
    %c0_543 = arith.constant 0 : index
    %c23_544 = arith.constant 23 : index
    %923 = vector.load %arg4[%c0_543, %c23_544] : memref<4x36xf32, #tpu.memory_space<vmem>>, vector<4x1xf32>
    %924 = vector.broadcast %923 : vector<4x1xf32> to vector<4x256xf32>
    %925 = vector.broadcast %922 : vector<1x256xf32> to vector<4x256xf32>
    %926 = arith.mulf %924, %925 : vector<4x256xf32>
    %927 = arith.addf %921, %926 : vector<4x256xf32>
    %928 = vector.broadcast %5 : vector<1x256xf32> to vector<4x256xf32>
    %929 = arith.mulf %927, %928 : vector<4x256xf32>
    %930 = arith.addf %902, %929 : vector<4x256xf32>
    %cst_545 = arith.constant 0.000000e+00 : f32
    %931 = vector.broadcast %cst_545 : f32 to vector<4x256xf32>
    %c4_546 = arith.constant 4 : index
    %c143_547 = arith.constant 143 : index
    %932 = vector.load %arg9[%c4_546, %c143_547] : memref<8x416xf32, #tpu.memory_space<vmem>>, vector<1x256xf32>
    %c0_548 = arith.constant 0 : index
    %c24_549 = arith.constant 24 : index
    %933 = vector.load %arg4[%c0_548, %c24_549] : memref<4x36xf32, #tpu.memory_space<vmem>>, vector<4x1xf32>
    %934 = vector.broadcast %933 : vector<4x1xf32> to vector<4x256xf32>
    %935 = vector.broadcast %932 : vector<1x256xf32> to vector<4x256xf32>
    %936 = arith.mulf %934, %935 : vector<4x256xf32>
    %937 = arith.addf %931, %936 : vector<4x256xf32>
    %c5_550 = arith.constant 5 : index
    %c143_551 = arith.constant 143 : index
    %938 = vector.load %arg9[%c5_550, %c143_551] : memref<8x416xf32, #tpu.memory_space<vmem>>, vector<1x256xf32>
    %c0_552 = arith.constant 0 : index
    %c25_553 = arith.constant 25 : index
    %939 = vector.load %arg4[%c0_552, %c25_553] : memref<4x36xf32, #tpu.memory_space<vmem>>, vector<4x1xf32>
    %940 = vector.broadcast %939 : vector<4x1xf32> to vector<4x256xf32>
    %941 = vector.broadcast %938 : vector<1x256xf32> to vector<4x256xf32>
    %942 = arith.mulf %940, %941 : vector<4x256xf32>
    %943 = arith.addf %937, %942 : vector<4x256xf32>
    %c6_554 = arith.constant 6 : index
    %c143_555 = arith.constant 143 : index
    %944 = vector.load %arg9[%c6_554, %c143_555] : memref<8x416xf32, #tpu.memory_space<vmem>>, vector<1x256xf32>
    %c0_556 = arith.constant 0 : index
    %c26_557 = arith.constant 26 : index
    %945 = vector.load %arg4[%c0_556, %c26_557] : memref<4x36xf32, #tpu.memory_space<vmem>>, vector<4x1xf32>
    %946 = vector.broadcast %945 : vector<4x1xf32> to vector<4x256xf32>
    %947 = vector.broadcast %944 : vector<1x256xf32> to vector<4x256xf32>
    %948 = arith.mulf %946, %947 : vector<4x256xf32>
    %949 = arith.addf %943, %948 : vector<4x256xf32>
    %c7_558 = arith.constant 7 : index
    %c143_559 = arith.constant 143 : index
    %950 = vector.load %arg9[%c7_558, %c143_559] : memref<8x416xf32, #tpu.memory_space<vmem>>, vector<1x256xf32>
    %c0_560 = arith.constant 0 : index
    %c27_561 = arith.constant 27 : index
    %951 = vector.load %arg4[%c0_560, %c27_561] : memref<4x36xf32, #tpu.memory_space<vmem>>, vector<4x1xf32>
    %952 = vector.broadcast %951 : vector<4x1xf32> to vector<4x256xf32>
    %953 = vector.broadcast %950 : vector<1x256xf32> to vector<4x256xf32>
    %954 = arith.mulf %952, %953 : vector<4x256xf32>
    %955 = arith.addf %949, %954 : vector<4x256xf32>
    %956 = vector.broadcast %4 : vector<1x256xf32> to vector<4x256xf32>
    %957 = arith.mulf %955, %956 : vector<4x256xf32>
    %958 = arith.addf %930, %957 : vector<4x256xf32>
    %cst_562 = arith.constant 0.000000e+00 : f32
    %959 = vector.broadcast %cst_562 : f32 to vector<4x256xf32>
    %c4_563 = arith.constant 4 : index
    %c144_564 = arith.constant 144 : index
    %960 = vector.load %arg9[%c4_563, %c144_564] : memref<8x416xf32, #tpu.memory_space<vmem>>, vector<1x256xf32>
    %c0_565 = arith.constant 0 : index
    %c28_566 = arith.constant 28 : index
    %961 = vector.load %arg4[%c0_565, %c28_566] : memref<4x36xf32, #tpu.memory_space<vmem>>, vector<4x1xf32>
    %962 = vector.broadcast %961 : vector<4x1xf32> to vector<4x256xf32>
    %963 = vector.broadcast %960 : vector<1x256xf32> to vector<4x256xf32>
    %964 = arith.mulf %962, %963 : vector<4x256xf32>
    %965 = arith.addf %959, %964 : vector<4x256xf32>
    %c5_567 = arith.constant 5 : index
    %c144_568 = arith.constant 144 : index
    %966 = vector.load %arg9[%c5_567, %c144_568] : memref<8x416xf32, #tpu.memory_space<vmem>>, vector<1x256xf32>
    %c0_569 = arith.constant 0 : index
    %c29_570 = arith.constant 29 : index
    %967 = vector.load %arg4[%c0_569, %c29_570] : memref<4x36xf32, #tpu.memory_space<vmem>>, vector<4x1xf32>
    %968 = vector.broadcast %967 : vector<4x1xf32> to vector<4x256xf32>
    %969 = vector.broadcast %966 : vector<1x256xf32> to vector<4x256xf32>
    %970 = arith.mulf %968, %969 : vector<4x256xf32>
    %971 = arith.addf %965, %970 : vector<4x256xf32>
    %c6_571 = arith.constant 6 : index
    %c144_572 = arith.constant 144 : index
    %972 = vector.load %arg9[%c6_571, %c144_572] : memref<8x416xf32, #tpu.memory_space<vmem>>, vector<1x256xf32>
    %c0_573 = arith.constant 0 : index
    %c30_574 = arith.constant 30 : index
    %973 = vector.load %arg4[%c0_573, %c30_574] : memref<4x36xf32, #tpu.memory_space<vmem>>, vector<4x1xf32>
    %974 = vector.broadcast %973 : vector<4x1xf32> to vector<4x256xf32>
    %975 = vector.broadcast %972 : vector<1x256xf32> to vector<4x256xf32>
    %976 = arith.mulf %974, %975 : vector<4x256xf32>
    %977 = arith.addf %971, %976 : vector<4x256xf32>
    %c7_575 = arith.constant 7 : index
    %c144_576 = arith.constant 144 : index
    %978 = vector.load %arg9[%c7_575, %c144_576] : memref<8x416xf32, #tpu.memory_space<vmem>>, vector<1x256xf32>
    %c0_577 = arith.constant 0 : index
    %c31_578 = arith.constant 31 : index
    %979 = vector.load %arg4[%c0_577, %c31_578] : memref<4x36xf32, #tpu.memory_space<vmem>>, vector<4x1xf32>
    %980 = vector.broadcast %979 : vector<4x1xf32> to vector<4x256xf32>
    %981 = vector.broadcast %978 : vector<1x256xf32> to vector<4x256xf32>
    %982 = arith.mulf %980, %981 : vector<4x256xf32>
    %983 = arith.addf %977, %982 : vector<4x256xf32>
    %984 = arith.addf %958, %983 : vector<4x256xf32>
    %cst_579 = arith.constant 0.000000e+00 : f32
    %985 = vector.broadcast %cst_579 : f32 to vector<4x256xf32>
    %c4_580 = arith.constant 4 : index
    %c145_581 = arith.constant 145 : index
    %986 = vector.load %arg9[%c4_580, %c145_581] : memref<8x416xf32, #tpu.memory_space<vmem>>, vector<1x256xf32>
    %c0_582 = arith.constant 0 : index
    %c32_583 = arith.constant 32 : index
    %987 = vector.load %arg4[%c0_582, %c32_583] : memref<4x36xf32, #tpu.memory_space<vmem>>, vector<4x1xf32>
    %988 = vector.broadcast %987 : vector<4x1xf32> to vector<4x256xf32>
    %989 = vector.broadcast %986 : vector<1x256xf32> to vector<4x256xf32>
    %990 = arith.mulf %988, %989 : vector<4x256xf32>
    %991 = arith.addf %985, %990 : vector<4x256xf32>
    %c5_584 = arith.constant 5 : index
    %c145_585 = arith.constant 145 : index
    %992 = vector.load %arg9[%c5_584, %c145_585] : memref<8x416xf32, #tpu.memory_space<vmem>>, vector<1x256xf32>
    %c0_586 = arith.constant 0 : index
    %c33_587 = arith.constant 33 : index
    %993 = vector.load %arg4[%c0_586, %c33_587] : memref<4x36xf32, #tpu.memory_space<vmem>>, vector<4x1xf32>
    %994 = vector.broadcast %993 : vector<4x1xf32> to vector<4x256xf32>
    %995 = vector.broadcast %992 : vector<1x256xf32> to vector<4x256xf32>
    %996 = arith.mulf %994, %995 : vector<4x256xf32>
    %997 = arith.addf %991, %996 : vector<4x256xf32>
    %c6_588 = arith.constant 6 : index
    %c145_589 = arith.constant 145 : index
    %998 = vector.load %arg9[%c6_588, %c145_589] : memref<8x416xf32, #tpu.memory_space<vmem>>, vector<1x256xf32>
    %c0_590 = arith.constant 0 : index
    %c34_591 = arith.constant 34 : index
    %999 = vector.load %arg4[%c0_590, %c34_591] : memref<4x36xf32, #tpu.memory_space<vmem>>, vector<4x1xf32>
    %1000 = vector.broadcast %999 : vector<4x1xf32> to vector<4x256xf32>
    %1001 = vector.broadcast %998 : vector<1x256xf32> to vector<4x256xf32>
    %1002 = arith.mulf %1000, %1001 : vector<4x256xf32>
    %1003 = arith.addf %997, %1002 : vector<4x256xf32>
    %c7_592 = arith.constant 7 : index
    %c145_593 = arith.constant 145 : index
    %1004 = vector.load %arg9[%c7_592, %c145_593] : memref<8x416xf32, #tpu.memory_space<vmem>>, vector<1x256xf32>
    %c0_594 = arith.constant 0 : index
    %c35_595 = arith.constant 35 : index
    %1005 = vector.load %arg4[%c0_594, %c35_595] : memref<4x36xf32, #tpu.memory_space<vmem>>, vector<4x1xf32>
    %1006 = vector.broadcast %1005 : vector<4x1xf32> to vector<4x256xf32>
    %1007 = vector.broadcast %1004 : vector<1x256xf32> to vector<4x256xf32>
    %1008 = arith.mulf %1006, %1007 : vector<4x256xf32>
    %1009 = arith.addf %1003, %1008 : vector<4x256xf32>
    %1010 = vector.broadcast %5 : vector<1x256xf32> to vector<4x256xf32>
    %1011 = arith.mulf %1009, %1010 : vector<4x256xf32>
    %1012 = arith.addf %984, %1011 : vector<4x256xf32>
    %c4_596 = arith.constant 4 : index
    %c0_597 = arith.constant 0 : index
    %1013 = vector.load %arg1[%c4_596, %c0_597] : memref<8x256xf32, #tpu.memory_space<vmem>>, vector<4x256xf32>
    %1014 = arith.addf %1013, %1012 : vector<4x256xf32>
    %cst_598 = arith.constant 0.000000e+00 : f32
    %1015 = vector.broadcast %cst_598 : f32 to vector<4x256xf32>
    %1016 = arith.maximumf %1014, %1015 : vector<4x256xf32>
    %c4_599 = arith.constant 4 : index
    %c0_600 = arith.constant 0 : index
    %1017 = vector.load %arg8[%c4_599, %c0_600] : memref<8x256xf32, #tpu.memory_space<vmem>>, vector<4x256xf32>
    tpu.vector_store %arg8[%c4_599, %c0_600], %1016 {strides = array<i32>} : memref<8x256xf32, #tpu.memory_space<vmem>>, vector<4x256xf32>,
    return
  }
  func.func @transform_0(%arg0: i32) -> (i32, i32) {
    %c0_i32 = arith.constant 0 : i32
    %c0_i32_0 = arith.constant 0 : i32
    %c0_i32_1 = arith.constant 0 : i32
    return %c0_i32, %c0_i32_0 : i32, i32
  }
  func.func @transform_1(%arg0: i32) -> (i32, i32) {
    %c0_i32 = arith.constant 0 : i32
    %c0_i32_0 = arith.constant 0 : i32
    %c0_i32_1 = arith.constant 0 : i32
    return %c0_i32, %c0_i32_0 : i32, i32
  }
  func.func @transform_2(%arg0: i32) -> (i32, i32) {
    %c0_i32 = arith.constant 0 : i32
    %c0_i32_0 = arith.constant 0 : i32
    %c0_i32_1 = arith.constant 0 : i32
    return %c0_i32, %c0_i32_0 : i32, i32
  }
  func.func @transform_3(%arg0: i32) -> (i32, i32) {
    %c0_i32 = arith.constant 0 : i32
    %c0_i32_0 = arith.constant 0 : i32
    %c0_i32_1 = arith.constant 0 : i32
    return %c0_i32, %c0_i32_0 : i32, i32
  }
  func.func @transform_4(%arg0: i32) -> (i32, i32) {
    %c0_i32 = arith.constant 0 : i32
    %c0_i32_0 = arith.constant 0 : i32
    %c0_i32_1 = arith.constant 0 : i32
    return %c0_i32, %c0_i32_0 : i32, i32
  }
  func.func @transform_5(%arg0: i32) -> (i32, i32) {
    %c0_i32 = arith.constant 0 : i32
    %c0_i32_0 = arith.constant 0 : i32
    %c0_i32_1 = arith.constant 0 : i32
    return %c0_i32, %c0_i32_0 : i32, i32
  }
  func.func @transform_6(%arg0: i32) -> (i32, i32) {
    %c0_i32 = arith.constant 0 : i32
    %c0_i32_0 = arith.constant 0 : i32
    %c0_i32_1 = arith.constant 0 : i32
    return %c0_i32, %c0_i32_0 : i32, i32
  }
  func.func @transform_7(%arg0: i32) -> (i32, i32) {
    %c0_i32 = arith.constant 0 : i32
    %c0_i32_0 = arith.constant 0 : i32
    %c0_i32_1 = arith.constant 0 : i32
    return %c0_i32, %c0_i32_0 : i32, i32
  }
}

</mosaic_0001>

<bundles_post_ra>
// kernel: tpu_custom_call.1
= control target key start
LH: loop header
LB: loop body
LE: loop exit
PB: predicated region body
PF: predicated region fallthrough
CT: control target
= control target key end

     0   :  { %12 = vsyncpa [#allocation4], 0  ;;  %s4668_s0 = inlined_call_operand.hbm [shape: f32[8,256], index: 0, kind: input, shape index: {}]   ;;  %s4669_s1 = inlined_call_operand.vmem [shape: f32[4,36], index: 1, kind: input, shape index: {}]   ;;  %s4670_s2 = inlined_call_operand.vmem [shape: f32[4,1], index: 2, kind: input, shape index: {}]   ;;  %s4671_s3 = inlined_call_operand.vmem [shape: f32[4,36], index: 3, kind: input, shape index: {}]   ;;  %s4672_s4 = inlined_call_operand.vmem [shape: f32[4,1], index: 4, kind: input, shape index: {}]   ;;  %s4673_s5 = inlined_call_operand.vmem [shape: f32[1,256], index: 5, kind: input, shape index: {}]   ;;  %s4674_s6 = inlined_call_operand.vmem [shape: f32[1,256], index: 6, kind: input, shape index: {}]   ;;  %s4675_s7 = inlined_call_operand.hbm [shape: f32[8,256], index: 7, kind: output, shape index: {}]  }
   0x1   :  { %13 = vsyncpa [#allocation5], 0  ;;  %s19_s26 = sshll.u32 %s4668_s0, 4  ;;  %s2886_s27 = smov [#allocation3]   ;;  %s20_s26 = int_to_ptr.hbm [resolvable:$true] %s19_s26 }
   0x2   :  { %s21_s28 = sshll.u32 %s2886_s27, 4  ;;  %s22_s28 = int_to_ptr.vmem [resolvable:$true] %s21_s28 }
   0x3   :  { %24 = dma.hbm_to_vmem [thread:$0]  %s20_s26, 256, %s22_s28, [#allocation4]  }
   0x4   :  { %2882 = dma.done.wait [#allocation4], 256  }
   0x5   :  { %2883 = vsyncadd [#allocation4], 4294967040  ;;  %v4730_v0 = vmov 1   ;;  %v4710_v1 = vmov 6   ;;  %v4716_v2 = vmov 3   ;;  %s2890_s9 = smov 111  }
   0x6   :  { %2689 = vset.pattern.permute.xlu1 %v4730_v0  ;;  %2694 = vset.pattern.permute.xlu0 %v4710_v1  ;;  %v2986_v3 = vld [vmem:[%s4669_s1] sm:$0xf]  ;;  %v4722_v7 = vmov 2   ;;  %v4676_v8 = vmov 5   ;;  %v4712_v9 = vmov 4   ;;  %v4704_v10 = vmov 8  }
   0x7   :  { %2691 = vset.pattern.permute.xlu2 %v4716_v2  ;;  %v50_v4 = vld [vmem:[%s4673_s5] sm:$0x3]  ;;  %81 = vperm.xlu1 %2689, %v2986_v3   ;;  %v4714_v13 = vmov 10   ;;  %v4706_v14 = vmov 7   ;;  %s2897_s11 = smov 113   ;;  %v4696_v15 = vmov 14  }
   0x8   :  { %v2992_v5 = vperm.slane %v50_v4, 1  ;;  %119 = vperm.xlu2 %2691, %v2986_v3   ;;  %v2997_v6 = vperm.slane %v50_v4, 0  ;;  %v51_v11 = vld [vmem:[%s4674_s6] sm:$0x3]  ;;  %v4700_v17 = vmov 9   ;;  %v4694_v18 = vmov 13  }
   0x9   :  { %v3013_v12 = vperm.slane %v51_v11, 1  ;;  %v3021_v16 = vperm.slane %v51_v11, 0  ;;  %v4702_v19 = vmov 17   ;;  %v4698_v20 = vmov 11   ;;  %s2903_s6 = smov 127   ;;  %s2908_s12 = smov 1  }
   0xa   :  { %140 = vrot.lane.b32.xlu0 %v2992_v5, %s2890_s9  ;;  %v4708_v21 = vmov 12   ;;  %v4682_v22 = vmov 20   ;;  %v4692_v23 = vmov 16   ;;  %v4690_v24 = vmov 15   ;;  %v46_v28 = vld [vmem:[#allocation3] sm:$0xff]  ;;  %v47_v29 = vld [vmem:[#allocation3 + $0x8] sm:$0xff] }
   0xb   :  { %v4688_v25 = vmov 19   ;;  %v2910_v26 = vmov 0.0   ;;  %v4684_v27 = vmov 18   ;;  %48 = vst [vmem:[#allocation2 + $0x8] sm:$0xff] %v46_v28  ;;  %v4686_v30 = vmov 22   ;;  %s2915_s13 = smov 126  }
   0xc   :  { %41 = vst [vmem:[#allocation2] sm:$0xff] %v2910_v26  ;;  %v4680_v31 = vmov 21   ;;  %v4678_v32 = vmov 23   ;;  %vm44_vm0 = vcmask 261120   ;;  %vm202_vm1 = vcmask 1039360   ;;  %s2916_s14 = smov 112  }
   0xd   :  { %49 = vst [vmem:[#allocation2 + $0x10] sm:$0xff] %v47_v29  ;;  %vm258_vm2 = vcmask 924672   ;;  %vm502_vm3 = vcmask 7168   ;;  %s2919_s15 = smov 110   ;;  %s2922_s16 = smov 15   ;;  %vm572_vm4 = vcmask 121856  }
   0xe   :  { %45 = vst.msk [vmem:[#allocation2 + $0x18] sm:$0xff] %vm44_vm0, %v2910_v26  ;;  %s2926_s17 = smov 96   ;;  %s2931_s18 = smov 95   ;;  %vm700_vm5 = vcmask 138240   ;;  %vm275_vm6 = vcmask 1031168   ;;  %vm344_vm7 = vcmask 916480  }
   0xf   :  { %2690 = vset.pattern.permute.xlu1 %v4722_v7  ;;  %s2933_s21 = smov 17   ;;  %s2935_s22 = smov 94   ;;  %vm142_vm8 = vcmask 908288   ;;  %vm519_vm9 = vcmask 900096   ;;  %vm589_vm10 = vcmask 785408   ;;  %vm647_vm11 = vcmask 777216  }
  0x10   :  { %138 = vrot.lane.b32.xlu2 %v2997_v6, %s2890_s9  ;;  %100 = vperm.xlu1 %2690, %v2986_v3   ;;  %vm717_vm12 = vcmask 769024   ;;  %s2628_s10 = sshll.u32 %s4675_s7, 4  ;;  %s2629_s10 = int_to_ptr.hbm [resolvable:$true] %s2628_s10 }
  0x11   :  { %2693 = vset.pattern.permute.xlu2 %v4676_v8 }
  0x12   :  { %174 = vperm.xlu0 %2694, %v2986_v3  }
  0x14   :  { %v58_v38 = vld [vmem:[#allocation2] ss:$8 sm:$0x7]  ;;  %v79_v39 = vld [vmem:[#allocation2 + $0x1] ss:$8 sm:$0x7] }
  0x15   :  { %v3068_v40 = vperm.slane %v58_v38, 0  ;;  %v3070_v41 = vperm.slane %v58_v38, 1  ;;  %v3072_v43 = vperm.slane %v79_v39, 0  ;;  %v3074_v44 = vperm.slane %v79_v39, 1 }
  0x16   :  { %v98_v46 = vld [vmem:[#allocation2 + $0x2] ss:$8 sm:$0x7]  ;;  %v117_v54 = vld [vmem:[#allocation2 + $0x3] ss:$8 sm:$0x7] }
  0x17   :  { %v3080_v52 = vperm.slane %v98_v46, 0  ;;  %v3082_v53 = vperm.slane %v98_v46, 1  ;;  %v3084_v55 = vperm.slane %v58_v38, 2  ;;  %v3088_v60 = vperm.slane %v79_v39, 2 }
  0x18   :  { %164 = vperm.xlu2 %2693, %v2986_v3   ;;  %2692 = vset.pattern.permute.xlu1 %v4712_v9  ;;  %v3090_v61 = vperm.slane %v117_v54, 0  ;;  %v3092_v62 = vperm.slane %v117_v54, 1  ;;  %v3102_v8 = vperm.slane %v117_v54, 2 }
  0x19   :  { %154 = vperm.xlu1 %2692, %v2986_v3  }
  0x1a   :  { %2696 = vset.pattern.permute.xlu0 %v4704_v10 }
  0x1b   :  { %212 = vperm.xlu0 %2696, %v2986_v3  }
  0x20   :  { %2698 = vset.pattern.permute.xlu2 %v4714_v13  ;;  %v426_v13 = vld [vmem:[#allocation2 + $0x8] ss:$8 sm:$0x7] }
  0x21   :  { %232 = vperm.xlu2 %2698, %v2986_v3   ;;  %2695 = vset.pattern.permute.xlu1 %v4706_v14 }
  0x22   :  { %184 = vperm.xlu1 %2695, %v2986_v3  }
  0x23   :  { %256 = vrot.lane.b32.xlu0 %v3013_v12, %s2897_s11 }
  0x24   :  { %2702 = vset.pattern.permute.xlu0 %v4696_v15  ;;  %v399_v15 = vld [vmem:[#allocation2 + $0xb] ss:$8 sm:$0x3] }
  0x25   :  { %v406_v14 = vperm.slane %v399_v15, 1 }
  0x29   :  { %254 = vrot.lane.b32.xlu2 %v3021_v16, %s2897_s11 }
  0x2a   :  { %2697 = vset.pattern.permute.xlu1 %v4700_v17  ;;  %2701 = vset.pattern.permute.xlu2 %v4694_v18  ;;  %v384_v18 = vld [vmem:[#allocation2 + $0xa] ss:$8 sm:$0x3] }
  0x2b   :  { %305 = vperm.xlu0 %2702, %v2986_v3   ;;  %222 = vperm.xlu1 %2697, %v2986_v3   ;;  %v391_v10 = vperm.slane %v384_v18, 1 }
  0x31   :  { %295 = vperm.xlu2 %2701, %v2986_v3  }
  0x33   :  { %2705 = vset.pattern.permute.xlu0 %v4702_v19  ;;  %2699 = vset.pattern.permute.xlu1 %v4698_v20  ;;  %v390_v19 = vperm.slane %v384_v18, 0 }
  0x34   :  { %371 = vperm.xlu0 %2705, %v2986_v3   ;;  %242 = vperm.xlu1 %2699, %v2986_v3  }
  0x39   :  { %324 = vrot.lane.b32.xlu2 %v2997_v6, %s2903_s6 }
  0x3a   :  { %2704 = vset.pattern.permute.xlu2 %v4692_v23 }
  0x3c   :  { %2700 = vset.pattern.permute.xlu1 %v4708_v21  ;;  %2708 = vset.pattern.permute.xlu0 %v4682_v22 }
  0x3d   :  { %285 = vperm.xlu1 %2700, %v2986_v3   ;;  %428 = vperm.xlu0 %2708, %v2986_v3  }
  0x41   :  { %356 = vperm.xlu2 %2704, %v2986_v3  }
  0x45   :  { %2703 = vset.pattern.permute.xlu1 %v4690_v24  ;;  %500 = vrot.lane.b32.xlu0 %v3013_v12, %s2908_s12 }
  0x46   :  { %315 = vperm.xlu1 %2703, %v2986_v3  }
  0x49   :  { %2707 = vset.pattern.permute.xlu2 %v4688_v25 }
  0x4a   :  { %401 = vperm.xlu2 %2707, %v2986_v3  }
  0x4e   :  { %326 = vrot.lane.b32.xlu1 %v2992_v5, %s2903_s6 }
  0x4f   :  { %2706 = vset.pattern.permute.xlu1 %v4684_v27 }
  0x52   :  { %2710 = vset.pattern.permute.xlu2 %v4686_v30 }
  0x53   :  { %464 = vperm.xlu2 %2710, %v2986_v3  }
  0x56   :  { %386 = vperm.xlu1 %2706, %v2986_v3  }
  0x5b   :  { %498 = vrot.lane.b32.xlu2 %v3021_v16, %s2908_s12 }
  0x5e   :  { %2709 = vset.pattern.permute.xlu1 %v4680_v31 }
  0x5f   :  { %446 = vperm.xlu1 %2709, %v2986_v3  }
  0x62   :  { %v3058_v33 = vpop.permute.xlu2 %119 }
  0x67   :  { %2711 = vset.pattern.permute.xlu1 %v4678_v32 }
  0x68   :  { %482 = vperm.xlu1 %2711, %v2986_v3  }
  0x6a   :  { %v3062_v35 = vpop.permute.xlu2 %138 }
  0x6b   :  { %4828 = vst [vmem:[#allocation9_spill] sm:$0xff] %v3062_v35 }
  0x72   :  { %v165_v42 = vpop.permute.xlu2 %164 }
  0x73   :  { %v167_v49 = vmul.f32 %v165_v42, %v3072_v43  ;;  %v168_v50 = vmul.f32 %v165_v42, %v3074_v44  ;;  %v169_v4 = vmul.f32 %v165_v42, %v3088_v60 }
  0x79   :  { %v3060_v34 = vpop.permute.xlu1 %81 }
  0x7c   :  { %v3066_v37 = vpop.permute.xlu0 %140 }
  0x7d   :  { %4829 = vst [vmem:[#allocation10_spill] sm:$0xff] %v3066_v37 }
  0x82   :  { %v3064_v36 = vpop.permute.xlu1 %100 }
  0x84   :  { %v175_v51 = vpop.permute.xlu0 %174 }
  0x85   :  { %v177_v58 = vmul.f32 %v175_v51, %v3080_v52  ;;  %v178_v59 = vmul.f32 %v175_v51, %v3082_v53 }
  0x8b   :  { %v155_v45 = vpop.permute.xlu1 %154 }
  0x8c   :  { %v157_v47 = vmul.f32 %v155_v45, %v3068_v40  ;;  %v158_v48 = vmul.f32 %v155_v45, %v3070_v41  ;;  %v159_v63 = vmul.f32 %v155_v45, %v3084_v55 }
  0x8d   :  { %v213_v31 = vpop.permute.xlu0 %212 }
  0x8e   :  { %v170_v56 = vadd.f32 %v167_v49, %v157_v47  ;;  %v171_v57 = vadd.f32 %v168_v50, %v158_v48  ;;  %v3098_v48 = vpop.permute.xlu2 %232  ;;  %v3100_v49 = vperm.slane %v98_v46, 2  ;;  %v172_v32 = vadd.f32 %v169_v4, %v159_v63 }
  0x8f   :  { %v217_v46 = vmul.f32 %v213_v31, %v3084_v55  ;;  %v215_v20 = vmul.f32 %v213_v31, %v3068_v40  ;;  %v235_v1 = vmul.f32 %v3098_v48, %v3080_v52 }
  0x90   :  { %v181_v38 = vadd.f32 %v178_v59, %v171_v57  ;;  %v180_v47 = vadd.f32 %v177_v58, %v170_v56  ;;  %v179_v45 = vmul.f32 %v175_v51, %v3100_v49  ;;  %v237_v51 = vmul.f32 %v3098_v48, %v3100_v49 }
  0x92   :  { %v182_v56 = vadd.f32 %v179_v45, %v172_v32 }
  0x94   :  { %v185_v11 = vpop.permute.xlu1 %184 }
  0x95   :  { %v187_v28 = vmul.f32 %v185_v11, %v3090_v61  ;;  %v188_v29 = vmul.f32 %v185_v11, %v3092_v62  ;;  %v189_v42 = vmul.f32 %v185_v11, %v3102_v8  ;;  %v3115_v63 = vpop.permute.xlu0 %256 }
  0x96   :  { %4831 = vst [vmem:[#allocation12_spill] sm:$0xff] %v3115_v63 }
  0x97   :  { %v191_v39 = vadd.f32 %v188_v29, %v181_v38  ;;  %v190_v50 = vadd.f32 %v187_v28, %v180_v47  ;;  %v192_v59 = vadd.f32 %v189_v42, %v182_v56  ;;  %v3110_v28 = vpop.permute.xlu2 %254 }
  0x98   :  { %4830 = vst [vmem:[#allocation11_spill] sm:$0xff] %v3110_v28 }
  0x99   :  { %198 = vrot.lane.b32.xlu1 %v191_v39, %s2903_s6  ;;  %196 = vrot.lane.b32.xlu2 %v190_v50, %s2903_s6 }
  0x9d   :  { %v223_v57 = vpop.permute.xlu1 %222  ;;  %v3125_v39 = vpop.permute.xlu0 %305 }
  0x9e   :  { %v227_v58 = vmul.f32 %v223_v57, %v3088_v60  ;;  %v308_v56 = vmul.f32 %v3125_v39, %v3080_v52 }
  0x9f   :  { %v3121_v38 = vpop.permute.xlu2 %295 }
  0xa0   :  { %v230_v54 = vadd.f32 %v227_v58, %v217_v46  ;;  %v298_v50 = vmul.f32 %v3121_v38, %v3072_v43  ;;  %v299_v26 = vmul.f32 %v3121_v38, %v3074_v44 }
  0xa1   :  { %200 = vrot.lane.b32.xlu2 %v192_v59, %s2903_s6 }
  0xa2   :  { %v240_v11 = vadd.f32 %v237_v51, %v230_v54 }
  0xa6   :  { %v3117_v4 = vpop.permute.xlu1 %242  ;;  %v372_v23 = vpop.permute.xlu0 %371 }
  0xa7   :  { %v247_v32 = vmul.f32 %v3117_v4, %v3102_v8  ;;  %v3136_v46 = vpop.permute.xlu2 %324  ;;  %v246_v2 = vmul.f32 %v3117_v4, %v3092_v62 }
  0xa8   :  { %4832 = vst [vmem:[#allocation13_spill] sm:$0xff] %v3136_v46 }
  0xa9   :  { %v250_v29 = vadd.f32 %v247_v32, %v240_v11  ;;  %v309_v32 = vmul.f32 %v3125_v39, %v3082_v53 }
  0xab   :  { %v265_v47 = vmul.f32 %v3115_v63, %v250_v29 }
  0xad   :  { %273 = vrot.lane.b32.xlu0 %v265_v47, %s2915_s13  ;;  %v369_v47 = vld [vmem:[#allocation2 + $0x9] ss:$8 sm:$0x3] }
  0xae   :  { %v376_v27 = vperm.slane %v369_v47, 1 }
  0xaf   :  { %v3130_v45 = vpop.permute.xlu1 %285 }
  0xb0   :  { %v288_v42 = vmul.f32 %v3130_v45, %v3068_v40  ;;  %v289_v54 = vmul.f32 %v3130_v45, %v3070_v41 }
  0xb2   :  { %v301_v58 = vadd.f32 %v298_v50, %v288_v42  ;;  %v302_v11 = vadd.f32 %v299_v26, %v289_v54  ;;  %v357_v50 = vpop.permute.xlu2 %356  ;;  %v354_v42 = vld [vmem:[#allocation2 + $0x8] ss:$8 sm:$0x3] }
  0xb3   :  { %v360_v30 = vperm.slane %v354_v42, 0  ;;  %v361_v25 = vperm.slane %v354_v42, 1 }
  0xb4   :  { %v3138_v59 = vadd.f32 %v308_v56, %v301_v58  ;;  %v312_v56 = vadd.f32 %v309_v32, %v302_v11  ;;  %v375_v58 = vperm.slane %v369_v47, 0  ;;  %v225_v11 = vmul.f32 %v223_v57, %v3072_v43 }
  0xb5   :  { %v226_v32 = vmul.f32 %v223_v57, %v3074_v44  ;;  %v216_v47 = vmul.f32 %v213_v31, %v3070_v41  ;;  %v365_v17 = vmul.f32 %v361_v25, %v357_v50  ;;  %v236_v57 = vmul.f32 %v3098_v48, %v3082_v53 }
  0xb6   :  { %v379_v42 = vmul.f32 %v375_v58, %v372_v23  ;;  %v228_v9 = vadd.f32 %v225_v11, %v215_v20  ;;  %v4720_v25 = vmov 24   ;;  %v444_v11 = vld [vmem:[#allocation2 + $0x9] ss:$8 sm:$0x7] }
  0xb7   :  { %v229_v31 = vadd.f32 %v226_v32, %v216_v47  ;;  %2712 = vset.pattern.permute.xlu1 %v4720_v25 }
  0xb8   :  { %v3144_v51 = vpop.permute.xlu1 %315  ;;  %v238_v32 = vadd.f32 %v235_v1, %v228_v9  ;;  %v3182_v1 = vperm.slane %v426_v13, 0 }
  0xb9   :  { %v319_v29 = vmul.f32 %v3144_v51, %v3092_v62 }
  0xba   :  { %v402_v21 = vpop.permute.xlu2 %401 }
  0xbb   :  { %v322_v24 = vadd.f32 %v319_v29, %v312_v56  ;;  %v380_v29 = vmul.f32 %v376_v27, %v372_v23  ;;  %v364_v56 = vmul.f32 %v360_v30, %v357_v50 }
  0xbd   :  { %v381_v58 = vadd.f32 %v379_v42, %v364_v56  ;;  %v382_v23 = vadd.f32 %v380_v29, %v365_v17  ;;  %v239_v17 = vadd.f32 %v236_v57, %v229_v31  ;;  %v3172_v29 = vperm.slane %v426_v13, 2 }
  0xbe   :  { %v4718_v57 = vmov 26  }
  0xbf   :  { %v249_v9 = vadd.f32 %v246_v2, %v239_v17  ;;  %2714 = vset.pattern.permute.xlu0 %v4718_v57  ;;  %v310_v2 = vmul.f32 %v3125_v39, %v3100_v49  ;;  %v480_v39 = vld [vmem:[#allocation2 + $0xb] ss:$8 sm:$0x7] }
  0xc0   :  { %v3150_v22 = vpop.permute.xlu1 %326  ;;  %v3224_v25 = vperm.slane %v480_v39, 0  ;;  %v3226_v7 = vperm.slane %v480_v39, 1 }
  0xc1   :  { %4833 = vst [vmem:[#allocation14_spill] sm:$0xff] %v3150_v22  ;;  %v3155_v54 = vsel %vm202_vm1, %v3136_v46, %v3150_v22 }
  0xc2   :  { %4834 = vst [vmem:[#allocation15_spill] sm:$0xff] %v3155_v54  ;;  %v333_v26 = vmul.f32 %v3155_v54, %v322_v24  ;;  %v405_v24 = vperm.slane %v399_v15, 0  ;;  %v245_v15 = vmul.f32 %v3117_v4, %v3090_v61  ;;  %v290_v4 = vmul.f32 %v3130_v45, %v3084_v55 }
  0xc3   :  { %v3194_v45 = vperm.slane %v426_v13, 1  ;;  %v318_v13 = vmul.f32 %v3144_v51, %v3090_v61 }
  0xc4   :  { %340 = vrot.lane.b32.xlu0 %v333_v26, %s2916_s14  ;;  %v409_v18 = vmul.f32 %v405_v24, %v402_v21  ;;  %v410_v26 = vmul.f32 %v406_v14, %v402_v21  ;;  %v3176_v14 = vperm.slane %v444_v11, 2  ;;  %v462_v21 = vld [vmem:[#allocation2 + $0xa] ss:$8 sm:$0x7]  ;;  %v248_v56 = vadd.f32 %v245_v15, %v238_v32 }
  0xc5   :  { %v3184_v24 = vperm.slane %v444_v11, 0  ;;  %v3210_v32 = vperm.slane %v462_v21, 1 }
  0xc8   :  { %v387_v27 = vpop.permute.xlu1 %386 }
  0xc9   :  { %v394_v30 = vmul.f32 %v390_v19, %v387_v27  ;;  %v395_v50 = vmul.f32 %v391_v10, %v387_v27  ;;  %v300_v10 = vmul.f32 %v3121_v38, %v3088_v60  ;;  %v429_v19 = vpop.permute.xlu0 %428  ;;  %v3189_v38 = vsel %vm258_vm2, %v3110_v28, %v3115_v63 }
  0xca   :  { %4835 = vst [vmem:[#allocation16_spill] sm:$0xff] %v3189_v38  ;;  %v3197_v27 = vperm.slane %v462_v21, 2  ;;  %v264_v15 = vmul.f32 %v3189_v38, %v249_v9  ;;  %v3219_v9 = vperm.slane %v480_v39, 2 }
  0xcb   :  { %v396_v48 = vadd.f32 %v394_v30, %v381_v58  ;;  %v397_v20 = vadd.f32 %v395_v50, %v382_v23  ;;  %v3192_v58 = vperm.slane %v444_v11, 1  ;;  %v440_v23 = vmul.f32 %v3172_v29, %v429_v19 }
  0xcc   :  { %v303_v50 = vadd.f32 %v300_v10, %v290_v4  ;;  %v3208_v11 = vperm.slane %v462_v21, 0 }
  0xcd   :  { %v411_v47 = vadd.f32 %v409_v18, %v396_v48  ;;  %v412_v42 = vadd.f32 %v410_v26, %v397_v20  ;;  %v438_v18 = vmul.f32 %v3182_v1, %v429_v19  ;;  %v263_v26 = vmul.f32 %v3110_v28, %v248_v56  ;;  %v465_v20 = vpop.permute.xlu2 %464 }
  0xce   :  { %v476_v10 = vmul.f32 %v3197_v27, %v465_v20  ;;  %v320_v56 = vmul.f32 %v3144_v51, %v3102_v8  ;;  %v313_v4 = vadd.f32 %v310_v2, %v303_v50  ;;  %v474_v57 = vmul.f32 %v3208_v11, %v465_v20 }
  0xcf   :  { %415 = vrot.lane.b32.xlu1 %v411_v47, %s2890_s9  ;;  %417 = vrot.lane.b32.xlu2 %v412_v42, %s2890_s9  ;;  %v439_v47 = vmul.f32 %v3194_v45, %v429_v19  ;;  %v321_v19 = vadd.f32 %v318_v13, %v3138_v59 }
  0xd0   :  { %v323_v2 = vadd.f32 %v320_v56, %v313_v4 }
  0xd1   :  { %v447_v31 = vpop.permute.xlu1 %446 }
  0xd2   :  { %v458_v30 = vmul.f32 %v3176_v14, %v447_v31  ;;  %v456_v48 = vmul.f32 %v3184_v24, %v447_v31  ;;  %v457_v17 = vmul.f32 %v3192_v58, %v447_v31  ;;  %v475_v31 = vmul.f32 %v3210_v32, %v465_v20 }
  0xd4   :  { %v461_v42 = vadd.f32 %v458_v30, %v440_v23  ;;  %v459_v21 = vadd.f32 %v456_v48, %v438_v18  ;;  %v460_v23 = vadd.f32 %v457_v17, %v439_v47  ;;  %v334_v18 = vmul.f32 %v3150_v22, %v323_v2 }
  0xd5   :  { %v332_v48 = vmul.f32 %v3136_v46, %v321_v19  ;;  %v3235_v47 = vpop.permute.xlu2 %498 }
  0xd6   :  { %v479_v30 = vadd.f32 %v476_v10, %v461_v42  ;;  %v478_v20 = vadd.f32 %v475_v31, %v460_v23  ;;  %4837 = vst [vmem:[#allocation18_spill] sm:$0xff] %v3235_v47  ;;  %v4724_v10 = vmov 25   ;;  %v4726_v31 = vmov 27  }
  0xd7   :  { %269 = vrot.lane.b32.xlu1 %v263_v26, %s2915_s13  ;;  %271 = vrot.lane.b32.xlu2 %v264_v15, %s2915_s13  ;;  %v477_v26 = vadd.f32 %v474_v57, %v459_v21  ;;  %v3229_v15 = vpop.permute.xlu0 %500 }
  0xd8   :  { %4836 = vst [vmem:[#allocation17_spill] sm:$0xff] %v3229_v15  ;;  %2713 = vset.pattern.permute.xlu2 %v4724_v10  ;;  %v3244_v56 = vsel %vm502_vm3, %v3235_v47, %v3229_v15 }
  0xd9   :  { %4838 = vst [vmem:[#allocation19_spill] sm:$0xff] %v3244_v56 }
  0xda   :  { %v483_v51 = vpop.permute.xlu1 %482 }
  0xdb   :  { %v494_v50 = vmul.f32 %v3219_v9, %v483_v51  ;;  %v492_v59 = vmul.f32 %v3224_v25, %v483_v51  ;;  %v493_v13 = vmul.f32 %v3226_v7, %v483_v51 }
  0xdd   :  { %v497_v17 = vadd.f32 %v494_v50, %v479_v30  ;;  %v495_v39 = vadd.f32 %v492_v59, %v477_v26  ;;  %v496_v42 = vadd.f32 %v493_v13, %v478_v20  ;;  %v4728_v20 = vmov 29  }
  0xdf   :  { %342 = vrot.lane.b32.xlu1 %v334_v18, %s2916_s14  ;;  %338 = vrot.lane.b32.xlu2 %v332_v48, %s2916_s14  ;;  %v509_v57 = vmul.f32 %v3229_v15, %v497_v17  ;;  %v507_v4 = vmul.f32 %v3235_v47, %v495_v39  ;;  %v508_v21 = vmul.f32 %v3244_v56, %v496_v42  ;;  %v4742_v39 = vmov 28  }
  0xe1   :  { %517 = vrot.lane.b32.xlu0 %v509_v57, %s2919_s15  ;;  %v4738_v57 = vmov 30  }
  0xe7   :  { %513 = vrot.lane.b32.xlu1 %v507_v4, %s2919_s15  ;;  %515 = vrot.lane.b32.xlu2 %v508_v21, %s2919_s15 }
  0xe9   :  { %549 = vperm.xlu0 %2714, %v2986_v3  }
  0xef   :  { %529 = vperm.xlu1 %2712, %v2986_v3   ;;  %539 = vperm.xlu2 %2713, %v2986_v3  }
  0xf1   :  { %2717 = vset.pattern.permute.xlu0 %v4728_v20 }
  0xf3   :  { %v3257_v19 = vpop.permute.xlu2 %196 }
  0xf7   :  { %2715 = vset.pattern.permute.xlu1 %v4726_v31  ;;  %568 = vrot.lane.b32.xlu2 %v2997_v6, %s2922_s16 }
  0xf8   :  { %559 = vperm.xlu1 %2715, %v2986_v3   ;;  %2716 = vset.pattern.permute.xlu2 %v4742_v39 }
  0xfb   :  { %v3259_v23 = vpop.permute.xlu2 %200 }
  0xfc   :  { %4839 = vst [vmem:[#allocation20_spill] sm:$0xff] %v3259_v23 }
 0x100   :  { %570 = vrot.lane.b32.xlu1 %v2992_v5, %s2922_s16 }
 0x101   :  { %2718 = vset.pattern.permute.xlu1 %v4738_v57 }
 0x10b   :  { %v3261_v30 = vpop.permute.xlu1 %198 }
 0x11f   :  { %v3271_v18 = vpop.permute.xlu0 %273 }
 0x120   :  { %4841 = vst [vmem:[#allocation22_spill] sm:$0xff] %v3271_v18 }
 0x129   :  { %v3263_v51 = vpop.permute.xlu2 %417 }
 0x12a   :  { %4840 = vst [vmem:[#allocation21_spill] sm:$0xff] %v3263_v51 }
 0x131   :  { %v3267_v50 = vpop.permute.xlu2 %271 }
 0x136   :  { %v3277_v5 = vpop.permute.xlu0 %340 }
 0x139   :  { %v3273_v6 = vpop.permute.xlu2 %338 }
 0x141   :  { %v3265_v2 = vpop.permute.xlu1 %415  ;;  %v3280_v59 = vpop.permute.xlu2 %515 }
 0x142   :  { %4843 = vst [vmem:[#allocation24_spill] sm:$0xff] %v3280_v59 }
 0x149   :  { %v3269_v26 = vpop.permute.xlu1 %269  ;;  %v540_v42 = vpop.permute.xlu2 %539 }
 0x14a   :  { %v542_v10 = vmul.f32 %v540_v42, %v3184_v24  ;;  %v544_v0 = vmul.f32 %v540_v42, %v3176_v14  ;;  %v543_v57 = vmul.f32 %v540_v42, %v3192_v58 }
 0x151   :  { %v3275_v48 = vpop.permute.xlu1 %342  ;;  %v3298_v59 = vpop.permute.xlu2 %568 }
 0x152   :  { %4842 = vst [vmem:[#allocation23_spill] sm:$0xff] %v3275_v48 }
 0x153   :  { %v3284_v17 = vpop.permute.xlu0 %517  ;;  %4845 = vst [vmem:[#allocation26_spill] sm:$0xff] %v3298_v59 }
 0x154   :  { %4844 = vst [vmem:[#allocation25_spill] sm:$0xff] %v3284_v17 }
 0x159   :  { %v3282_v13 = vpop.permute.xlu1 %513 }
 0x15b   :  { %v550_v31 = vpop.permute.xlu0 %549 }
 0x15c   :  { %v552_v46 = vmul.f32 %v550_v31, %v3208_v11  ;;  %v554_v28 = vmul.f32 %v550_v31, %v3197_v27  ;;  %v553_v54 = vmul.f32 %v550_v31, %v3210_v32 }
 0x161   :  { %v530_v4 = vpop.permute.xlu1 %529 }
 0x162   :  { %v532_v21 = vmul.f32 %v530_v4, %v3182_v1  ;;  %v534_v20 = vmul.f32 %v530_v4, %v3172_v29  ;;  %v533_v63 = vmul.f32 %v530_v4, %v3194_v45 }
 0x164   :  { %v545_v47 = vadd.f32 %v542_v10, %v532_v21  ;;  %v547_v39 = vadd.f32 %v544_v0, %v534_v20  ;;  %v546_v56 = vadd.f32 %v543_v57, %v533_v63 }
 0x166   :  { %v555_v22 = vadd.f32 %v552_v46, %v545_v47  ;;  %v557_v4 = vadd.f32 %v554_v28, %v547_v39  ;;  %v556_v51 = vadd.f32 %v553_v54, %v546_v56  ;;  %v4756_v28 = vmov 31  }
 0x167   :  { %v4758_v54 = vmov 32  }
 0x16a   :  { %v560_v15 = vpop.permute.xlu1 %559 }
 0x16b   :  { %v562_v38 = vmul.f32 %v560_v15, %v3224_v25  ;;  %v564_v10 = vmul.f32 %v560_v15, %v3219_v9  ;;  %v563_v17 = vmul.f32 %v560_v15, %v3226_v7 }
 0x16d   :  { %v565_v21 = vadd.f32 %v562_v38, %v555_v22  ;;  %v567_v0 = vadd.f32 %v564_v10, %v557_v4  ;;  %v566_v63 = vadd.f32 %v563_v17, %v556_v51  ;;  %v4760_v38 = vmov 34  }
 0x16f   :  { %v577_v42 = vmul.f32 %v3298_v59, %v565_v21 }
 0x171   :  { %583 = vrot.lane.b32.xlu2 %v577_v42, %s2926_s17 }
 0x172   :  { %v3304_v46 = vpop.permute.xlu1 %570 }
 0x173   :  { %4846 = vst [vmem:[#allocation27_spill] sm:$0xff] %v3304_v46  ;;  %v579_v47 = vmul.f32 %v3304_v46, %v567_v0  ;;  %v3309_v31 = vsel %vm572_vm4, %v3298_v59, %v3304_v46 }
 0x174   :  { %4847 = vst [vmem:[#allocation28_spill] sm:$0xff] %v3309_v31  ;;  %v578_v22 = vmul.f32 %v3309_v31, %v566_v63 }
 0x175   :  { %587 = vrot.lane.b32.xlu1 %v579_v47, %s2926_s17 }
 0x176   :  { %585 = vrot.lane.b32.xlu0 %v578_v22, %s2926_s17 }
 0x179   :  { %599 = vperm.xlu2 %2716, %v2986_v3  }
 0x17d   :  { %619 = vperm.xlu1 %2718, %v2986_v3  }
 0x17e   :  { %609 = vperm.xlu0 %2717, %v2986_v3  }
 0x181   :  { %2719 = vset.pattern.permute.xlu2 %v4756_v28 }
 0x182   :  { %629 = vperm.xlu2 %2719, %v2986_v3  }
 0x185   :  { %2720 = vset.pattern.permute.xlu1 %v4758_v54 }
 0x186   :  { %2722 = vset.pattern.permute.xlu0 %v4760_v38 }
 0x1cb   :  { %v3321_v15 = vpop.permute.xlu2 %583 }
 0x1d3   :  { %v600_v56 = vpop.permute.xlu2 %599 }
 0x1d4   :  { %v602_v17 = vmul.f32 %v600_v56, %v3182_v1  ;;  %v603_v10 = vmul.f32 %v600_v56, %v3194_v45  ;;  %v604_v21 = vmul.f32 %v600_v56, %v3172_v29 }
 0x1dc   :  { %v630_v39 = vpop.permute.xlu2 %629 }
 0x1dd   :  { %v632_v54 = vmul.f32 %v630_v39, %v3224_v25  ;;  %v633_v38 = vmul.f32 %v630_v39, %v3226_v7  ;;  %v634_v31 = vmul.f32 %v630_v39, %v3219_v9 }
 0x1e7   :  { %v3323_v51 = vpop.permute.xlu1 %587 }
 0x1e8   :  { %4848 = vst [vmem:[#allocation29_spill] sm:$0xff] %v3323_v51  ;;  %v3325_v20 = vpop.permute.xlu0 %585  ;;  %v4775_v51 = vmov 33  }
 0x1e9   :  { %4849 = vst [vmem:[#allocation30_spill] sm:$0xff] %v3325_v20  ;;  %2721 = vset.pattern.permute.xlu2 %v4775_v51 }
 0x1ef   :  { %v620_v57 = vpop.permute.xlu1 %619 }
 0x1f0   :  { %v610_v4 = vpop.permute.xlu0 %609  ;;  %v622_v42 = vmul.f32 %v620_v57, %v3208_v11  ;;  %v623_v0 = vmul.f32 %v620_v57, %v3210_v32  ;;  %v624_v28 = vmul.f32 %v620_v57, %v3197_v27 }
 0x1f1   :  { %v612_v63 = vmul.f32 %v610_v4, %v3184_v24  ;;  %v613_v47 = vmul.f32 %v610_v4, %v3192_v58  ;;  %v614_v22 = vmul.f32 %v610_v4, %v3176_v14 }
 0x1f3   :  { %v615_v56 = vadd.f32 %v612_v63, %v602_v17  ;;  %v616_v59 = vadd.f32 %v613_v47, %v603_v10  ;;  %v617_v46 = vadd.f32 %v614_v22, %v604_v21 }
 0x1f5   :  { %v627_v20 = vadd.f32 %v624_v28, %v617_v46  ;;  %v626_v48 = vadd.f32 %v623_v0, %v616_v59  ;;  %v625_v18 = vadd.f32 %v622_v42, %v615_v56  ;;  %v52_v59 = vld [vmem:[%s4670_s2] sm:$0xf]  ;;  %v4777_v46 = vmov 0  }
 0x1f7   :  { %v637_v23 = vadd.f32 %v634_v31, %v627_v20  ;;  %v636_v37 = vadd.f32 %v633_v38, %v626_v48  ;;  %v635_v4 = vadd.f32 %v632_v54, %v625_v18 }
 0x1f9   :  { %645 = vrot.lane.b32.xlu0 %v637_v23, %s2931_s18  ;;  %643 = vrot.lane.b32.xlu2 %v636_v37, %s2931_s18  ;;  %v4773_v37 = vmov 35   ;;  %v4850_v23 = vmov 1  }
 0x1fa   :  { %641 = vrot.lane.b32.xlu1 %v635_v4, %s2931_s18  ;;  %v91_v4 = vmul.f32 %v3072_v43, %v3060_v34 }
 0x201   :  { %677 = vperm.xlu0 %2722, %v2986_v3   ;;  %667 = vperm.xlu2 %2721, %v2986_v3  }
 0x202   :  { %657 = vperm.xlu1 %2720, %v2986_v3  }
 0x209   :  { %2723 = vset.pattern.permute.xlu0 %v4777_v46  ;;  %696 = vrot.lane.b32.xlu2 %v3021_v16, %s2933_s21 }
 0x20a   :  { %2724 = vset.pattern.permute.xlu1 %v4773_v37  ;;  %55 = vperm.xlu0 %2723, %v52_v59  }
 0x20b   :  { %687 = vperm.xlu1 %2724, %v2986_v3   ;;  %2725 = vset.pattern.permute.xlu2 %v4777_v46 }
 0x212   :  { %62 = vperm.xlu0 %2723, %v2986_v3  }
 0x213   :  { %698 = vrot.lane.b32.xlu1 %v3013_v12, %s2933_s21 }
 0x214   :  { %2726 = vset.pattern.permute.xlu1 %v4850_v23 }
 0x253   :  { %v3359_v18 = vpop.permute.xlu2 %643 }
 0x25b   :  { %v668_v31 = vpop.permute.xlu2 %667 }
 0x25c   :  { %v670_v38 = vmul.f32 %v668_v31, %v3184_v24  ;;  %v672_v3 = vmul.f32 %v668_v31, %v3176_v14  ;;  %v671_v39 = vmul.f32 %v668_v31, %v3192_v58 }
 0x26b   :  { %v3361_v48 = vpop.permute.xlu0 %645 }
 0x26c   :  { %v3363_v16 = vpop.permute.xlu1 %641 }
 0x273   :  { %v678_v28 = vpop.permute.xlu0 %677 }
 0x274   :  { %v658_v54 = vpop.permute.xlu1 %657  ;;  %v680_v57 = vmul.f32 %v678_v28, %v3208_v11  ;;  %v682_v63 = vmul.f32 %v678_v28, %v3197_v27  ;;  %v681_v14 = vmul.f32 %v678_v28, %v3210_v32  ;;  %v93_v32 = vmul.f32 %v3088_v60, %v3060_v34 }
 0x275   :  { %v660_v20 = vmul.f32 %v658_v54, %v3182_v1  ;;  %v662_v17 = vmul.f32 %v658_v54, %v3172_v29  ;;  %v661_v10 = vmul.f32 %v658_v54, %v3194_v45  ;;  %v3377_v29 = vpop.permute.xlu2 %696 }
 0x276   :  { %4851 = vst [vmem:[#allocation31_spill] sm:$0xff] %v3377_v29 }
 0x277   :  { %v673_v12 = vadd.f32 %v670_v38, %v660_v20  ;;  %v675_v0 = vadd.f32 %v672_v3, %v662_v17  ;;  %v674_v47 = vadd.f32 %v671_v39, %v661_v10  ;;  %v4856_v39 = vmov 10  }
 0x278   :  { %v4857_v10 = vmov 4  }
 0x279   :  { %v683_v24 = vadd.f32 %v680_v57, %v673_v12  ;;  %v685_v45 = vadd.f32 %v682_v63, %v675_v0  ;;  %v684_v27 = vadd.f32 %v681_v14, %v674_v47  ;;  %v4854_v12 = vmov 2  }
 0x27a   :  { %v4855_v57 = vmov 3   ;;  %v4859_v0 = vmov 12   ;;  %v4860_v63 = vmov 7   ;;  %v4863_v47 = vmov 9  }
 0x27b   :  { %v4864_v14 = vmov 11  }
 0x27c   :  { %v3372_v21 = vpop.permute.xlu0 %55 }
 0x27d   :  { %v688_v42 = vpop.permute.xlu1 %687 }
 0x27e   :  { %v690_v1 = vmul.f32 %v688_v42, %v3224_v25  ;;  %v692_v11 = vmul.f32 %v688_v42, %v3219_v9  ;;  %v691_v58 = vmul.f32 %v688_v42, %v3226_v7  ;;  %v92_v25 = vmul.f32 %v3074_v44, %v3060_v34 }
 0x27f   :  { %v110_v9 = vmul.f32 %v3080_v52, %v3064_v36  ;;  %v111_v34 = vmul.f32 %v3082_v53, %v3064_v36  ;;  %v112_v52 = vmul.f32 %v3100_v49, %v3064_v36  ;;  %v744_v36 = vld [vmem:[%s4672_s4] sm:$0xf]  ;;  %v4858_v42 = vmov 6  }
 0x280   :  { %v693_v22 = vadd.f32 %v690_v1, %v683_v24  ;;  %v695_v59 = vadd.f32 %v692_v11, %v685_v45  ;;  %v694_v44 = vadd.f32 %v691_v58, %v684_v27  ;;  %v3415_v49 = vld [vmem:[%s4671_s3] sm:$0xf]  ;;  %v4861_v24 = vmov 8  }
 0x281   :  { %v4862_v1 = vmov 17   ;;  %v129_v11 = vmul.f32 %v3090_v61, %v3058_v33  ;;  %v4866_v45 = vmov 13   ;;  %v4867_v27 = vmov 16  }
 0x282   :  { %v705_v56 = vmul.f32 %v3377_v29, %v693_v22  ;;  %v4865_v22 = vmov 14   ;;  %v203_v61 = vsel %vm202_vm1, %v3257_v19, %v3261_v30  ;;  %v130_v19 = vmul.f32 %v3092_v62, %v3058_v33 }
 0x284   :  { %711 = vrot.lane.b32.xlu2 %v705_v56, %s2935_s22  ;;  %v63_v7 = vpop.permute.xlu0 %62 }
 0x285   :  { %v72_v31 = vmul.f32 %v3068_v40, %v63_v7  ;;  %v73_v43 = vmul.f32 %v3070_v41, %v63_v7  ;;  %v74_v28 = vmul.f32 %v3084_v55, %v63_v7  ;;  %v3394_v54 = vpop.permute.xlu1 %698 }
 0x286   :  { %4852 = vst [vmem:[#allocation32_spill] sm:$0xff] %v3394_v54  ;;  %v707_v60 = vmul.f32 %v3394_v54, %v695_v59  ;;  %v3404_v38 = vsel %vm700_vm5, %v3377_v29, %v3394_v54  ;;  %v4869_v59 = vmov 19  }
 0x287   :  { %4853 = vst [vmem:[#allocation33_spill] sm:$0xff] %v3404_v38  ;;  %v94_v40 = vadd.f32 %v91_v4, %v72_v31  ;;  %v95_v41 = vadd.f32 %v92_v25, %v73_v43  ;;  %v96_v20 = vadd.f32 %v93_v32, %v74_v28  ;;  %v706_v55 = vmul.f32 %v3404_v38, %v694_v44 }
 0x288   :  { %715 = vrot.lane.b32.xlu1 %v707_v60, %s2935_s22  ;;  %v4868_v32 = vmov 15   ;;  %v345_v31 = vsel %vm344_vm7, %v3273_v6, %v3277_v5  ;;  %v131_v44 = vmul.f32 %v3102_v8, %v3058_v33 }
 0x289   :  { %v113_v3 = vadd.f32 %v110_v9, %v94_v40  ;;  %v114_v17 = vadd.f32 %v111_v34, %v95_v41  ;;  %v115_v53 = vadd.f32 %v112_v52, %v96_v20  ;;  %713 = vrot.lane.b32.xlu0 %v706_v55, %s2935_s22  ;;  %v276_v9 = vsel %vm275_vm6, %v3269_v26, %v3267_v50  ;;  %v4870_v40 = vld [vmem:[#allocation10_spill] sm:$0xff] }
 0x28a   :  { %v3471_v6 = vsel %vm142_vm8, %v3062_v35, %v4870_v40 }
 0x28b   :  { %v132_v58 = vadd.f32 %v129_v11, %v113_v3  ;;  %v133_v26 = vadd.f32 %v130_v19, %v114_v17  ;;  %v134_v52 = vadd.f32 %v131_v44, %v115_v53  ;;  %4871 = vst [vmem:[#allocation34_spill] sm:$0xff] %v3471_v6  ;;  %v4872_v53 = vld [vmem:[#allocation20_spill] sm:$0xff]  ;;  %v4876_v19 = vld [vmem:[#allocation25_spill] sm:$0xff] }
 0x28c   :  { %747 = vperm.xlu2 %2725, %v744_v36   ;;  %v204_v36 = vsel %vm202_vm1, %v3261_v30, %v4872_v53  ;;  %v4877_v44 = vld [vmem:[#allocation24_spill] sm:$0xff] }
 0x28d   :  { %v147_v56 = vmul.f32 %v3062_v35, %v132_v58  ;;  %v148_v41 = vmul.f32 %v3471_v6, %v133_v26  ;;  %v149_v20 = vmul.f32 %v4870_v40, %v134_v52 }
 0x28f   :  { %v150_v4 = vadd.f32 %v147_v56, %v3372_v21  ;;  %v151_v8 = vadd.f32 %v148_v41, %v3372_v21  ;;  %v152_v33 = vadd.f32 %v149_v20, %v3372_v21  ;;  %v4873_v56 = vld [vmem:[#allocation22_spill] sm:$0xff]  ;;  %v4880_v20 = vld [vmem:[#allocation29_spill] sm:$0xff] }
 0x290   :  { %772 = vperm.xlu1 %2726, %v3415_v49  }
 0x291   :  { %754 = vperm.xlu0 %2723, %v3415_v49   ;;  %v208_v25 = vadd.f32 %v203_v61, %v150_v4  ;;  %v209_v11 = vadd.f32 %v204_v36, %v151_v8  ;;  %v210_v58 = vadd.f32 %v4872_v53, %v152_v33  ;;  %v277_v4 = vsel %vm275_vm6, %v3267_v50, %v4873_v56 }
 0x293   :  { %v281_v7 = vadd.f32 %v276_v9, %v208_v25  ;;  %v282_v61 = vadd.f32 %v277_v4, %v209_v11  ;;  %v283_v25 = vadd.f32 %v4873_v56, %v210_v58  ;;  %v4874_v9 = vld [vmem:[#allocation23_spill] sm:$0xff]  ;;  %v4881_v56 = vmov 24  }
 0x294   :  { %2727 = vset.pattern.permute.xlu2 %v4854_v12  ;;  %v346_v21 = vsel %vm344_vm7, %v3277_v5, %v4874_v9  ;;  %v520_v5 = vsel %vm519_vm9, %v3282_v13, %v4877_v44 }
 0x295   :  { %790 = vperm.xlu2 %2727, %v3415_v49   ;;  %v350_v43 = vadd.f32 %v345_v31, %v281_v7  ;;  %v351_v7 = vadd.f32 %v346_v21, %v282_v61  ;;  %v352_v30 = vadd.f32 %v4874_v9, %v283_v25  ;;  %v4875_v31 = vld [vmem:[#allocation21_spill] sm:$0xff]  ;;  %v4885_v9 = vmov 20  }
 0x296   :  { %v4886_v21 = vmov 34  }
 0x297   :  { %v423_v28 = vadd.f32 %v3265_v2, %v350_v43  ;;  %v419_v43 = vsel %vm142_vm8, %v3265_v2, %v4875_v31  ;;  %v425_v50 = vadd.f32 %v4875_v31, %v352_v30  ;;  %v4879_v2 = vld [vmem:[#allocation30_spill] sm:$0xff]  ;;  %v4888_v30 = vmov 25  }
 0x298   :  { %2728 = vset.pattern.permute.xlu1 %v4855_v57  ;;  %v590_v41 = vsel %vm589_vm10, %v3321_v15, %v4879_v2  ;;  %v4889_v31 = vmov 23  }
 0x299   :  { %808 = vperm.xlu1 %2728, %v3415_v49   ;;  %2734 = vset.pattern.permute.xlu0 %v4856_v39  ;;  %v525_v34 = vadd.f32 %v3282_v13, %v423_v28  ;;  %v424_v28 = vadd.f32 %v419_v43, %v351_v7  ;;  %v649_v13 = vsel %vm647_vm11, %v3359_v18, %v3361_v48  ;;  %v4887_v7 = vmov 21  }
 0x29a   :  { %908 = vperm.xlu0 %2734, %v3415_v49   ;;  %v4890_v43 = vmov 30  }
 0x29b   :  { %v595_v60 = vadd.f32 %v3321_v15, %v525_v34  ;;  %v521_v34 = vsel %vm519_vm9, %v4877_v44, %v4876_v19  ;;  %v526_v26 = vadd.f32 %v520_v5, %v424_v28  ;;  %v4893_v19 = vmov 32  }
 0x29c   :  { %v527_v52 = vadd.f32 %v521_v34, %v425_v50  ;;  %v4892_v50 = vmov 26   ;;  %v4894_v34 = vmov 28   ;;  %v4895_v5 = vmov 5  }
 0x29d   :  { %2729 = vset.pattern.permute.xlu2 %v4857_v10  ;;  %v653_v62 = vadd.f32 %v3363_v16, %v595_v60  ;;  %v4878_v60 = vmov 22   ;;  %v596_v8 = vadd.f32 %v590_v41, %v526_v26 }
 0x29e   :  { %831 = vperm.xlu2 %2729, %v3415_v49  }
 0x2a1   :  { %2730 = vset.pattern.permute.xlu1 %v4858_v42 }
 0x2a2   :  { %851 = vperm.xlu1 %2730, %v3415_v49   ;;  %2736 = vset.pattern.permute.xlu0 %v4859_v0 }
 0x2a3   :  { %948 = vperm.xlu0 %2736, %v3415_v49  }
 0x2a6   :  { %2731 = vset.pattern.permute.xlu2 %v4860_v63 }
 0x2a7   :  { %861 = vperm.xlu2 %2731, %v3415_v49  }
 0x2aa   :  { %2732 = vset.pattern.permute.xlu1 %v4861_v24 }
 0x2ab   :  { %888 = vperm.xlu1 %2732, %v3415_v49   ;;  %2741 = vset.pattern.permute.xlu0 %v4862_v1 }
 0x2af   :  { %2733 = vset.pattern.permute.xlu2 %v4863_v47 }
 0x2b0   :  { %898 = vperm.xlu2 %2733, %v3415_v49  }
 0x2b3   :  { %2735 = vset.pattern.permute.xlu1 %v4864_v14 }
 0x2b4   :  { %918 = vperm.xlu1 %2735, %v3415_v49  }
 0x2b8   :  { %2738 = vset.pattern.permute.xlu2 %v4865_v22 }
 0x2b9   :  { %968 = vperm.xlu2 %2738, %v3415_v49  }
 0x2bc   :  { %2737 = vset.pattern.permute.xlu1 %v4866_v45 }
 0x2bd   :  { %958 = vperm.xlu1 %2737, %v3415_v49  }
 0x2c1   :  { %2740 = vset.pattern.permute.xlu2 %v4867_v27 }
 0x2c2   :  { %1009 = vperm.xlu2 %2740, %v3415_v49  }
 0x2c5   :  { %2739 = vset.pattern.permute.xlu1 %v4868_v32 }
 0x2ca   :  { %2743 = vset.pattern.permute.xlu2 %v4869_v59 }
 0x2de   :  { %v712_v55 = vpop.permute.xlu2 %711 }
 0x2df   :  { %v723_v3 = vadd.f32 %v712_v55, %v653_v62  ;;  %v591_v62 = vsel %vm589_vm10, %v4879_v2, %v4880_v20  ;;  %v4896_v2 = vmov 31  }
 0x2e0   :  { %v597_v33 = vadd.f32 %v591_v62, %v527_v52 }
 0x2e1   :  { %v726_v17 = vmax.f32 %v723_v3, 0.0  ;;  %v648_v3 = vsel %vm647_vm11, %v3363_v16, %v3359_v18  ;;  %v4882_v18 = vmov 27   ;;  %v4883_v16 = vmov 29  }
 0x2e2   :  { %v654_v53 = vadd.f32 %v648_v3, %v596_v8  ;;  %v655_v36 = vadd.f32 %v649_v13, %v597_v33 }
 0x2e3   :  { %732 = vrot.lane.b32.xlu2 %v726_v17, %s2933_s21 }
 0x2e6   :  { %v3543_v28 = vpop.permute.xlu2 %747 }
 0x2e7   :  { %4891 = vst [vmem:[#allocation20_spill] sm:$0xff] %v3543_v28 }
 0x2eb   :  { %1051 = vperm.xlu2 %2743, %v3415_v49  }
 0x2ef   :  { %v3549_v44 = vpop.permute.xlu2 %790 }
 0x2f3   :  { %2746 = vset.pattern.permute.xlu2 %v4878_v60 }
 0x2f4   :  { %1114 = vperm.xlu2 %2746, %v3415_v49  }
 0x2f8   :  { %v3557_v52 = vpop.permute.xlu2 %831 }
 0x2fa   :  { %v716_v17 = vpop.permute.xlu1 %715 }
 0x2fb   :  { %v714_v15 = vpop.permute.xlu0 %713 }
 0x2fc   :  { %v718_v11 = vsel %vm717_vm12, %v712_v55, %v714_v15  ;;  %v719_v58 = vsel %vm717_vm12, %v714_v15, %v716_v17  ;;  %2748 = vset.pattern.permute.xlu2 %v4881_v56  ;;  %v4884_v55 = vmov 18  }
 0x2fd   :  { %v724_v4 = vadd.f32 %v718_v11, %v654_v53  ;;  %v725_v61 = vadd.f32 %v719_v58, %v655_v36  ;;  %1169 = vperm.xlu2 %2748, %v3415_v49  }
 0x2ff   :  { %v727_v25 = vmax.f32 %v724_v4, 0.0  ;;  %v728_v48 = vmax.f32 %v725_v61, 0.0 }
 0x301   :  { %736 = vrot.lane.b32.xlu1 %v728_v48, %s2933_s21  ;;  %734 = vrot.lane.b32.xlu0 %v727_v25, %s2933_s21  ;;  %v3563_v20 = vpop.permute.xlu2 %861 }
 0x302   :  { %v3555_v26 = vpop.permute.xlu1 %772 }
 0x303   :  { %v3575_v13 = vpop.permute.xlu0 %754 }
 0x305   :  { %2751 = vset.pattern.permute.xlu2 %v4882_v18 }
 0x306   :  { %1199 = vperm.xlu2 %2751, %v3415_v49  }
 0x309   :  { %978 = vperm.xlu1 %2739, %v3415_v49   ;;  %1023 = vperm.xlu0 %2741, %v3415_v49  }
 0x30a   :  { %v3570_v8 = vpop.permute.xlu2 %898 }
 0x30b   :  { %v3561_v41 = vpop.permute.xlu1 %808 }
 0x30c   :  { %v3580_v17 = vpop.permute.xlu0 %908 }
 0x30d   :  { %4897 = vst [vmem:[#allocation22_spill] sm:$0xff] %v3580_v17 }
 0x30e   :  { %2753 = vset.pattern.permute.xlu2 %v4883_v16 }
 0x30f   :  { %1239 = vperm.xlu2 %2753, %v3415_v49  }
 0x311   :  { %2742 = vset.pattern.permute.xlu1 %v4884_v55  ;;  %2744 = vset.pattern.permute.xlu0 %v4885_v9 }
 0x312   :  { %1037 = vperm.xlu1 %2742, %v3415_v49   ;;  %1078 = vperm.xlu0 %2744, %v3415_v49  }
 0x313   :  { %v3578_v3 = vpop.permute.xlu2 %968 }
 0x314   :  { %v3567_v62 = vpop.permute.xlu1 %851 }
 0x315   :  { %v3586_v11 = vpop.permute.xlu0 %948 }
 0x316   :  { %4900 = vst [vmem:[#allocation25_spill] sm:$0xff] %v3586_v11 }
 0x317   :  { %2759 = vset.pattern.permute.xlu2 %v4886_v21 }
 0x318   :  { %1306 = vperm.xlu2 %2759, %v3415_v49  }
 0x31a   :  { %2745 = vset.pattern.permute.xlu1 %v4887_v7  ;;  %2749 = vset.pattern.permute.xlu0 %v4888_v30 }
 0x31b   :  { %1096 = vperm.xlu1 %2745, %v3415_v49   ;;  %1179 = vperm.xlu0 %2749, %v3415_v49  }
 0x31c   :  { %v1010_v36 = vpop.permute.xlu2 %1009 }
 0x31d   :  { %v3573_v33 = vpop.permute.xlu1 %888 }
 0x320   :  { %2761 = vset.pattern.permute.xlu2 %v4777_v46 }
 0x323   :  { %2747 = vset.pattern.permute.xlu1 %v4889_v31  ;;  %2754 = vset.pattern.permute.xlu0 %v4890_v43 }
 0x324   :  { %1132 = vperm.xlu1 %2747, %v3415_v49   ;;  %1249 = vperm.xlu0 %2754, %v3415_v49  }
 0x326   :  { %v3582_v53 = vpop.permute.xlu1 %918 }
 0x327   :  { %4898 = vst [vmem:[#allocation23_spill] sm:$0xff] %v3582_v53 }
 0x32c   :  { %2750 = vset.pattern.permute.xlu1 %v4892_v50  ;;  %2756 = vset.pattern.permute.xlu0 %v4893_v19 }
 0x32d   :  { %1189 = vperm.xlu1 %2750, %v3415_v49   ;;  %1286 = vperm.xlu0 %2756, %v3415_v49  }
 0x32f   :  { %v3584_v15 = vpop.permute.xlu1 %958 }
 0x330   :  { %4899 = vst [vmem:[#allocation21_spill] sm:$0xff] %v3584_v15 }
 0x335   :  { %2752 = vset.pattern.permute.xlu1 %v4894_v34  ;;  %2757 = vset.pattern.permute.xlu0 %v4895_v5 }
 0x336   :  { %1229 = vperm.xlu1 %2752, %v3415_v49   ;;  %841 = vperm.xlu0 %2757, %v3415_v49  }
 0x33d   :  { %v733_v58 = vpop.permute.xlu2 %732 }
 0x33e   :  { %2755 = vset.pattern.permute.xlu1 %v4896_v2 }
 0x33f   :  { %1259 = vperm.xlu1 %2755, %v3415_v49  }
 0x345   :  { %v3590_v48 = vpop.permute.xlu2 %1051 }
 0x347   :  { %2758 = vset.pattern.permute.xlu1 %v4775_v51 }
 0x348   :  { %1296 = vperm.xlu1 %2758, %v3415_v49  }
 0x34e   :  { %v3594_v46 = vpop.permute.xlu2 %1114 }
 0x350   :  { %2760 = vset.pattern.permute.xlu1 %v4773_v37 }
 0x351   :  { %1316 = vperm.xlu1 %2760, %v3415_v49  }
 0x357   :  { %v3598_v2 = vpop.permute.xlu2 %1169 }
 0x359   :  { %2762 = vset.pattern.permute.xlu1 %v4850_v23 }
 0x373   :  { %v737_v4 = vpop.permute.xlu1 %736  ;;  %v735_v49 = vpop.permute.xlu0 %734 }
 0x374   :  { %v738_v61 = vsel %vm700_vm5, %v733_v58, %v735_v49  ;;  %v739_v25 = vsel %vm700_vm5, %v735_v49, %v737_v4  ;;  %v1366_v58 = vld [vmem:[%s4670_s2] sm:$0xf]  ;;  %v3607_v49 = vpop.permute.xlu2 %1199 }
 0x375   :  { %742 = vst [vmem:[#allocation2 + $0x8] sm:$0xf] %v738_v61  ;;  %1369 = vperm.xlu2 %2761, %v1366_v58  }
 0x376   :  { %743 = vst [vmem:[#allocation2 + $0x10] sm:$0xf] %v739_v25 }
 0x377   :  { %4902 = vst [vmem:[#allocation30_spill] sm:$0xff] %v3607_v49 }
 0x37b   :  { %v1024_v37 = vpop.permute.xlu0 %1023  ;;  %v3592_v51 = vpop.permute.xlu1 %978 }
 0x37c   :  { %4901 = vst [vmem:[#allocation24_spill] sm:$0xff] %v3592_v51 }
 0x37d   :  { %2763 = vset.pattern.permute.xlu2 %v4854_v12  ;;  %v1094_v19 = vld [vmem:[#allocation2 + $0x9] ss:$8 sm:$0x7]  ;;  %v1007_v16 = vld [vmem:[#allocation2 + $0x8] ss:$8 sm:$0x3]  ;;  %v3620_v12 = vpop.permute.xlu2 %1239 }
 0x37e   :  { %v1021_v34 = vld [vmem:[#allocation2 + $0x9] ss:$8 sm:$0x3]  ;;  %v3614_v18 = vperm.slane %v1094_v19, 0  ;;  %v1013_v50 = vperm.slane %v1007_v16, 0  ;;  %v1014_v56 = vperm.slane %v1007_v16, 1 }
 0x37f   :  { %v750_v43 = vld [vmem:[#allocation2] ss:$8 sm:$0x7]  ;;  %v806_v31 = vld [vmem:[#allocation2 + $0x3] ss:$8 sm:$0x7] }
 0x380   :  { %4904 = vst [vmem:[#allocation35_spill] sm:$0xff] %v3614_v18  ;;  %v1027_v60 = vperm.slane %v1021_v34, 0  ;;  %v770_v59 = vld [vmem:[#allocation2 + $0x1] ss:$8 sm:$0x7]  ;;  %v3622_v9 = vperm.slane %v1094_v19, 1  ;;  %v3630_v16 = vmul.f32 %v3620_v12, %v3614_v18  ;;  %v3636_v14 = vmul.f32 %v1013_v50, %v1010_v36 }
 0x381   :  { %v1028_v7 = vperm.slane %v1021_v34, 1  ;;  %v1035_v55 = vld [vmem:[#allocation2 + $0xa] ss:$8 sm:$0x3]  ;;  %v3624_v27 = vperm.slane %v750_v43, 1  ;;  %v3626_v32 = vperm.slane %v1094_v19, 2  ;;  %v3638_v22 = vmul.f32 %v1014_v56, %v1010_v36 }
 0x382   :  { %v3632_v45 = vperm.slane %v806_v31, 1  ;;  %v3634_v1 = vperm.slane %v750_v43, 2  ;;  %v3640_v0 = vperm.slane %v770_v59, 1  ;;  %v3642_v34 = vperm.slane %v770_v59, 2 }
 0x383   :  { %v788_v35 = vld [vmem:[#allocation2 + $0x2] ss:$8 sm:$0x7]  ;;  %v1031_v28 = vmul.f32 %v1027_v60, %v1024_v37  ;;  %v3644_v19 = vperm.slane %v806_v31, 0  ;;  %v3646_v6 = vperm.slane %v806_v31, 2  ;;  %v1041_v40 = vperm.slane %v1035_v55, 0 }
 0x384   :  { %v1038_v5 = vpop.permute.xlu1 %1037  ;;  %v3596_v23 = vpop.permute.xlu0 %1078  ;;  %4907 = vst [vmem:[#allocation38_spill] sm:$0xff] %v3634_v1  ;;  %v3648_v47 = vmul.f32 %v1028_v7, %v1024_v37  ;;  %v1042_v63 = vperm.slane %v1035_v55, 1  ;;  %v3650_v24 = vperm.slane %v750_v43, 0  ;;  %v765_v56 = vmul.f32 %v3624_v27, %v3575_v13 }
 0x385   :  { %4908 = vst [vmem:[#allocation39_spill] sm:$0xff] %v3642_v34  ;;  %v3656_v50 = vmul.f32 %v3592_v51, %v3632_v45  ;;  %v3658_v36 = vmul.f32 %v1041_v40, %v1038_v5  ;;  %v3660_v60 = vperm.slane %v788_v35, 2  ;;  %v766_v31 = vmul.f32 %v3634_v1, %v3575_v13 }
 0x386   :  { %v3664_v10 = vmul.f32 %v1042_v63, %v1038_v5  ;;  %v3666_v37 = vperm.slane %v788_v35, 1  ;;  %v783_v55 = vmul.f32 %v3640_v0, %v3555_v26  ;;  %v784_v7 = vmul.f32 %v3642_v34, %v3555_v26 }
 0x387   :  { %v3672_v43 = vperm.slane %v770_v59, 0  ;;  %v3674_v42 = vperm.slane %v788_v35, 0  ;;  %v952_v40 = vmul.f32 %v3586_v11, %v3624_v27  ;;  %v962_v57 = vmul.f32 %v3584_v15, %v3640_v0 }
 0x388   :  { %v834_v5 = vmul.f32 %v3557_v52, %v3650_v24  ;;  %v835_v29 = vmul.f32 %v3557_v52, %v3624_v27  ;;  %v786_v39 = vadd.f32 %v783_v55, %v765_v56  ;;  %v787_v59 = vadd.f32 %v784_v7, %v766_v31 }
 0x389   :  { %v836_v35 = vmul.f32 %v3557_v52, %v3634_v1  ;;  %v856_v38 = vmul.f32 %v3567_v62, %v3660_v60  ;;  %v866_v51 = vmul.f32 %v3563_v20, %v3646_v6  ;;  %v865_v53 = vmul.f32 %v3563_v20, %v3632_v45 }
 0x38a   :  { %v801_v56 = vmul.f32 %v3666_v37, %v3549_v44  ;;  %v855_v52 = vmul.f32 %v3567_v62, %v3666_v37  ;;  %v854_v55 = vmul.f32 %v3567_v62, %v3674_v42  ;;  %v965_v7 = vadd.f32 %v962_v57, %v952_v40  ;;  %v1049_v62 = vld [vmem:[#allocation2 + $0xb] ss:$8 sm:$0x3] }
 0x38b   :  { %v802_v1 = vmul.f32 %v3660_v60, %v3549_v44  ;;  %v864_v17 = vmul.f32 %v3563_v20, %v3644_v19  ;;  %v764_v20 = vmul.f32 %v3650_v24, %v3575_v13  ;;  %v782_v40 = vmul.f32 %v3672_v43, %v3555_v26 }
 0x38c   :  { %v800_v13 = vmul.f32 %v3674_v42, %v3549_v44  ;;  %v1034_v26 = vadd.f32 %v3648_v47, %v3638_v22  ;;  %v818_v44 = vmul.f32 %v3644_v19, %v3561_v41 }
 0x38d   :  { %v3603_v21 = vpop.permute.xlu1 %1096  ;;  %v3605_v4 = vpop.permute.xlu0 %1179  ;;  %v805_v57 = vadd.f32 %v802_v1, %v787_v59  ;;  %v1033_v1 = vadd.f32 %v1031_v28, %v3636_v14  ;;  %v1056_v14 = vperm.slane %v1049_v62, 1 }
 0x38e   :  { %v1048_v47 = vadd.f32 %v3664_v10, %v1034_v26 }
 0x38f   :  { %v1047_v28 = vadd.f32 %v3658_v36, %v1033_v1 }
 0x396   :  { %v3610_v61 = vpop.permute.xlu1 %1132  ;;  %v3612_v25 = vpop.permute.xlu0 %1249 }
 0x397   :  { %4903 = vst [vmem:[#allocation29_spill] sm:$0xff] %v3612_v25 }
 0x39e   :  { %v4912_v26 = vld [vmem:[#allocation29_spill] sm:$0xff] }
 0x39f   :  { %v3616_v30 = vpop.permute.xlu1 %1189  ;;  %v3618_v58 = vpop.permute.xlu0 %1286 }
 0x3a0   :  { %4905 = vst [vmem:[#allocation36_spill] sm:$0xff] %v3616_v30 }
 0x3a1   :  { %4906 = vst [vmem:[#allocation37_spill] sm:$0xff] %v3618_v58 }
 0x3a8   :  { %v3680_v63 = vpop.permute.xlu1 %1229  ;;  %v842_v54 = vpop.permute.xlu0 %841 }
 0x3a9   :  { %v844_v18 = vmul.f32 %v842_v54, %v3672_v43  ;;  %v845_v58 = vmul.f32 %v842_v54, %v3640_v0  ;;  %v846_v49 = vmul.f32 %v842_v54, %v3642_v34  ;;  %v804_v54 = vadd.f32 %v801_v56, %v786_v39 }
 0x3ab   :  { %v847_v31 = vadd.f32 %v844_v18, %v834_v5  ;;  %v848_v15 = vadd.f32 %v845_v58, %v835_v29  ;;  %v849_v11 = vadd.f32 %v846_v49, %v836_v35  ;;  %v972_v18 = vmul.f32 %v3578_v3, %v3666_v37  ;;  %v1076_v49 = vld [vmem:[#allocation2 + $0x8] ss:$8 sm:$0x7]  ;;  %v1112_v35 = vld [vmem:[#allocation2 + $0xa] ss:$8 sm:$0x7] }
 0x3ac   :  { %v819_v5 = vmul.f32 %v3632_v45, %v3561_v41  ;;  %v820_v29 = vmul.f32 %v3646_v6, %v3561_v41  ;;  %v3729_v59 = vperm.slane %v1076_v49, 1  ;;  %v3741_v22 = vperm.slane %v1076_v49, 0 }
 0x3ad   :  { %v857_v34 = vadd.f32 %v854_v55, %v847_v31  ;;  %v859_v30 = vadd.f32 %v856_v38, %v849_v11  ;;  %v858_v25 = vadd.f32 %v855_v52, %v848_v15  ;;  %v975_v38 = vadd.f32 %v972_v18, %v965_v7 }
 0x3ae   :  { %v3713_v39 = vadd.f32 %v819_v5, %v804_v54  ;;  %v3719_v15 = vadd.f32 %v820_v29, %v805_v57  ;;  %v1089_v52 = vmul.f32 %v3729_v59, %v3596_v23  ;;  %v1243_v7 = vmul.f32 %v3620_v12, %v3622_v9 }
 0x3af   :  { %v867_v58 = vadd.f32 %v864_v17, %v857_v34  ;;  %v869_v56 = vadd.f32 %v866_v51, %v859_v30  ;;  %v868_v31 = vadd.f32 %v865_v53, %v858_v25  ;;  %v1055_v17 = vperm.slane %v1049_v62, 0  ;;  %v1130_v53 = vld [vmem:[#allocation2 + $0xb] ss:$8 sm:$0x7] }
 0x3b0   :  { %4909 = vst [vmem:[#allocation40_spill] sm:$0xff] %v3713_v39  ;;  %v785_v34 = vadd.f32 %v782_v40, %v764_v20  ;;  %v1107_v51 = vmul.f32 %v3622_v9, %v3603_v21  ;;  %v3735_v30 = vperm.slane %v1112_v35, 1  ;;  %v985_v55 = vadd.f32 %v3656_v50, %v975_v38  ;;  %v4911_v40 = vld [vmem:[#allocation15_spill] sm:$0xff]  ;;  %v4925_v39 = vld [vmem:[#allocation24_spill] sm:$0xff] }
 0x3b1   :  { %v3722_v11 = vpop.permute.xlu1 %1259  ;;  %873 = vrot.lane.b32.xlu1 %v867_v58, %s2903_s6  ;;  %877 = vrot.lane.b32.xlu0 %v869_v56, %s2903_s6  ;;  %v1233_v36 = vmul.f32 %v3680_v63, %v3729_v59  ;;  %v1059_v54 = vmul.f32 %v1055_v17, %v3590_v48  ;;  %v3753_v5 = vperm.slane %v1130_v53, 1  ;;  %v1232_v10 = vmul.f32 %v3680_v63, %v3741_v22 }
 0x3b2   :  { %875 = vrot.lane.b32.xlu2 %v868_v31, %s2903_s6  ;;  %v803_v25 = vadd.f32 %v800_v13, %v785_v34  ;;  %v1110_v41 = vadd.f32 %v1107_v51, %v1089_v52  ;;  %v1060_v62 = vmul.f32 %v1056_v14, %v3590_v48  ;;  %v3758_v57 = vperm.slane %v1076_v49, 2 }
 0x3b3   :  { %v1061_v50 = vadd.f32 %v1059_v54, %v1047_v28  ;;  %v892_v29 = vmul.f32 %v3573_v33, %v3624_v27  ;;  %v902_v58 = vmul.f32 %v3570_v8, %v3640_v0  ;;  %v1143_v20 = vmul.f32 %v3753_v5, %v3610_v61  ;;  %v4914_v54 = vld [vmem:[#allocation22_spill] sm:$0xff] }
 0x3b4   :  { %v3751_v18 = vadd.f32 %v818_v44, %v803_v25  ;;  %v988_v56 = vmul.f32 %v985_v55, %v4911_v40  ;;  %v1062_v31 = vadd.f32 %v1060_v62, %v1048_v47  ;;  %v1125_v38 = vmul.f32 %v3735_v30, %v3594_v46  ;;  %v4913_v25 = vld [vmem:[#allocation36_spill] sm:$0xff] }
 0x3b5   :  { %v3769_v1 = vperm.slane %v1112_v35, 0  ;;  %v1184_v48 = vmul.f32 %v3605_v4, %v3626_v32  ;;  %v1246_v49 = vadd.f32 %v1243_v7, %v1233_v36  ;;  %v3774_v27 = vperm.slane %v1112_v35, 2 }
 0x3b6   :  { %4910 = vst [vmem:[#allocation41_spill] sm:$0xff] %v3751_v18  ;;  %v3776_v0 = vperm.slane %v1130_v53, 0  ;;  %v1245_v17 = vadd.f32 %v3630_v16, %v1232_v10  ;;  %v1128_v34 = vadd.f32 %v1125_v38, %v1110_v41  ;;  %v1174_v13 = vmul.f32 %v3598_v2, %v3758_v57  ;;  %v4917_v38 = vld [vmem:[#allocation39_spill] sm:$0xff] }
 0x3b7   :  { %v1253_v51 = vmul.f32 %v4912_v26, %v3735_v30  ;;  %v1263_v14 = vmul.f32 %v3722_v11, %v3753_v5  ;;  %v905_v28 = vadd.f32 %v902_v58, %v892_v29  ;;  %v1252_v16 = vmul.f32 %v4912_v26, %v3769_v1 }
 0x3b8   :  { %v1194_v44 = vmul.f32 %v4913_v25, %v3774_v27  ;;  %v1262_v47 = vmul.f32 %v3722_v11, %v3776_v0  ;;  %v1146_v52 = vadd.f32 %v1143_v20, %v1128_v34  ;;  %v1187_v55 = vadd.f32 %v1184_v48, %v1174_v13  ;;  %v4915_v20 = vld [vmem:[#allocation38_spill] sm:$0xff]  ;;  %v4918_v48 = vld [vmem:[#allocation21_spill] sm:$0xff] }
 0x3b9   :  { %1065 = vrot.lane.b32.xlu1 %v1061_v50, %s2890_s9  ;;  %995 = vrot.lane.b32.xlu0 %v988_v56, %s2916_s14  ;;  %v3795_v7 = vperm.slane %v1130_v53, 2  ;;  %v1256_v36 = vadd.f32 %v1253_v51, %v1246_v49  ;;  %v912_v41 = vmul.f32 %v4914_v54, %v3666_v37  ;;  %v1234_v10 = vmul.f32 %v3680_v63, %v3758_v57  ;;  %v4919_v63 = vld [vmem:[#allocation19_spill] sm:$0xff] }
 0x3ba   :  { %1067 = vrot.lane.b32.xlu2 %v1062_v31, %s2890_s9  ;;  %v3787_v35 = vpop.permute.xlu1 %1296  ;;  %v1255_v62 = vadd.f32 %v1252_v16, %v1245_v17  ;;  %v891_v50 = vmul.f32 %v3573_v33, %v3650_v24  ;;  %v901_v29 = vmul.f32 %v3570_v8, %v3672_v43  ;;  %v4916_v31 = vld [vmem:[#allocation25_spill] sm:$0xff]  ;;  %v963_v49 = vmul.f32 %v4918_v48, %v4917_v38  ;;  %v4920_v51 = vld [vmem:[#allocation23_spill] sm:$0xff] }
 0x3bb   :  { %v1266_v58 = vadd.f32 %v1263_v14, %v1256_v36  ;;  %v915_v56 = vadd.f32 %v912_v41, %v905_v28  ;;  %v953_v53 = vmul.f32 %v4916_v31, %v4915_v20  ;;  %v1244_v37 = vmul.f32 %v3620_v12, %v3626_v32  ;;  %v4921_v36 = vld [vmem:[#allocation30_spill] sm:$0xff] }
 0x3bc   :  { %v1197_v34 = vadd.f32 %v1194_v44, %v1187_v55  ;;  %v1149_v17 = vmul.f32 %v1146_v52, %v4919_v63  ;;  %v1265_v13 = vadd.f32 %v1262_v47, %v1255_v62  ;;  %v922_v16 = vmul.f32 %v4920_v51, %v3632_v45  ;;  %v3821_v44 = vpop.permute.xlu2 %1306  ;;  %v4922_v45 = vld [vmem:[#allocation37_spill] sm:$0xff] }
 0x3bd   :  { %v1247_v14 = vadd.f32 %v1244_v37, %v1234_v10  ;;  %v1300_v28 = vmul.f32 %v3787_v35, %v3622_v9  ;;  %v1204_v12 = vmul.f32 %v4921_v36, %v3795_v7  ;;  %v904_v47 = vadd.f32 %v901_v29, %v891_v50 }
 0x3be   :  { %v925_v52 = vadd.f32 %v922_v16, %v915_v56  ;;  %v966_v55 = vadd.f32 %v963_v49, %v953_v53  ;;  %v1254_v41 = vmul.f32 %v4912_v26, %v3774_v27  ;;  %v1290_v10 = vmul.f32 %v4922_v45, %v3729_v59  ;;  %v4923_v53 = vld [vmem:[#allocation16_spill] sm:$0xff] }
 0x3bf   :  { %v1264_v62 = vmul.f32 %v3722_v11, %v3795_v7  ;;  %v973_v56 = vmul.f32 %v3578_v3, %v3660_v60  ;;  %v1310_v50 = vmul.f32 %v3821_v44, %v3735_v30  ;;  %v893_v11 = vmul.f32 %v3573_v33, %v4915_v20 }
 0x3c0   :  { %v1303_v29 = vadd.f32 %v1300_v28, %v1290_v10  ;;  %v1257_v26 = vadd.f32 %v1254_v41, %v1247_v14  ;;  %v928_v49 = vmul.f32 %v925_v52, %v4923_v53  ;;  %v903_v18 = vmul.f32 %v3570_v8, %v4917_v38 }
 0x3c1   :  { %1273 = vrot.lane.b32.xlu1 %v1266_v58, %s2931_s18  ;;  %1156 = vrot.lane.b32.xlu0 %v1149_v17, %s2919_s15  ;;  %v1207_v58 = vadd.f32 %v1204_v12, %v1197_v34  ;;  %v911_v17 = vmul.f32 %v4914_v54, %v3674_v42  ;;  %v976_v16 = vadd.f32 %v973_v56, %v966_v55  ;;  %v4924_v12 = vld [vmem:[#allocation27_spill] sm:$0xff]  ;;  %v4927_v56 = vld [vmem:[#allocation33_spill] sm:$0xff] }
 0x3c2   :  { %1271 = vrot.lane.b32.xlu2 %v1265_v13, %s2931_s18  ;;  %v1267_v40 = vadd.f32 %v1264_v62, %v1257_v26  ;;  %v983_v28 = vmul.f32 %v4925_v39, %v3646_v6  ;;  %v1108_v14 = vmul.f32 %v3626_v32, %v3603_v21  ;;  %v1313_v33 = vadd.f32 %v1310_v50, %v1303_v29  ;;  %v4926_v62 = vld [vmem:[#allocation14_spill] sm:$0xff]  ;;  %v4928_v29 = vld [vmem:[#allocation11_spill] sm:$0xff] }
 0x3c3   :  { %v3829_v37 = vpop.permute.xlu1 %1316  ;;  %v914_v13 = vadd.f32 %v911_v17, %v904_v47  ;;  %v1210_v63 = vmul.f32 %v1207_v58, %v4924_v12  ;;  %v921_v20 = vmul.f32 %v4920_v51, %v3644_v19  ;;  %v1090_v52 = vmul.f32 %v3758_v57, %v3596_v23 }
 0x3c4   :  { %v1320_v34 = vmul.f32 %v3829_v37, %v3753_v5  ;;  %v986_v8 = vadd.f32 %v983_v28, %v976_v16  ;;  %v906_v55 = vadd.f32 %v903_v18, %v893_v11  ;;  %v913_v10 = vmul.f32 %v4914_v54, %v3660_v60  ;;  %v4929_v60 = vld [vmem:[#allocation35_spill] sm:$0xff] }
 0x3c5   :  { %v924_v47 = vadd.f32 %v921_v20, %v914_v13  ;;  %v1111_v41 = vadd.f32 %v1108_v14, %v1090_v52  ;;  %v1126_v58 = vmul.f32 %v3774_v27, %v3594_v46  ;;  %v951_v17 = vmul.f32 %v4916_v31, %v3650_v24  ;;  %v4931_v20 = vld [vmem:[#allocation12_spill] sm:$0xff] }
 0x3c6   :  { %v1323_v38 = vadd.f32 %v1320_v34, %v1313_v33  ;;  %v916_v18 = vadd.f32 %v913_v10, %v906_v55  ;;  %v1182_v54 = vmul.f32 %v3605_v4, %v4929_v60  ;;  %v923_v24 = vmul.f32 %v4920_v51, %v3646_v6  ;;  %v3885_v33 = vld [vmem:[%s4669_s1] sm:$0xf] }
 0x3c7   :  { %v927_v26 = vmul.f32 %v924_v47, %v4928_v29  ;;  %v1129_v13 = vadd.f32 %v1126_v58, %v1111_v41  ;;  %v1172_v31 = vmul.f32 %v3598_v2, %v3741_v22  ;;  %v1192_v16 = vmul.f32 %v4913_v25, %v3769_v1  ;;  %v4930_v6 = vld [vmem:[#allocation17_spill] sm:$0xff] }
 0x3c8   :  { %v1326_v50 = vmul.f32 %v1323_v38, %v4927_v56  ;;  %v971_v28 = vmul.f32 %v3578_v3, %v3674_v42  ;;  %v1301_v38 = vmul.f32 %v3787_v35, %v3626_v32  ;;  %v1202_v47 = vmul.f32 %v4921_v36, %v3776_v0 }
 0x3c9   :  { %935 = vrot.lane.b32.xlu1 %v928_v49, %s2915_s13  ;;  %1218 = vrot.lane.b32.xlu0 %v1210_v63, %s2926_s17  ;;  %v1144_v63 = vmul.f32 %v3795_v7, %v3610_v61  ;;  %v961_v49 = vmul.f32 %v4918_v48, %v3672_v43  ;;  %v926_v48 = vadd.f32 %v923_v24, %v916_v18  ;;  %v4935_v24 = vld [vmem:[#allocation32_spill] sm:$0xff] }
 0x3ca   :  { %1275 = vrot.lane.b32.xlu2 %v1267_v40, %s2931_s18  ;;  %v989_v40 = vmul.f32 %v986_v8, %v4926_v62  ;;  %v1185_v34 = vadd.f32 %v1182_v54, %v1172_v31  ;;  %v981_v42 = vmul.f32 %v4925_v39, %v3644_v19  ;;  %v1106_v3 = vmul.f32 %v4929_v60, %v3603_v21  ;;  %v4932_v39 = vld [vmem:[#allocation26_spill] sm:$0xff] }
 0x3cb   :  { %v1147_v43 = vadd.f32 %v1144_v63, %v1129_v13  ;;  %v964_v11 = vadd.f32 %v961_v49, %v951_v17  ;;  %v929_v52 = vmul.f32 %v926_v48, %v4931_v20  ;;  %v1291_v55 = vmul.f32 %v4922_v45, %v3758_v57 }
 0x3cc   :  { %v1195_v14 = vadd.f32 %v1192_v16, %v1185_v34  ;;  %v1088_v32 = vmul.f32 %v3741_v22, %v3596_v23  ;;  %v1311_v19 = vmul.f32 %v3821_v44, %v3774_v27  ;;  %v1321_v21 = vmul.f32 %v3829_v37, %v3795_v7  ;;  %v4937_v34 = vld [vmem:[#allocation28_spill] sm:$0xff] }
 0x3cd   :  { %v1150_v51 = vmul.f32 %v1147_v43, %v4930_v6  ;;  %v974_v8 = vadd.f32 %v971_v28, %v964_v11  ;;  %v1304_v63 = vadd.f32 %v1301_v38, %v1291_v55  ;;  %v1142_v17 = vmul.f32 %v3776_v0, %v3610_v61  ;;  %v4936_v43 = vld [vmem:[#allocation18_spill] sm:$0xff] }
 0x3ce   :  { %v1205_v41 = vadd.f32 %v1202_v47, %v1195_v14  ;;  %v1183_v18 = vmul.f32 %v3605_v4, %v3622_v9  ;;  %v4934_v7 = vmov 10   ;;  %v1173_v61 = vmul.f32 %v3598_v2, %v3729_v59  ;;  %v4945_v38 = vld [vmem:[#allocation10_spill] sm:$0xff] }
 0x3cf   :  { %v984_v10 = vadd.f32 %v981_v42, %v974_v8  ;;  %v1314_v23 = vadd.f32 %v1311_v19, %v1304_v63  ;;  %v1193_v54 = vmul.f32 %v4913_v25, %v3735_v30  ;;  %v1299_v9 = vmul.f32 %v3787_v35, %v4929_v60  ;;  %v4946_v42 = vld [vmem:[#allocation34_spill] sm:$0xff] }
 0x3d0   :  { %v1208_v58 = vmul.f32 %v1205_v41, %v4932_v39  ;;  %v1203_v2 = vmul.f32 %v4921_v36, %v3753_v5  ;;  %v1289_v4 = vmul.f32 %v4922_v45, %v3741_v22  ;;  %v1309_v25 = vmul.f32 %v3821_v44, %v3769_v1  ;;  %v4938_v5 = vld [vmem:[#allocation31_spill] sm:$0xff]  ;;  %v4948_v41 = vld [vmem:[#allocation20_spill] sm:$0xff] }
 0x3d1   :  { %997 = vrot.lane.b32.xlu1 %v989_v40, %s2916_s14  ;;  %1333 = vrot.lane.b32.xlu0 %v1326_v50, %s2935_s22  ;;  %v1109_v40 = vadd.f32 %v1106_v3, %v1088_v32  ;;  %v4933_v50 = vld [vmem:[#allocation13_spill] sm:$0xff]  ;;  %v1324_v49 = vadd.f32 %v1321_v21, %v1314_v23  ;;  %v1319_v11 = vmul.f32 %v3829_v37, %v3776_v0  ;;  %v4939_v14 = vmov 3   ;;  %v4947_v3 = vld [vmem:[#allocation40_spill] sm:$0xff] }
 0x3d2   :  { %933 = vrot.lane.b32.xlu2 %v927_v26, %s2915_s13  ;;  %v987_v57 = vmul.f32 %v984_v10, %v4933_v50  ;;  %v1124_v26 = vmul.f32 %v3769_v1, %v3594_v46  ;;  %v1186_v46 = vadd.f32 %v1183_v18, %v1173_v61  ;;  %v1302_v30 = vadd.f32 %v1299_v9, %v1289_v4  ;;  %v3946_v1 = vpop.permute.xlu2 %1369 }
 0x3d3   :  { %v1327_v31 = vmul.f32 %v1324_v49, %v4935_v24  ;;  %v4940_v22 = vmov 6   ;;  %v4941_v0 = vmov 4   ;;  %v4942_v44 = vmov 8  }
 0x3d4   :  { %v1127_v27 = vadd.f32 %v1124_v26, %v1109_v40  ;;  %v1196_v16 = vadd.f32 %v1193_v54, %v1186_v46  ;;  %v1312_v35 = vadd.f32 %v1309_v25, %v1302_v30  ;;  %v4943_v37 = vmov 7  }
 0x3d5   :  { %v4944_v8 = vmov 9   ;;  %v826_v47 = vmul.f32 %v3719_v15, %v4945_v38  ;;  %v825_v55 = vmul.f32 %v4947_v3, %v4946_v42  ;;  %v4950_v15 = vld [vmem:[#allocation41_spill] sm:$0xff] }
 0x3d6   :  { %v1145_v13 = vadd.f32 %v1142_v17, %v1127_v27  ;;  %v1206_v59 = vadd.f32 %v1203_v2, %v1196_v16  ;;  %v1322_v60 = vadd.f32 %v1319_v11, %v1312_v35  ;;  %v4949_v27 = vld [vmem:[#allocation9_spill] sm:$0xff] }
 0x3d7   :  { %v829_v32 = vadd.f32 %v826_v47, %v4948_v41  ;;  %v828_v63 = vadd.f32 %v825_v55, %v4948_v41  ;;  %v824_v49 = vmul.f32 %v4950_v15, %v4949_v27 }
 0x3d8   :  { %v1148_v48 = vmul.f32 %v1145_v13, %v4936_v43  ;;  %v1209_v28 = vmul.f32 %v1206_v59, %v4937_v34  ;;  %v1325_v36 = vmul.f32 %v1322_v60, %v4938_v5 }
 0x3d9   :  { %1158 = vrot.lane.b32.xlu1 %v1150_v51, %s2919_s15  ;;  %1467 = vperm.xlu0 %2757, %v3885_v33   ;;  %v827_v13 = vadd.f32 %v824_v49, %v4948_v41 }
 0x3da   :  { %937 = vrot.lane.b32.xlu2 %v929_v52, %s2915_s13 }
 0x3e1   :  { %1214 = vrot.lane.b32.xlu1 %v1208_v58, %s2926_s17  ;;  %2770 = vset.pattern.permute.xlu0 %v4934_v7 }
 0x3e2   :  { %993 = vrot.lane.b32.xlu2 %v987_v57, %s2916_s14 }
 0x3e9   :  { %1335 = vrot.lane.b32.xlu1 %v1327_v31, %s2935_s22 }
 0x3ea   :  { %1154 = vrot.lane.b32.xlu2 %v1148_v48, %s2919_s15 }
 0x3f1   :  { %1396 = vperm.xlu1 %2762, %v3885_v33  }
 0x3f2   :  { %1216 = vrot.lane.b32.xlu2 %v1209_v28, %s2926_s17 }
 0x3f9   :  { %2764 = vset.pattern.permute.xlu1 %v4939_v14 }
 0x3fa   :  { %1331 = vrot.lane.b32.xlu2 %v1325_v36, %s2935_s22  ;;  %1434 = vperm.xlu1 %2764, %v3885_v33  }
 0x402   :  { %1415 = vperm.xlu2 %2763, %v3885_v33   ;;  %2766 = vset.pattern.permute.xlu1 %v4940_v22 }
 0x403   :  { %1477 = vperm.xlu1 %2766, %v3885_v33  }
 0x40a   :  { %2765 = vset.pattern.permute.xlu2 %v4941_v0 }
 0x40b   :  { %1457 = vperm.xlu2 %2765, %v3885_v33   ;;  %2768 = vset.pattern.permute.xlu1 %v4942_v44 }
 0x40c   :  { %v876_v45 = vpop.permute.xlu2 %875 }
 0x413   :  { %2767 = vset.pattern.permute.xlu2 %v4943_v37 }
 0x414   :  { %v1068_v51 = vpop.permute.xlu2 %1067  ;;  %1487 = vperm.xlu2 %2767, %v3885_v33  }
 0x41c   :  { %v3954_v52 = vpop.permute.xlu2 %1271  ;;  %2769 = vset.pattern.permute.xlu2 %v4944_v8 }
 0x423   :  { %v874_v10 = vpop.permute.xlu1 %873  ;;  %v878_v40 = vpop.permute.xlu0 %877 }
 0x424   :  { %v1276_v19 = vpop.permute.xlu2 %1275  ;;  %v880_v21 = vsel %vm202_vm1, %v876_v45, %v878_v40  ;;  %v886_v58 = vadd.f32 %v878_v40, %v829_v32  ;;  %v879_v54 = vsel %vm202_vm1, %v874_v10, %v876_v45 }
 0x425   :  { %v885_v17 = vadd.f32 %v880_v21, %v828_v63  ;;  %v884_v46 = vadd.f32 %v879_v54, %v827_v13 }
 0x42b   :  { %v1066_v57 = vpop.permute.xlu1 %1065  ;;  %v996_v61 = vpop.permute.xlu0 %995 }
 0x42c   :  { %v934_v26 = vpop.permute.xlu2 %933  ;;  %v1069_v36 = vsel %vm142_vm8, %v1066_v57, %v1068_v51 }
 0x433   :  { %v1274_v23 = vpop.permute.xlu1 %1273  ;;  %v1157_v59 = vpop.permute.xlu0 %1156 }
 0x434   :  { %v938_v18 = vpop.permute.xlu2 %937 }
 0x435   :  { %v946_v45 = vadd.f32 %v938_v18, %v886_v58 }
 0x43b   :  { %v936_v31 = vpop.permute.xlu1 %935  ;;  %v1219_v32 = vpop.permute.xlu0 %1218 }
 0x43c   :  { %v994_v16 = vpop.permute.xlu2 %993  ;;  %v939_v48 = vsel %vm275_vm6, %v934_v26, %v936_v31  ;;  %v940_v30 = vsel %vm275_vm6, %v936_v31, %v938_v18  ;;  %v1278_v18 = vsel %vm647_vm11, %v1274_v23, %v1276_v19  ;;  %v1277_v19 = vsel %vm647_vm11, %v3954_v52, %v1274_v23 }
 0x43d   :  { %v944_v9 = vadd.f32 %v939_v48, %v884_v46  ;;  %v999_v2 = vsel %vm344_vm7, %v994_v16, %v996_v61  ;;  %v945_v25 = vadd.f32 %v940_v30, %v885_v17 }
 0x43f   :  { %v1004_v4 = vadd.f32 %v999_v2, %v944_v9 }
 0x441   :  { %v1073_v31 = vadd.f32 %v1066_v57, %v1004_v4 }
 0x443   :  { %v998_v11 = vpop.permute.xlu1 %997 }
 0x444   :  { %v1155_v28 = vpop.permute.xlu2 %1154  ;;  %v1000_v35 = vsel %vm344_vm7, %v996_v61, %v998_v11  ;;  %v1006_v55 = vadd.f32 %v998_v11, %v946_v45  ;;  %v1334_v61 = vpop.permute.xlu0 %1333 }
 0x445   :  { %v1005_v60 = vadd.f32 %v1000_v35, %v945_v25  ;;  %v1160_v3 = vsel %vm519_vm9, %v1155_v28, %v1157_v59  ;;  %v1373_v35 = vld [vmem:[#allocation2 + $0x4] ss:$8 sm:$0x7] }
 0x446   :  { %v1075_v40 = vadd.f32 %v1068_v51, %v1006_v55  ;;  %v1165_v51 = vadd.f32 %v1155_v28, %v1073_v31  ;;  %v3993_v45 = vperm.slane %v1373_v35, 0  ;;  %v3999_v55 = vperm.slane %v1373_v35, 2 }
 0x447   :  { %v1074_v47 = vadd.f32 %v1069_v36, %v1005_v60  ;;  %v1394_v36 = vld [vmem:[#allocation2 + $0x5] ss:$8 sm:$0x7] }
 0x449   :  { %v1166_v41 = vadd.f32 %v1160_v3, %v1074_v47  ;;  %v3997_v3 = vperm.slane %v1373_v35, 1 }
 0x44b   :  { %v1159_v10 = vpop.permute.xlu1 %1158 }
 0x44c   :  { %v1217_v63 = vpop.permute.xlu2 %1216  ;;  %v1161_v21 = vsel %vm519_vm9, %v1157_v59, %v1159_v10  ;;  %v1468_v23 = vpop.permute.xlu0 %1467  ;;  %v1413_v10 = vld [vmem:[#allocation2 + $0x6] ss:$8 sm:$0x7] }
 0x44d   :  { %v1167_v17 = vadd.f32 %v1161_v21, %v1075_v40  ;;  %v1221_v26 = vsel %vm589_vm10, %v1217_v63, %v1219_v32  ;;  %v4003_v32 = vperm.slane %v1394_v36, 1  ;;  %v1432_v40 = vld [vmem:[#allocation2 + $0x7] ss:$8 sm:$0x7] }
 0x44f   :  { %v1227_v15 = vadd.f32 %v1221_v26, %v1167_v17 }
 0x451   :  { %v1284_v13 = vadd.f32 %v1278_v18, %v1227_v15  ;;  %v4011_v15 = vperm.slane %v1413_v10, 0  ;;  %v4017_v18 = vperm.slane %v1432_v40, 1 }
 0x453   :  { %v1215_v49 = vpop.permute.xlu1 %1214 }
 0x454   :  { %v1332_v54 = vpop.permute.xlu2 %1331  ;;  %v1220_v2 = vsel %vm589_vm10, %v1215_v49, %v1217_v63  ;;  %v1225_v59 = vadd.f32 %v1215_v49, %v1165_v51 }
 0x455   :  { %v1337_v58 = vsel %vm717_vm12, %v1332_v54, %v1334_v61  ;;  %v1226_v25 = vadd.f32 %v1220_v2, %v1166_v41  ;;  %v4001_v41 = vperm.slane %v1394_v36, 0 }
 0x456   :  { %v1282_v11 = vadd.f32 %v3954_v52, %v1225_v59  ;;  %v4005_v52 = vperm.slane %v1394_v36, 2 }
 0x457   :  { %v1283_v57 = vadd.f32 %v1277_v19, %v1226_v25  ;;  %v1470_v26 = vmul.f32 %v1468_v23, %v4001_v41 }
 0x458   :  { %v3989_v60 = vadd.f32 %v1332_v54, %v1282_v11  ;;  %v1472_v54 = vmul.f32 %v1468_v23, %v4005_v52 }
 0x459   :  { %v3991_v28 = vadd.f32 %v1337_v58, %v1283_v57  ;;  %v4015_v58 = vperm.slane %v1432_v40, 0 }
 0x45b   :  { %v1336_v46 = vpop.permute.xlu1 %1335 }
 0x45c   :  { %v1338_v16 = vsel %vm717_vm12, %v1334_v61, %v1336_v46  ;;  %v3981_v9 = vpop.permute.xlu2 %1415  ;;  %v1471_v61 = vmul.f32 %v1468_v23, %v4003_v32  ;;  %v4021_v46 = vperm.slane %v1413_v10, 2 }
 0x45d   :  { %v3979_v48 = vadd.f32 %v1338_v16, %v1284_v13  ;;  %v4019_v13 = vperm.slane %v1413_v10, 1  ;;  %v4023_v16 = vperm.slane %v1432_v40, 2 }
 0x463   :  { %v3984_v30 = vpop.permute.xlu1 %1396 }
 0x465   :  { %v1458_v4 = vpop.permute.xlu2 %1457 }
 0x466   :  { %v1460_v63 = vmul.f32 %v1458_v4, %v3993_v45  ;;  %v1461_v21 = vmul.f32 %v1458_v4, %v3997_v3  ;;  %v1462_v17 = vmul.f32 %v1458_v4, %v3999_v55 }
 0x468   :  { %v1473_v31 = vadd.f32 %v1470_v26, %v1460_v63  ;;  %v1474_v51 = vadd.f32 %v1471_v61, %v1461_v21  ;;  %v1475_v2 = vadd.f32 %v1472_v54, %v1462_v17  ;;  %v4951_v17 = vmov 12  }
 0x469   :  { %v4952_v26 = vmov 14   ;;  %v4954_v61 = vmov 17   ;;  %v4955_v54 = vmov 13  }
 0x46c   :  { %v3995_v47 = vpop.permute.xlu1 %1434 }
 0x46e   :  { %v1488_v49 = vpop.permute.xlu2 %1487 }
 0x46f   :  { %v1490_v25 = vmul.f32 %v1488_v49, %v4015_v58  ;;  %v1491_v11 = vmul.f32 %v1488_v49, %v4017_v18  ;;  %v1492_v4 = vmul.f32 %v1488_v49, %v4023_v16  ;;  %v4953_v49 = vmov 11  }
 0x475   :  { %v1478_v59 = vpop.permute.xlu1 %1477 }
 0x476   :  { %v1480_v19 = vmul.f32 %v1478_v59, %v4011_v15  ;;  %v1481_v35 = vmul.f32 %v1478_v59, %v4019_v13  ;;  %v1482_v57 = vmul.f32 %v1478_v59, %v4021_v46 }
 0x478   :  { %v1483_v36 = vadd.f32 %v1480_v19, %v1473_v31  ;;  %v1484_v23 = vadd.f32 %v1481_v35, %v1474_v51  ;;  %v1485_v10 = vadd.f32 %v1482_v57, %v1475_v2 }
 0x47a   :  { %v1493_v63 = vadd.f32 %v1490_v25, %v1483_v36  ;;  %v1494_v40 = vadd.f32 %v1491_v11, %v1484_v23  ;;  %v1495_v21 = vadd.f32 %v1492_v4, %v1485_v10 }
 0x47c   :  { %1503 = vrot.lane.b32.xlu0 %v1495_v21, %s2903_s6  ;;  %1501 = vrot.lane.b32.xlu2 %v1494_v40, %s2903_s6 }
 0x47d   :  { %1499 = vrot.lane.b32.xlu1 %v1493_v63, %s2903_s6 }
 0x484   :  { %1534 = vperm.xlu0 %2770, %v3885_v33   ;;  %1524 = vperm.xlu2 %2769, %v3885_v33  }
 0x485   :  { %1514 = vperm.xlu1 %2768, %v3885_v33  }
 0x48c   :  { %2772 = vset.pattern.permute.xlu0 %v4951_v17  ;;  %2774 = vset.pattern.permute.xlu2 %v4952_v26 }
 0x48d   :  { %2771 = vset.pattern.permute.xlu1 %v4953_v49  ;;  %1574 = vperm.xlu0 %2772, %v3885_v33  }
 0x48e   :  { %1544 = vperm.xlu1 %2771, %v3885_v33  }
 0x495   :  { %2777 = vset.pattern.permute.xlu0 %v4954_v61 }
 0x496   :  { %2773 = vset.pattern.permute.xlu1 %v4955_v54 }
 0x4d6   :  { %v4044_v31 = vpop.permute.xlu2 %1501 }
 0x4d7   :  { %4956 = vst [vmem:[#allocation29_spill] sm:$0xff] %v4044_v31 }
 0x4de   :  { %v1525_v25 = vpop.permute.xlu2 %1524 }
 0x4df   :  { %v1527_v19 = vmul.f32 %v1525_v25, %v4001_v41  ;;  %v1528_v35 = vmul.f32 %v1525_v25, %v4003_v32  ;;  %v1529_v21 = vmul.f32 %v1525_v25, %v4005_v52 }
 0x4ee   :  { %v4050_v59 = vpop.permute.xlu0 %1503 }
 0x4ef   :  { %v1500_v51 = vpop.permute.xlu1 %1499  ;;  %4957 = vst [vmem:[#allocation36_spill] sm:$0xff] %v4050_v59 }
 0x4f0   :  { %v4048_v2 = vsel %vm202_vm1, %v1500_v51, %v4044_v31 }
 0x4f6   :  { %v1535_v36 = vpop.permute.xlu0 %1534 }
 0x4f7   :  { %v1515_v11 = vpop.permute.xlu1 %1514  ;;  %v1537_v63 = vmul.f32 %v1535_v36, %v4011_v15  ;;  %v1538_v40 = vmul.f32 %v1535_v36, %v4019_v13  ;;  %v1539_v7 = vmul.f32 %v1535_v36, %v4021_v46 }
 0x4f8   :  { %v1517_v57 = vmul.f32 %v1515_v11, %v3993_v45  ;;  %v1518_v4 = vmul.f32 %v1515_v11, %v3997_v3  ;;  %v1519_v51 = vmul.f32 %v1515_v11, %v3999_v55 }
 0x4fa   :  { %v1530_v23 = vadd.f32 %v1527_v19, %v1517_v57  ;;  %v1531_v10 = vadd.f32 %v1528_v35, %v1518_v4  ;;  %v1532_v44 = vadd.f32 %v1529_v21, %v1519_v51 }
 0x4fc   :  { %v1540_v61 = vadd.f32 %v1537_v63, %v1530_v23  ;;  %v1541_v49 = vadd.f32 %v1538_v40, %v1531_v10  ;;  %v1542_v22 = vadd.f32 %v1539_v7, %v1532_v44  ;;  %v4960_v7 = vmov 18  }
 0x500   :  { %v1545_v54 = vpop.permute.xlu1 %1544 }
 0x501   :  { %v1547_v26 = vmul.f32 %v1545_v54, %v4015_v58  ;;  %v1548_v17 = vmul.f32 %v1545_v54, %v4017_v18  ;;  %v1549_v57 = vmul.f32 %v1545_v54, %v4023_v16  ;;  %v1575_v54 = vpop.permute.xlu0 %1574 }
 0x502   :  { %v1577_v10 = vmul.f32 %v1575_v54, %v3993_v45  ;;  %v1578_v63 = vmul.f32 %v1575_v54, %v3997_v3  ;;  %v1579_v51 = vmul.f32 %v1575_v54, %v3999_v55 }
 0x503   :  { %v1550_v19 = vadd.f32 %v1547_v26, %v1540_v61  ;;  %v1551_v35 = vadd.f32 %v1548_v17, %v1541_v49  ;;  %v1552_v11 = vadd.f32 %v1549_v57, %v1542_v22  ;;  %v4958_v26 = vmov 15  }
 0x504   :  { %v4959_v17 = vmov 16  }
 0x505   :  { %v1554_v4 = vmul.f32 %v1551_v35, %v4923_v53  ;;  %v1553_v25 = vmul.f32 %v1550_v19, %v4928_v29  ;;  %v1555_v23 = vmul.f32 %v1552_v11, %v4931_v20 }
 0x507   :  { %1561 = vrot.lane.b32.xlu1 %v1554_v4, %s2915_s13  ;;  %1559 = vrot.lane.b32.xlu2 %v1553_v25, %s2915_s13 }
 0x50f   :  { %1584 = vperm.xlu1 %2773, %v3885_v33   ;;  %1563 = vrot.lane.b32.xlu2 %v1555_v23, %s2915_s13 }
 0x517   :  { %2775 = vset.pattern.permute.xlu1 %v4958_v26  ;;  %1594 = vperm.xlu2 %2774, %v3885_v33  }
 0x518   :  { %1604 = vperm.xlu1 %2775, %v3885_v33  }
 0x51f   :  { %2776 = vset.pattern.permute.xlu2 %v4959_v17 }
 0x520   :  { %2778 = vset.pattern.permute.xlu1 %v4960_v7 }
 0x561   :  { %v1560_v44 = vpop.permute.xlu2 %1559 }
 0x569   :  { %v4082_v61 = vpop.permute.xlu2 %1563 }
 0x56a   :  { %4962 = vst [vmem:[#allocation38_spill] sm:$0xff] %v4082_v61 }
 0x571   :  { %v1595_v35 = vpop.permute.xlu2 %1594 }
 0x572   :  { %v1597_v25 = vmul.f32 %v1595_v35, %v4011_v15  ;;  %v1598_v11 = vmul.f32 %v1595_v35, %v4019_v13 }
 0x579   :  { %v4076_v49 = vpop.permute.xlu1 %1561 }
 0x57a   :  { %4961 = vst [vmem:[#allocation22_spill] sm:$0xff] %v4076_v49  ;;  %v4080_v22 = vsel %vm275_vm6, %v1560_v44, %v4076_v49  ;;  %v1599_v44 = vmul.f32 %v1595_v35, %v4021_v46 }
 0x581   :  { %v1585_v36 = vpop.permute.xlu1 %1584 }
 0x582   :  { %v1587_v40 = vmul.f32 %v1585_v36, %v4001_v41  ;;  %v1588_v21 = vmul.f32 %v1585_v36, %v4003_v32  ;;  %v1589_v19 = vmul.f32 %v1585_v36, %v4005_v52 }
 0x584   :  { %v1590_v57 = vadd.f32 %v1587_v40, %v1577_v10  ;;  %v1591_v4 = vadd.f32 %v1588_v21, %v1578_v63  ;;  %v1592_v23 = vadd.f32 %v1589_v19, %v1579_v51  ;;  %v4963_v21 = vld [vmem:[#allocation15_spill] sm:$0xff] }
 0x586   :  { %v1600_v7 = vadd.f32 %v1597_v25, %v1590_v57  ;;  %v1601_v17 = vadd.f32 %v1598_v11, %v1591_v4  ;;  %v1602_v20 = vadd.f32 %v1599_v44, %v1592_v23  ;;  %v1634_v4 = vld [vmem:[#allocation2 + $0xc] ss:$8 sm:$0x3]  ;;  %v1649_v25 = vld [vmem:[#allocation2 + $0xd] ss:$8 sm:$0x3] }
 0x587   :  { %v1664_v11 = vld [vmem:[#allocation2 + $0xe] ss:$8 sm:$0x3]  ;;  %v1640_v23 = vperm.slane %v1634_v4, 0  ;;  %v1641_v44 = vperm.slane %v1634_v4, 1 }
 0x58a   :  { %v1605_v26 = vpop.permute.xlu1 %1604 }
 0x58b   :  { %v1607_v29 = vmul.f32 %v1605_v26, %v4015_v58  ;;  %v1608_v54 = vmul.f32 %v1605_v26, %v4017_v18  ;;  %v1609_v36 = vmul.f32 %v1605_v26, %v4023_v16  ;;  %v4966_v26 = vmov 19  }
 0x58d   :  { %v1610_v53 = vadd.f32 %v1607_v29, %v1600_v7  ;;  %v1611_v10 = vadd.f32 %v1608_v54, %v1601_v17  ;;  %v1612_v63 = vadd.f32 %v1609_v36, %v1602_v20  ;;  %v4964_v29 = vmov 21   ;;  %v1679_v54 = vld [vmem:[#allocation2 + $0xf] ss:$8 sm:$0x3] }
 0x58e   :  { %v4965_v20 = vmov 20   ;;  %v1655_v36 = vperm.slane %v1649_v25, 0 }
 0x58f   :  { %v1615_v40 = vmul.f32 %v1612_v63, %v4926_v62  ;;  %v1614_v8 = vmul.f32 %v1611_v10, %v4963_v21  ;;  %v1613_v51 = vmul.f32 %v1610_v53, %v4933_v50  ;;  %v4967_v53 = vmov 25  }
 0x590   :  { %v1656_v10 = vperm.slane %v1649_v25, 1  ;;  %v1670_v63 = vperm.slane %v1664_v11, 0 }
 0x591   :  { %1623 = vrot.lane.b32.xlu1 %v1615_v40, %s2916_s14  ;;  %1621 = vrot.lane.b32.xlu0 %v1614_v8, %s2916_s14  ;;  %v4968_v8 = vmov 22   ;;  %v1671_v40 = vperm.slane %v1664_v11, 1 }
 0x592   :  { %1619 = vrot.lane.b32.xlu2 %v1613_v51, %s2916_s14  ;;  %v1685_v51 = vperm.slane %v1679_v54, 0 }
 0x599   :  { %1651 = vperm.xlu0 %2777, %v3885_v33   ;;  %1666 = vperm.xlu1 %2778, %v3885_v33  }
 0x59a   :  { %1636 = vperm.xlu2 %2776, %v3885_v33  }
 0x5a1   :  { %2781 = vset.pattern.permute.xlu1 %v4964_v29  ;;  %2780 = vset.pattern.permute.xlu0 %v4965_v20 }
 0x5a2   :  { %2779 = vset.pattern.permute.xlu2 %v4966_v26  ;;  %1708 = vperm.xlu0 %2780, %v3885_v33  }
 0x5a3   :  { %1681 = vperm.xlu2 %2779, %v3885_v33  }
 0x5aa   :  { %2785 = vset.pattern.permute.xlu0 %v4967_v53  ;;  %v1686_v53 = vperm.slane %v1679_v54, 1 }
 0x5ab   :  { %2782 = vset.pattern.permute.xlu2 %v4968_v8 }
 0x5ec   :  { %v1620_v17 = vpop.permute.xlu2 %1619 }
 0x5f4   :  { %v1637_v7 = vpop.permute.xlu2 %1636 }
 0x5f5   :  { %v1644_v26 = vmul.f32 %v1640_v23, %v1637_v7  ;;  %v1645_v8 = vmul.f32 %v1641_v44, %v1637_v7  ;;  %v4971_v7 = vmov 23  }
 0x5fd   :  { %v1682_v20 = vpop.permute.xlu2 %1681 }
 0x5fe   :  { %v1689_v5 = vmul.f32 %v1685_v51, %v1682_v20  ;;  %v1690_v4 = vmul.f32 %v1686_v53, %v1682_v20 }
 0x603   :  { %v4112_v19 = vpop.permute.xlu1 %1623  ;;  %v4114_v35 = vpop.permute.xlu0 %1621 }
 0x604   :  { %4969 = vst [vmem:[#allocation25_spill] sm:$0xff] %v4112_v19  ;;  %v4118_v57 = vsel %vm344_vm7, %v1620_v17, %v4114_v35 }
 0x605   :  { %4970 = vst [vmem:[#allocation39_spill] sm:$0xff] %v4114_v35 }
 0x60b   :  { %v1652_v29 = vpop.permute.xlu0 %1651  ;;  %v1667_v50 = vpop.permute.xlu1 %1666 }
 0x60c   :  { %v1659_v21 = vmul.f32 %v1655_v36, %v1652_v29  ;;  %v1660_v17 = vmul.f32 %v1656_v10, %v1652_v29  ;;  %v1674_v62 = vmul.f32 %v1670_v63, %v1667_v50  ;;  %v1675_v14 = vmul.f32 %v1671_v40, %v1667_v50  ;;  %v1760_v63 = vld [vmem:[#allocation2 + $0xf] ss:$8 sm:$0x7] }
 0x60d   :  { %v4972_v29 = vmov 24   ;;  %v4973_v50 = vmov 26   ;;  %v4161_v19 = vperm.slane %v1760_v63, 1  ;;  %v4163_v49 = vperm.slane %v1760_v63, 2 }
 0x60e   :  { %v1661_v37 = vadd.f32 %v1659_v21, %v1644_v26  ;;  %v1662_v0 = vadd.f32 %v1660_v17, %v1645_v8  ;;  %v1742_v8 = vld [vmem:[#allocation2 + $0xe] ss:$8 sm:$0x7] }
 0x60f   :  { %v4148_v36 = vperm.slane %v1742_v8, 0  ;;  %v4150_v10 = vperm.slane %v1742_v8, 1  ;;  %v4154_v17 = vperm.slane %v1742_v8, 2 }
 0x610   :  { %v1676_v56 = vadd.f32 %v1674_v62, %v1661_v37  ;;  %v1677_v24 = vadd.f32 %v1675_v14, %v1662_v0 }
 0x612   :  { %v1691_v25 = vadd.f32 %v1689_v5, %v1676_v56  ;;  %v1692_v35 = vadd.f32 %v1690_v4, %v1677_v24  ;;  %v1706_v56 = vld [vmem:[#allocation2 + $0xc] ss:$8 sm:$0x7]  ;;  %v1724_v5 = vld [vmem:[#allocation2 + $0xd] ss:$8 sm:$0x7] }
 0x613   :  { %v4132_v14 = vperm.slane %v1706_v56, 0  ;;  %v4134_v0 = vperm.slane %v1706_v56, 1  ;;  %v4136_v21 = vperm.slane %v1724_v5, 0  ;;  %v4138_v20 = vperm.slane %v1724_v5, 1 }
 0x614   :  { %1697 = vrot.lane.b32.xlu2 %v1692_v35, %s2890_s9  ;;  %1695 = vrot.lane.b32.xlu1 %v1691_v25, %s2890_s9  ;;  %v1709_v37 = vpop.permute.xlu0 %1708  ;;  %v4140_v26 = vperm.slane %v1706_v56, 2  ;;  %v4142_v53 = vperm.slane %v1724_v5, 2  ;;  %v4156_v25 = vperm.slane %v1760_v63, 0 }
 0x615   :  { %v1718_v35 = vmul.f32 %v4132_v14, %v1709_v37  ;;  %v1719_v11 = vmul.f32 %v4134_v0, %v1709_v37 }
 0x616   :  { %v1720_v40 = vmul.f32 %v4140_v26, %v1709_v37 }
 0x61c   :  { %1726 = vperm.xlu1 %2781, %v3885_v33   ;;  %1744 = vperm.xlu2 %2782, %v3885_v33  }
 0x624   :  { %2783 = vset.pattern.permute.xlu1 %v4971_v7  ;;  %2784 = vset.pattern.permute.xlu2 %v4972_v29 }
 0x625   :  { %1762 = vperm.xlu1 %2783, %v3885_v33  }
 0x62d   :  { %2786 = vset.pattern.permute.xlu1 %v4973_v50 }
 0x66e   :  { %v4130_v24 = vpop.permute.xlu2 %1697 }
 0x66f   :  { %4975 = vst [vmem:[#allocation23_spill] sm:$0xff] %v4130_v24 }
 0x676   :  { %v1745_v4 = vpop.permute.xlu2 %1744 }
 0x677   :  { %v1754_v7 = vmul.f32 %v4148_v36, %v1745_v4  ;;  %v1755_v29 = vmul.f32 %v4150_v10, %v1745_v4  ;;  %v1756_v24 = vmul.f32 %v4154_v17, %v1745_v4 }
 0x686   :  { %v4128_v62 = vpop.permute.xlu1 %1695 }
 0x687   :  { %4974 = vst [vmem:[#allocation21_spill] sm:$0xff] %v4128_v62 }
 0x68e   :  { %v1727_v23 = vpop.permute.xlu1 %1726 }
 0x68f   :  { %v1736_v44 = vmul.f32 %v4136_v21, %v1727_v23  ;;  %v1737_v54 = vmul.f32 %v4138_v20, %v1727_v23  ;;  %v1738_v51 = vmul.f32 %v4142_v53, %v1727_v23 }
 0x691   :  { %v1739_v56 = vadd.f32 %v1736_v44, %v1718_v35  ;;  %v1740_v5 = vadd.f32 %v1737_v54, %v1719_v11  ;;  %v1741_v50 = vadd.f32 %v1738_v51, %v1720_v40  ;;  %v4976_v51 = vld [vmem:[#allocation19_spill] sm:$0xff] }
 0x693   :  { %v1757_v37 = vadd.f32 %v1754_v7, %v1739_v56  ;;  %v1758_v23 = vadd.f32 %v1755_v29, %v1740_v5  ;;  %v1759_v61 = vadd.f32 %v1756_v24, %v1741_v50 }
 0x697   :  { %v1763_v8 = vpop.permute.xlu1 %1762 }
 0x698   :  { %v1772_v31 = vmul.f32 %v4156_v25, %v1763_v8  ;;  %v1773_v35 = vmul.f32 %v4161_v19, %v1763_v8  ;;  %v1774_v11 = vmul.f32 %v4163_v49, %v1763_v8 }
 0x69a   :  { %v1775_v44 = vadd.f32 %v1772_v31, %v1757_v37  ;;  %v1776_v54 = vadd.f32 %v1773_v35, %v1758_v23  ;;  %v1777_v59 = vadd.f32 %v1774_v11, %v1759_v61  ;;  %v4977_v31 = vmov 30  }
 0x69b   :  { %v4979_v61 = vmov 28  }
 0x69c   :  { %v1780_v40 = vmul.f32 %v1777_v59, %v4930_v6  ;;  %v1779_v4 = vmul.f32 %v1776_v54, %v4976_v51  ;;  %v1778_v63 = vmul.f32 %v1775_v44, %v4936_v43  ;;  %v4978_v59 = vmov 27  }
 0x69e   :  { %1788 = vrot.lane.b32.xlu1 %v1780_v40, %s2919_s15  ;;  %1786 = vrot.lane.b32.xlu0 %v1779_v4, %s2919_s15  ;;  %v1345_v40 = vld [vmem:[#allocation3] sm:$0xf] }
 0x69f   :  { %1784 = vrot.lane.b32.xlu2 %v1778_v63, %s2919_s15 }
 0x6a6   :  { %1354 = vrot.lane.b32.xlu1 %v3979_v48, %s2933_s21  ;;  %1809 = vperm.xlu0 %2785, %v3885_v33   ;;  %v4980_v48 = vmov 29  }
 0x6a7   :  { %1799 = vperm.xlu2 %2784, %v3885_v33  }
 0x6ae   :  { %1819 = vperm.xlu1 %2786, %v3885_v33   ;;  %1352 = vrot.lane.b32.xlu0 %v3991_v28, %s2933_s21 }
 0x6af   :  { %1350 = vrot.lane.b32.xlu2 %v3989_v60, %s2933_s21  ;;  %2790 = vset.pattern.permute.xlu0 %v4977_v31  ;;  %v1346_v31 = vld [vmem:[#allocation3 + $0x8] sm:$0xf] }
 0x6b0   :  { %2787 = vset.pattern.permute.xlu2 %v4978_v59 }
 0x6b6   :  { %2788 = vset.pattern.permute.xlu1 %v4979_v61 }
 0x6b7   :  { %1829 = vperm.xlu2 %2787, %v3885_v33  }
 0x6bf   :  { %2789 = vset.pattern.permute.xlu2 %v4980_v48 }
 0x6f9   :  { %v4188_v7 = vpop.permute.xlu2 %1784 }
 0x6fa   :  { %4981 = vst [vmem:[#allocation30_spill] sm:$0xff] %v4188_v7 }
 0x701   :  { %v1800_v29 = vpop.permute.xlu2 %1799 }
 0x702   :  { %v1802_v11 = vmul.f32 %v1800_v29, %v4132_v14  ;;  %v1803_v44 = vmul.f32 %v1800_v29, %v4134_v0  ;;  %v1804_v54 = vmul.f32 %v1800_v29, %v4140_v26 }
 0x709   :  { %v1351_v60 = vpop.permute.xlu2 %1350 }
 0x710   :  { %v1789_v50 = vpop.permute.xlu1 %1788  ;;  %v4190_v24 = vpop.permute.xlu0 %1786 }
 0x711   :  { %4982 = vst [vmem:[#allocation37_spill] sm:$0xff] %v4190_v24  ;;  %v4194_v28 = vsel %vm519_vm9, %v4190_v24, %v1789_v50  ;;  %v1830_v35 = vpop.permute.xlu2 %1829 }
 0x712   :  { %4983 = vst [vmem:[#allocation27_spill] sm:$0xff] %v4194_v28  ;;  %v1832_v4 = vmul.f32 %v1830_v35, %v4156_v25  ;;  %v1833_v63 = vmul.f32 %v1830_v35, %v4161_v19 }
 0x718   :  { %v1355_v56 = vpop.permute.xlu1 %1354  ;;  %v1810_v5 = vpop.permute.xlu0 %1809 }
 0x719   :  { %v1812_v37 = vmul.f32 %v1810_v5, %v4136_v21  ;;  %v1813_v23 = vmul.f32 %v1810_v5, %v4138_v20  ;;  %v1814_v8 = vmul.f32 %v1810_v5, %v4142_v53  ;;  %v1834_v5 = vmul.f32 %v1830_v35, %v4163_v49 }
 0x71b   :  { %v1815_v50 = vadd.f32 %v1812_v37, %v1802_v11  ;;  %v1816_v43 = vadd.f32 %v1813_v23, %v1803_v44  ;;  %v1817_v51 = vadd.f32 %v1814_v8, %v1804_v54 }
 0x720   :  { %v1820_v6 = vpop.permute.xlu1 %1819  ;;  %v1353_v48 = vpop.permute.xlu0 %1352 }
 0x721   :  { %v1822_v59 = vmul.f32 %v1820_v6, %v4148_v36  ;;  %v1823_v61 = vmul.f32 %v1820_v6, %v4150_v10  ;;  %v1824_v28 = vmul.f32 %v1820_v6, %v4154_v17  ;;  %v1356_v29 = vsel %vm700_vm5, %v1351_v60, %v1353_v48 }
 0x722   :  { %v1357_v24 = vsel %vm700_vm5, %v1353_v48, %v1355_v56  ;;  %v1360_v38 = vadd.f32 %v1356_v29, %v1345_v40 }
 0x723   :  { %v1825_v42 = vadd.f32 %v1822_v59, %v1815_v50  ;;  %v1826_v37 = vadd.f32 %v1823_v61, %v1816_v43  ;;  %v1827_v23 = vadd.f32 %v1824_v28, %v1817_v51  ;;  %v1361_v8 = vadd.f32 %v1357_v24, %v1346_v31 }
 0x724   :  { %v1362_v11 = vmax.f32 %v1360_v38, 0.0  ;;  %v4984_v43 = vmov 32   ;;  %v4985_v38 = vmov 34   ;;  %v4988_v51 = vmov 33  }
 0x725   :  { %v1363_v44 = vmax.f32 %v1361_v8, 0.0  ;;  %v1835_v54 = vadd.f32 %v1832_v4, %v1825_v42  ;;  %v1836_v7 = vadd.f32 %v1833_v63, %v1826_v37  ;;  %v1837_v35 = vadd.f32 %v1834_v5, %v1827_v23 }
 0x726   :  { %1364 = vst [vmem:[#allocation6] sm:$0xf] %v1362_v11  ;;  %v4986_v42 = vmov 31  }
 0x727   :  { %1365 = vst [vmem:[#allocation6 + $0x8] sm:$0xf] %v1363_v44  ;;  %v1840_v62 = vmul.f32 %v1837_v35, %v4924_v12  ;;  %v1839_v6 = vmul.f32 %v1836_v7, %v4937_v34  ;;  %v1838_v60 = vmul.f32 %v1835_v54, %v4932_v39 }
 0x729   :  { %1848 = vrot.lane.b32.xlu0 %v1840_v62, %s2926_s17  ;;  %1846 = vrot.lane.b32.xlu2 %v1839_v6, %s2926_s17  ;;  %v4987_v62 = vmov 0  }
 0x72a   :  { %1844 = vrot.lane.b32.xlu1 %v1838_v60, %s2926_s17 }
 0x731   :  { %1879 = vperm.xlu0 %2790, %v3885_v33   ;;  %1869 = vperm.xlu2 %2789, %v3885_v33  }
 0x732   :  { %1859 = vperm.xlu1 %2788, %v3885_v33  }
 0x739   :  { %2792 = vset.pattern.permute.xlu0 %v4984_v43  ;;  %2795 = vset.pattern.permute.xlu2 %v4985_v38 }
 0x73a   :  { %2791 = vset.pattern.permute.xlu1 %v4986_v42  ;;  %1916 = vperm.xlu0 %2792, %v3885_v33  }
 0x73b   :  { %1889 = vperm.xlu1 %2791, %v3885_v33  }
 0x742   :  { %2793 = vset.pattern.permute.xlu0 %v4987_v62 }
 0x743   :  { %1377 = vperm.xlu0 %2793, %v3885_v33   ;;  %2794 = vset.pattern.permute.xlu1 %v4988_v51 }
 0x783   :  { %v1847_v31 = vpop.permute.xlu2 %1846 }
 0x78b   :  { %v1870_v24 = vpop.permute.xlu2 %1869 }
 0x78c   :  { %v1872_v40 = vmul.f32 %v1870_v24, %v4136_v21  ;;  %v1873_v4 = vmul.f32 %v1870_v24, %v4138_v20  ;;  %v1874_v11 = vmul.f32 %v1870_v24, %v4142_v53 }
 0x79b   :  { %v1849_v59 = vpop.permute.xlu0 %1848 }
 0x79c   :  { %v4228_v61 = vsel %vm589_vm10, %v1847_v31, %v1849_v59  ;;  %v4230_v48 = vpop.permute.xlu1 %1844 }
 0x79d   :  { %v4234_v7 = vsel %vm589_vm10, %v4230_v48, %v1847_v31 }
 0x7a3   :  { %v1880_v28 = vpop.permute.xlu0 %1879 }
 0x7a4   :  { %v1860_v56 = vpop.permute.xlu1 %1859  ;;  %v1882_v37 = vmul.f32 %v1880_v28, %v4148_v36  ;;  %v1883_v23 = vmul.f32 %v1880_v28, %v4150_v10 }
 0x7a5   :  { %v1862_v63 = vmul.f32 %v1860_v56, %v4132_v14  ;;  %v1863_v50 = vmul.f32 %v1860_v56, %v4134_v0  ;;  %v1864_v44 = vmul.f32 %v1860_v56, %v4140_v26  ;;  %v1406_v56 = vmul.f32 %v4001_v41, %v3984_v30 }
 0x7a6   :  { %v1426_v41 = vmul.f32 %v4019_v13, %v3981_v9 }
 0x7a7   :  { %v1875_v5 = vadd.f32 %v1872_v40, %v1862_v63  ;;  %v1876_v29 = vadd.f32 %v1873_v4, %v1863_v50  ;;  %v1877_v4 = vadd.f32 %v1874_v11, %v1864_v44  ;;  %v1884_v63 = vmul.f32 %v1880_v28, %v4154_v17 }
 0x7a8   :  { %v1407_v50 = vmul.f32 %v4003_v32, %v3984_v30  ;;  %v1425_v44 = vmul.f32 %v4011_v15, %v3981_v9  ;;  %v1427_v32 = vmul.f32 %v4021_v46, %v3981_v9 }
 0x7a9   :  { %v1885_v35 = vadd.f32 %v1882_v37, %v1875_v5  ;;  %v1886_v6 = vadd.f32 %v1883_v23, %v1876_v29  ;;  %v1408_v5 = vmul.f32 %v4005_v52, %v3984_v30  ;;  %v1887_v37 = vadd.f32 %v1884_v63, %v1877_v4  ;;  %v4991_v63 = vld [vmem:[#allocation30_spill] sm:$0xff] }
 0x7ac   :  { %v4242_v8 = vpop.permute.xlu0 %1916 }
 0x7ad   :  { %v1890_v54 = vpop.permute.xlu1 %1889 }
 0x7ae   :  { %v1892_v60 = vmul.f32 %v1890_v54, %v4156_v25  ;;  %v1893_v31 = vmul.f32 %v1890_v54, %v4161_v19  ;;  %v1894_v24 = vmul.f32 %v1890_v54, %v4163_v49 }
 0x7b0   :  { %v1895_v59 = vadd.f32 %v1892_v60, %v1885_v35  ;;  %v1896_v40 = vadd.f32 %v1893_v31, %v1886_v6  ;;  %v1897_v54 = vadd.f32 %v1894_v24, %v1887_v37  ;;  %v4994_v37 = vmov 1  }
 0x7b2   :  { %1903 = vrot.lane.b32.xlu1 %v1896_v40, %s2931_s18  ;;  %1901 = vrot.lane.b32.xlu2 %v1895_v59, %s2931_s18  ;;  %v4989_v59 = vmov 35   ;;  %v4990_v40 = vld [vmem:[#allocation21_spill] sm:$0xff] }
 0x7b5   :  { %v1378_v29 = vpop.permute.xlu0 %1377 }
 0x7b6   :  { %v1387_v23 = vmul.f32 %v3993_v45, %v1378_v29  ;;  %v1388_v28 = vmul.f32 %v3997_v3, %v1378_v29  ;;  %v1389_v11 = vmul.f32 %v3999_v55, %v1378_v29  ;;  %v1444_v45 = vmul.f32 %v4015_v58, %v3995_v47 }
 0x7b7   :  { %v1445_v3 = vmul.f32 %v4017_v18, %v3995_v47  ;;  %v1446_v55 = vmul.f32 %v4023_v16, %v3995_v47 }
 0x7b8   :  { %v1409_v35 = vadd.f32 %v1406_v56, %v1387_v23  ;;  %v1410_v30 = vadd.f32 %v1407_v50, %v1388_v28  ;;  %v1411_v52 = vadd.f32 %v1408_v5, %v1389_v11  ;;  %v4992_v56 = vld [vmem:[#allocation34_spill] sm:$0xff]  ;;  %v4995_v23 = vld [vmem:[#allocation36_spill] sm:$0xff] }
 0x7b9   :  { %v4993_v5 = vld [vmem:[#allocation10_spill] sm:$0xff] }
 0x7ba   :  { %v1428_v15 = vadd.f32 %v1425_v44, %v1409_v35  ;;  %v1429_v6 = vadd.f32 %v1426_v41, %v1410_v30  ;;  %v1430_v60 = vadd.f32 %v1427_v32, %v1411_v52  ;;  %1926 = vperm.xlu1 %2794, %v3885_v33   ;;  %1905 = vrot.lane.b32.xlu2 %v1897_v54, %s2931_s18  ;;  %v4998_v41 = vld [vmem:[#allocation22_spill] sm:$0xff]  ;;  %v4999_v30 = vld [vmem:[#allocation25_spill] sm:$0xff] }
 0x7bc   :  { %v1447_v9 = vadd.f32 %v1444_v45, %v1428_v15  ;;  %v1448_v13 = vadd.f32 %v1445_v3, %v1429_v6  ;;  %v1449_v46 = vadd.f32 %v1446_v55, %v1430_v60  ;;  %v5001_v3 = vld [vmem:[#allocation23_spill] sm:$0xff]  ;;  %v5002_v60 = vld [vmem:[#allocation37_spill] sm:$0xff] }
 0x7bd   :  { %v1699_v55 = vsel %vm142_vm8, %v4990_v40, %v5001_v3 }
 0x7be   :  { %v1450_v31 = vmul.f32 %v1447_v9, %v4949_v27  ;;  %v1451_v50 = vmul.f32 %v1448_v13, %v4992_v56  ;;  %v1452_v29 = vmul.f32 %v1449_v46, %v4993_v5  ;;  %v1790_v9 = vsel %vm519_vm9, %v4991_v63, %v5002_v60  ;;  %v5003_v46 = vld [vmem:[#allocation27_spill] sm:$0xff] }
 0x7bf   :  { %v5007_v60 = vmov 2  }
 0x7c0   :  { %v1453_v58 = vadd.f32 %v1450_v31, %v3946_v1 }
 0x7c2   :  { %2796 = vset.pattern.permute.xlu1 %v4989_v59  ;;  %1936 = vperm.xlu2 %2795, %v3885_v33   ;;  %v1510_v47 = vadd.f32 %v4048_v2, %v1453_v58 }
 0x7c3   :  { %1946 = vperm.xlu1 %2796, %v3885_v33   ;;  %v1454_v33 = vadd.f32 %v1451_v50, %v3946_v1 }
 0x7c4   :  { %v1570_v18 = vadd.f32 %v4080_v22, %v1510_v47  ;;  %v1455_v22 = vadd.f32 %v1452_v29, %v3946_v1 }
 0x7c6   :  { %v1630_v16 = vadd.f32 %v4118_v57, %v1570_v18  ;;  %v4996_v57 = vld [vmem:[#allocation29_spill] sm:$0xff]  ;;  %v1512_v44 = vadd.f32 %v4995_v23, %v1455_v22  ;;  %v1920_v22 = vmul.f32 %v4242_v8, %v4134_v0 }
 0x7c7   :  { %v1506_v28 = vsel %vm202_vm1, %v4996_v57, %v4995_v23 }
 0x7c8   :  { %v1703_v4 = vadd.f32 %v4990_v40, %v1630_v16  ;;  %v1511_v11 = vadd.f32 %v1506_v28, %v1454_v33 }
 0x7ca   :  { %v1795_v24 = vadd.f32 %v4991_v63, %v1703_v4  ;;  %2797 = vset.pattern.permute.xlu2 %v4987_v62  ;;  %v4997_v62 = vld [vmem:[#allocation38_spill] sm:$0xff]  ;;  %v1919_v63 = vmul.f32 %v4242_v8, %v4132_v14 }
 0x7cb   :  { %2798 = vset.pattern.permute.xlu1 %v4994_v37  ;;  %v1566_v32 = vsel %vm275_vm6, %v4998_v41, %v4997_v62  ;;  %v1572_v35 = vadd.f32 %v4997_v62, %v1512_v44 }
 0x7cc   :  { %v1855_v2 = vadd.f32 %v4230_v48, %v1795_v24  ;;  %v1571_v54 = vadd.f32 %v1566_v32, %v1511_v11  ;;  %v5000_v48 = vld [vmem:[#allocation39_spill] sm:$0xff] }
 0x7cd   :  { %v1626_v52 = vsel %vm344_vm7, %v5000_v48, %v4999_v30  ;;  %v1632_v1 = vadd.f32 %v4999_v30, %v1572_v35  ;;  %v5004_v48 = vld [vmem:[#allocation32_spill] sm:$0xff] }
 0x7ce   :  { %v1631_v45 = vadd.f32 %v1626_v52, %v1571_v54  ;;  %v5005_v52 = vld [vmem:[#allocation33_spill] sm:$0xff] }
 0x7cf   :  { %v1705_v6 = vadd.f32 %v5001_v3, %v1632_v1 }
 0x7d0   :  { %v1704_v15 = vadd.f32 %v1699_v55, %v1631_v45  ;;  %v5006_v45 = vld [vmem:[#allocation31_spill] sm:$0xff] }
 0x7d1   :  { %v1797_v31 = vadd.f32 %v5003_v46, %v1705_v6  ;;  %v4344_v6 = vld [vmem:[%s4671_s3] sm:$0xf]  ;;  %s2936_s3 = smov [#allocation6]  }
 0x7d2   :  { %v1796_v13 = vadd.f32 %v1790_v9, %v1704_v15 }
 0x7d3   :  { %v1857_v47 = vadd.f32 %v4228_v61, %v1797_v31 }
 0x7d4   :  { %v1856_v58 = vadd.f32 %v4234_v7, %v1796_v13 }
 0x80c   :  { %v1902_v18 = vpop.permute.xlu2 %1901 }
 0x80d   :  { %v1912_v16 = vadd.f32 %v1902_v18, %v1855_v2  ;;  %v1921_v2 = vmul.f32 %v4242_v8, %v4140_v26 }
 0x814   :  { %v1906_v4 = vpop.permute.xlu2 %1905 }
 0x81c   :  { %v1937_v57 = vpop.permute.xlu2 %1936 }
 0x81d   :  { %v1939_v44 = vmul.f32 %v1937_v57, %v4148_v36  ;;  %v1940_v62 = vmul.f32 %v1937_v57, %v4150_v10  ;;  %v1941_v41 = vmul.f32 %v1937_v57, %v4154_v17 }
 0x824   :  { %v1904_v24 = vpop.permute.xlu1 %1903 }
 0x825   :  { %v1907_v40 = vsel %vm647_vm11, %v1902_v18, %v1904_v24  ;;  %v1908_v50 = vsel %vm647_vm11, %v1904_v24, %v1906_v4  ;;  %v5008_v4 = vmov 4   ;;  %v5009_v24 = vmov 7  }
 0x826   :  { %v1913_v29 = vadd.f32 %v1907_v40, %v1856_v58  ;;  %v1914_v37 = vadd.f32 %v1908_v50, %v1857_v47  ;;  %v5010_v40 = vmov 3   ;;  %v5011_v50 = vmov 5  }
 0x82c   :  { %v1927_v33 = vpop.permute.xlu1 %1926 }
 0x82d   :  { %v1929_v7 = vmul.f32 %v1927_v33, %v4136_v21  ;;  %v1930_v61 = vmul.f32 %v1927_v33, %v4138_v20  ;;  %v1931_v23 = vmul.f32 %v1927_v33, %v4142_v53  ;;  %v5014_v33 = vmov 10  }
 0x82f   :  { %v1932_v28 = vadd.f32 %v1929_v7, %v1919_v63  ;;  %v1933_v11 = vadd.f32 %v1930_v61, %v1920_v22  ;;  %v1934_v14 = vadd.f32 %v1931_v23, %v1921_v2  ;;  %v5015_v63 = vmov 8  }
 0x831   :  { %v1942_v0 = vadd.f32 %v1939_v44, %v1932_v28  ;;  %v1943_v32 = vadd.f32 %v1940_v62, %v1933_v11  ;;  %v1944_v54 = vadd.f32 %v1941_v41, %v1934_v14 }
 0x835   :  { %v1947_v21 = vpop.permute.xlu1 %1946 }
 0x836   :  { %v1949_v20 = vmul.f32 %v1947_v21, %v4156_v25  ;;  %v1950_v26 = vmul.f32 %v1947_v21, %v4161_v19  ;;  %v1951_v53 = vmul.f32 %v1947_v21, %v4163_v49  ;;  %v1996_v49 = vld [vmem:[%s4672_s4] sm:$0xf]  ;;  %s2626_s4 = sshll.u32 %s2936_s3, 4  ;;  %s2627_s4 = int_to_ptr.vmem [resolvable:$true] %s2626_s4 }
 0x838   :  { %v1952_v8 = vadd.f32 %v1949_v20, %v1942_v0  ;;  %v1953_v35 = vadd.f32 %v1950_v26, %v1943_v32  ;;  %v1954_v30 = vadd.f32 %v1951_v53, %v1944_v54 }
 0x83a   :  { %v1957_v36 = vmul.f32 %v1954_v30, %v5004_v48  ;;  %v1956_v10 = vmul.f32 %v1953_v35, %v5005_v52  ;;  %v1955_v1 = vmul.f32 %v1952_v8, %v5006_v45 }
 0x83c   :  { %1965 = vrot.lane.b32.xlu1 %v1957_v36, %s2935_s22  ;;  %1963 = vrot.lane.b32.xlu0 %v1956_v10, %s2935_s22 }
 0x83d   :  { %1961 = vrot.lane.b32.xlu2 %v1955_v1, %s2935_s22 }
 0x897   :  { %v1962_v17 = vpop.permute.xlu2 %1961 }
 0x898   :  { %v1972_v25 = vadd.f32 %v1962_v17, %v1912_v16 }
 0x89a   :  { %v1975_v19 = vmax.f32 %v1972_v25, 0.0 }
 0x89c   :  { %v1981_v3 = vrot.slane %v1975_v19, 4 }
 0x89e   :  { %1984 = vrot.lane.b32.xlu2 %v1981_v3, %s2933_s21 }
 0x8a6   :  { %1999 = vperm.xlu2 %2797, %v1996_v49  }
 0x8ae   :  { %v1966_v55 = vpop.permute.xlu1 %1965  ;;  %v1964_v15 = vpop.permute.xlu0 %1963  ;;  %2799 = vset.pattern.permute.xlu2 %v5007_v60 }
 0x8af   :  { %v1967_v9 = vsel %vm717_vm12, %v1962_v17, %v1964_v15  ;;  %v1968_v13 = vsel %vm717_vm12, %v1964_v15, %v1966_v55  ;;  %2042 = vperm.xlu2 %2799, %v4344_v6  }
 0x8b0   :  { %v1973_v46 = vadd.f32 %v1967_v9, %v1913_v29  ;;  %v1974_v31 = vadd.f32 %v1968_v13, %v1914_v37  ;;  %v5012_v29 = vmov 9   ;;  %v5013_v37 = vmov 6  }
 0x8b2   :  { %v1976_v58 = vmax.f32 %v1973_v46, 0.0  ;;  %v1977_v47 = vmax.f32 %v1974_v31, 0.0 }
 0x8b4   :  { %v1982_v18 = vrot.slane %v1976_v58, 4  ;;  %v1983_v16 = vrot.slane %v1977_v47, 4 }
 0x8b6   :  { %1988 = vrot.lane.b32.xlu1 %v1983_v16, %s2933_s21  ;;  %1986 = vrot.lane.b32.xlu0 %v1982_v18, %s2933_s21 }
 0x8b7   :  { %2801 = vset.pattern.permute.xlu2 %v5008_v4 }
 0x8b8   :  { %2083 = vperm.xlu2 %2801, %v4344_v6  }
 0x8be   :  { %2024 = vperm.xlu1 %2798, %v4344_v6   ;;  %2006 = vperm.xlu0 %2793, %v4344_v6  }
 0x8c0   :  { %2804 = vset.pattern.permute.xlu2 %v5009_v24 }
 0x8c1   :  { %2113 = vperm.xlu2 %2804, %v4344_v6  }
 0x8c6   :  { %2800 = vset.pattern.permute.xlu1 %v5010_v40  ;;  %2802 = vset.pattern.permute.xlu0 %v5011_v50 }
 0x8c7   :  { %2060 = vperm.xlu1 %2800, %v4344_v6   ;;  %2093 = vperm.xlu0 %2802, %v4344_v6  }
 0x8c9   :  { %2806 = vset.pattern.permute.xlu2 %v5012_v29 }
 0x8cf   :  { %2803 = vset.pattern.permute.xlu1 %v5013_v37  ;;  %2807 = vset.pattern.permute.xlu0 %v5014_v33 }
 0x8d0   :  { %2103 = vperm.xlu1 %2803, %v4344_v6  }
 0x8d8   :  { %2805 = vset.pattern.permute.xlu1 %v5015_v63 }
 0x8f8   :  { %v1985_v22 = vpop.permute.xlu2 %1984 }
 0x900   :  { %v4367_v7 = vpop.permute.xlu2 %1999 }
 0x909   :  { %v2043_v28 = vpop.permute.xlu2 %2042 }
 0x912   :  { %v2084_v1 = vpop.permute.xlu2 %2083 }
 0x928   :  { %v1989_v61 = vpop.permute.xlu1 %1988  ;;  %v1987_v2 = vpop.permute.xlu0 %1986 }
 0x929   :  { %v1990_v23 = vsel %vm700_vm5, %v1985_v22, %v1987_v2  ;;  %v1991_v57 = vsel %vm700_vm5, %v1987_v2, %v1989_v61 }
 0x92a   :  { %1994 = vst [vmem:[#allocation2 + $0x8] sm:$0xf0] %v1990_v23 }
 0x92b   :  { %1995 = vst [vmem:[#allocation2 + $0x10] sm:$0xf0] %v1991_v57 }
 0x930   :  { %v2025_v11 = vpop.permute.xlu1 %2024  ;;  %v2007_v44 = vpop.permute.xlu0 %2006 }
 0x932   :  { %v2002_v62 = vld [vmem:[#allocation2 + $0x4] ss:$8 sm:$0x7]  ;;  %v2022_v14 = vld [vmem:[#allocation2 + $0x5] ss:$8 sm:$0x7] }
 0x933   :  { %v4371_v41 = vperm.slane %v2002_v62, 0  ;;  %v4373_v0 = vperm.slane %v2002_v62, 1  ;;  %v4375_v32 = vperm.slane %v2002_v62, 2  ;;  %v4377_v21 = vperm.slane %v2022_v14, 0 }
 0x934   :  { %v4379_v54 = vperm.slane %v2022_v14, 1  ;;  %v4381_v20 = vperm.slane %v2022_v14, 2  ;;  %v2058_v26 = vld [vmem:[#allocation2 + $0x7] ss:$8 sm:$0x7] }
 0x935   :  { %v2034_v53 = vmul.f32 %v4377_v21, %v2025_v11  ;;  %v2040_v8 = vld [vmem:[#allocation2 + $0x6] ss:$8 sm:$0x7]  ;;  %v2016_v36 = vmul.f32 %v4371_v41, %v2007_v44  ;;  %v2017_v10 = vmul.f32 %v4373_v0, %v2007_v44  ;;  %v2018_v17 = vmul.f32 %v4375_v32, %v2007_v44 }
 0x936   :  { %v2035_v35 = vmul.f32 %v4379_v54, %v2025_v11  ;;  %v2036_v30 = vmul.f32 %v4381_v20, %v2025_v11  ;;  %v4389_v25 = vperm.slane %v2058_v26, 0  ;;  %v4391_v49 = vperm.slane %v2040_v8, 0  ;;  %v2114_v11 = vpop.permute.xlu2 %2113 }
 0x937   :  { %v2037_v19 = vadd.f32 %v2034_v53, %v2016_v36  ;;  %v4393_v55 = vperm.slane %v2040_v8, 1  ;;  %v4395_v60 = vperm.slane %v2058_v26, 1  ;;  %v4397_v9 = vperm.slane %v2058_v26, 2 }
 0x938   :  { %v2038_v3 = vadd.f32 %v2035_v35, %v2017_v10  ;;  %v2039_v15 = vadd.f32 %v2036_v30, %v2018_v17  ;;  %v4399_v46 = vperm.slane %v2040_v8, 2  ;;  %v2052_v31 = vmul.f32 %v4391_v49, %v2043_v28 }
 0x939   :  { %v2061_v13 = vpop.permute.xlu1 %2060  ;;  %v2053_v58 = vmul.f32 %v4393_v55, %v2043_v28  ;;  %v2094_v18 = vpop.permute.xlu0 %2093  ;;  %v2086_v2 = vmul.f32 %v2084_v1, %v4371_v41  ;;  %v2087_v23 = vmul.f32 %v2084_v1, %v4373_v0  ;;  %v2116_v30 = vmul.f32 %v2114_v11, %v4389_v25 }
 0x93a   :  { %v2070_v47 = vmul.f32 %v4389_v25, %v2061_v13  ;;  %v2071_v16 = vmul.f32 %v4395_v60, %v2061_v13  ;;  %v2054_v4 = vmul.f32 %v4399_v46, %v2043_v28  ;;  %v2055_v24 = vadd.f32 %v2052_v31, %v2037_v19 }
 0x93b   :  { %v2056_v40 = vadd.f32 %v2053_v58, %v2038_v3  ;;  %v2072_v50 = vmul.f32 %v4397_v9, %v2061_v13  ;;  %v2096_v29 = vmul.f32 %v2094_v18, %v4377_v21  ;;  %v2097_v22 = vmul.f32 %v2094_v18, %v4379_v54 }
 0x93c   :  { %v2057_v37 = vadd.f32 %v2054_v4, %v2039_v15  ;;  %v2073_v33 = vadd.f32 %v2070_v47, %v2055_v24  ;;  %v2098_v61 = vmul.f32 %v2094_v18, %v4381_v20  ;;  %v2088_v28 = vmul.f32 %v2084_v1, %v4375_v32 }
 0x93d   :  { %v2074_v63 = vadd.f32 %v2071_v16, %v2056_v40  ;;  %v2099_v44 = vadd.f32 %v2096_v29, %v2086_v2  ;;  %v2100_v62 = vadd.f32 %v2097_v22, %v2087_v23  ;;  %v2117_v36 = vmul.f32 %v2114_v11, %v4395_v60 }
 0x93e   :  { %v2075_v57 = vadd.f32 %v2072_v50, %v2057_v37  ;;  %v2101_v26 = vadd.f32 %v2098_v61, %v2088_v28  ;;  %v2118_v10 = vmul.f32 %v2114_v11, %v4397_v9  ;;  %v5016_v31 = vmov 12  }
 0x93f   :  { %v5017_v58 = vmov 14   ;;  %v5018_v47 = vmov 11   ;;  %v5019_v18 = vmov 17   ;;  %v5020_v16 = vmov 13  }
 0x940   :  { %v2078_v4 = vmul.f32 %v2075_v57, %v4993_v5  ;;  %v2077_v24 = vmul.f32 %v2074_v63, %v4992_v56  ;;  %v2076_v40 = vmul.f32 %v2073_v33, %v4949_v27 }
 0x942   :  { %v2104_v14 = vpop.permute.xlu1 %2103  ;;  %v2081_v50 = vadd.f32 %v2078_v4, %v4367_v7  ;;  %v2080_v37 = vadd.f32 %v2077_v24, %v4367_v7  ;;  %v2079_v23 = vadd.f32 %v2076_v40, %v4367_v7 }
 0x943   :  { %v2106_v53 = vmul.f32 %v2104_v14, %v4391_v49  ;;  %v2107_v8 = vmul.f32 %v2104_v14, %v4393_v55  ;;  %v2108_v35 = vmul.f32 %v2104_v14, %v4399_v46 }
 0x945   :  { %v2109_v17 = vadd.f32 %v2106_v53, %v2099_v44  ;;  %v2110_v19 = vadd.f32 %v2107_v8, %v2100_v62  ;;  %v2111_v1 = vadd.f32 %v2108_v35, %v2101_v26 }
 0x947   :  { %v2121_v3 = vadd.f32 %v2118_v10, %v2111_v1  ;;  %v2120_v15 = vadd.f32 %v2117_v36, %v2110_v19  ;;  %v2119_v13 = vadd.f32 %v2116_v30, %v2109_v17 }
 0x949   :  { %2129 = vrot.lane.b32.xlu0 %v2121_v3, %s2903_s6  ;;  %2127 = vrot.lane.b32.xlu2 %v2120_v15, %s2903_s6 }
 0x94a   :  { %2125 = vrot.lane.b32.xlu1 %v2119_v13, %s2903_s6 }
 0x951   :  { %2160 = vperm.xlu0 %2807, %v4344_v6   ;;  %2150 = vperm.xlu2 %2806, %v4344_v6  }
 0x952   :  { %2140 = vperm.xlu1 %2805, %v4344_v6  }
 0x959   :  { %2809 = vset.pattern.permute.xlu0 %v5016_v31  ;;  %2811 = vset.pattern.permute.xlu2 %v5017_v58 }
 0x95a   :  { %2808 = vset.pattern.permute.xlu1 %v5018_v47  ;;  %2200 = vperm.xlu0 %2809, %v4344_v6   ;;  %v5021_v47 = vld [vmem:[#allocation16_spill] sm:$0xff] }
 0x95b   :  { %2170 = vperm.xlu1 %2808, %v4344_v6  }
 0x962   :  { %2814 = vset.pattern.permute.xlu0 %v5019_v18 }
 0x963   :  { %2810 = vset.pattern.permute.xlu1 %v5020_v16  ;;  %v5022_v16 = vld [vmem:[#allocation11_spill] sm:$0xff] }
 0x9a3   :  { %v2128_v29 = vpop.permute.xlu2 %2127 }
 0x9ab   :  { %v2151_v56 = vpop.permute.xlu2 %2150 }
 0x9ac   :  { %v2153_v63 = vmul.f32 %v2151_v56, %v4377_v21  ;;  %v2154_v62 = vmul.f32 %v2151_v56, %v4379_v54  ;;  %v2155_v30 = vmul.f32 %v2151_v56, %v4381_v20 }
 0x9bb   :  { %v2130_v22 = vpop.permute.xlu0 %2129 }
 0x9bc   :  { %v2132_v61 = vsel %vm202_vm1, %v2128_v29, %v2130_v22  ;;  %v2138_v2 = vadd.f32 %v2130_v22, %v2081_v50  ;;  %v2126_v28 = vpop.permute.xlu1 %2125  ;;  %v5023_v50 = vld [vmem:[#allocation12_spill] sm:$0xff]  ;;  %v5025_v22 = vmov 16  }
 0x9bd   :  { %v2137_v11 = vadd.f32 %v2132_v61, %v2080_v37  ;;  %v2131_v44 = vsel %vm202_vm1, %v2126_v28, %v2128_v29  ;;  %v5024_v37 = vmov 15   ;;  %v5026_v61 = vmov 18  }
 0x9be   :  { %v2136_v5 = vadd.f32 %v2131_v44, %v2079_v23 }
 0x9c3   :  { %v2161_v14 = vpop.permute.xlu0 %2160 }
 0x9c4   :  { %v2141_v57 = vpop.permute.xlu1 %2140  ;;  %v2163_v7 = vmul.f32 %v2161_v14, %v4391_v49  ;;  %v2164_v8 = vmul.f32 %v2161_v14, %v4393_v55  ;;  %v2165_v31 = vmul.f32 %v2161_v14, %v4399_v46 }
 0x9c5   :  { %v2143_v27 = vmul.f32 %v2141_v57, %v4371_v41  ;;  %v2144_v33 = vmul.f32 %v2141_v57, %v4373_v0  ;;  %v2145_v35 = vmul.f32 %v2141_v57, %v4375_v32 }
 0x9c7   :  { %v2156_v26 = vadd.f32 %v2153_v63, %v2143_v27  ;;  %v2157_v53 = vadd.f32 %v2154_v62, %v2144_v33  ;;  %v2158_v3 = vadd.f32 %v2155_v30, %v2145_v35 }
 0x9c9   :  { %v2166_v10 = vadd.f32 %v2163_v7, %v2156_v26  ;;  %v2167_v17 = vadd.f32 %v2164_v8, %v2157_v53  ;;  %v2168_v24 = vadd.f32 %v2165_v31, %v2158_v3  ;;  %v5027_v31 = vld [vmem:[#allocation14_spill] sm:$0xff] }
 0x9cc   :  { %v2201_v62 = vpop.permute.xlu0 %2200 }
 0x9cd   :  { %v2171_v36 = vpop.permute.xlu1 %2170  ;;  %v2204_v8 = vmul.f32 %v2201_v62, %v4373_v0  ;;  %v2205_v35 = vmul.f32 %v2201_v62, %v4375_v32 }
 0x9ce   :  { %v2173_v19 = vmul.f32 %v2171_v36, %v4389_v25  ;;  %v2174_v1 = vmul.f32 %v2171_v36, %v4395_v60  ;;  %v2175_v58 = vmul.f32 %v2171_v36, %v4397_v9 }
 0x9d0   :  { %v2176_v15 = vadd.f32 %v2173_v19, %v2166_v10  ;;  %v2177_v13 = vadd.f32 %v2174_v1, %v2167_v17  ;;  %v2178_v40 = vadd.f32 %v2175_v58, %v2168_v24  ;;  %v5036_v24 = vmov 23  }
 0x9d2   :  { %v2180_v18 = vmul.f32 %v2177_v13, %v5021_v47  ;;  %v2179_v4 = vmul.f32 %v2176_v15, %v5022_v16  ;;  %v2181_v29 = vmul.f32 %v2178_v40, %v5023_v50  ;;  %v5034_v16 = vmov 20  }
 0x9d3   :  { %v5037_v40 = vmov 28  }
 0x9d4   :  { %2187 = vrot.lane.b32.xlu1 %v2180_v18, %s2915_s13  ;;  %2185 = vrot.lane.b32.xlu2 %v2179_v4, %s2915_s13  ;;  %v5035_v4 = vmov 24  }
 0x9dc   :  { %2210 = vperm.xlu1 %2810, %v4344_v6   ;;  %2189 = vrot.lane.b32.xlu2 %v2181_v29, %s2915_s13 }
 0x9e4   :  { %2812 = vset.pattern.permute.xlu1 %v5024_v37  ;;  %2220 = vperm.xlu2 %2811, %v4344_v6  }
 0x9e5   :  { %2230 = vperm.xlu1 %2812, %v4344_v6  }
 0x9ec   :  { %2813 = vset.pattern.permute.xlu2 %v5025_v22 }
 0x9ed   :  { %2815 = vset.pattern.permute.xlu1 %v5026_v61 }
 0xa2e   :  { %v2186_v23 = vpop.permute.xlu2 %2185 }
 0xa36   :  { %v2190_v28 = vpop.permute.xlu2 %2189 }
 0xa37   :  { %v4464_v44 = vadd.f32 %v2190_v28, %v2138_v2  ;;  %v2203_v2 = vmul.f32 %v2201_v62, %v4371_v41 }
 0xa3e   :  { %v2221_v30 = vpop.permute.xlu2 %2220 }
 0xa3f   :  { %v2224_v17 = vmul.f32 %v2221_v30, %v4393_v55  ;;  %v5029_v55 = vld [vmem:[#allocation13_spill] sm:$0xff] }
 0xa46   :  { %v2188_v57 = vpop.permute.xlu1 %2187 }
 0xa47   :  { %v2191_v56 = vsel %vm275_vm6, %v2186_v23, %v2188_v57  ;;  %v2192_v27 = vsel %vm275_vm6, %v2188_v57, %v2190_v28  ;;  %v2259_v28 = vld [vmem:[#allocation2 + $0xc] ss:$8 sm:$0x3]  ;;  %v2273_v57 = vld [vmem:[#allocation2 + $0xd] ss:$8 sm:$0x3] }
 0xa48   :  { %v4468_v33 = vadd.f32 %v2191_v56, %v2136_v5  ;;  %v4470_v63 = vadd.f32 %v2192_v27, %v2137_v11  ;;  %v2223_v11 = vmul.f32 %v2221_v30, %v4391_v49  ;;  %v5028_v49 = vld [vmem:[#allocation15_spill] sm:$0xff]  ;;  %v2265_v27 = vperm.slane %v2259_v28, 0 }
 0xa49   :  { %v2301_v56 = vld [vmem:[#allocation2 + $0xf] ss:$8 sm:$0x3]  ;;  %v2266_v62 = vperm.slane %v2259_v28, 1 }
 0xa4e   :  { %v2211_v14 = vpop.permute.xlu1 %2210 }
 0xa4f   :  { %v2213_v26 = vmul.f32 %v2211_v14, %v4377_v21  ;;  %v2214_v53 = vmul.f32 %v2211_v14, %v4379_v54  ;;  %v2215_v7 = vmul.f32 %v2211_v14, %v4381_v20  ;;  %v2225_v21 = vmul.f32 %v2221_v30, %v4399_v46 }
 0xa50   :  { %v5033_v46 = vmov 26   ;;  %v2279_v14 = vperm.slane %v2273_v57, 0 }
 0xa51   :  { %v2216_v36 = vadd.f32 %v2213_v26, %v2203_v2  ;;  %v2217_v5 = vadd.f32 %v2214_v53, %v2204_v8  ;;  %v2218_v10 = vadd.f32 %v2215_v7, %v2205_v35  ;;  %v2280_v26 = vperm.slane %v2273_v57, 1 }
 0xa53   :  { %v2226_v54 = vadd.f32 %v2223_v11, %v2216_v36  ;;  %v2227_v1 = vadd.f32 %v2224_v17, %v2217_v5  ;;  %v2228_v20 = vadd.f32 %v2225_v21, %v2218_v10  ;;  %v2307_v5 = vperm.slane %v2301_v56, 0 }
 0xa57   :  { %v2231_v19 = vpop.permute.xlu1 %2230 }
 0xa58   :  { %v2233_v41 = vmul.f32 %v2231_v19, %v4389_v25  ;;  %v2234_v0 = vmul.f32 %v2231_v19, %v4395_v60  ;;  %v2235_v32 = vmul.f32 %v2231_v19, %v4397_v9  ;;  %v5030_v25 = vmov 21  }
 0xa59   :  { %v5031_v60 = vmov 22   ;;  %v5032_v9 = vmov 19  }
 0xa5a   :  { %v2236_v3 = vadd.f32 %v2233_v41, %v2226_v54  ;;  %v2237_v15 = vadd.f32 %v2234_v0, %v2227_v1  ;;  %v2238_v13 = vadd.f32 %v2235_v32, %v2228_v20  ;;  %v5038_v32 = vmov 25  }
 0xa5c   :  { %v2241_v58 = vmul.f32 %v2238_v13, %v5027_v31  ;;  %v2240_v47 = vmul.f32 %v2237_v15, %v5028_v49  ;;  %v2239_v18 = vmul.f32 %v2236_v3, %v5029_v55  ;;  %v5039_v3 = vmov 27  }
 0xa5d   :  { %v5040_v15 = vmov 29   ;;  %v5041_v13 = vmov 30  }
 0xa5e   :  { %2249 = vrot.lane.b32.xlu1 %v2241_v58, %s2916_s14  ;;  %2247 = vrot.lane.b32.xlu0 %v2240_v47, %s2916_s14 }
 0xa5f   :  { %2245 = vrot.lane.b32.xlu2 %v2239_v18, %s2916_s14  ;;  %v2346_v18 = vld [vmem:[#allocation2 + $0xd] ss:$8 sm:$0x7] }
 0xa66   :  { %2289 = vperm.xlu1 %2815, %v4344_v6   ;;  %2275 = vperm.xlu0 %2814, %v4344_v6  }
 0xa67   :  { %2261 = vperm.xlu2 %2813, %v4344_v6  }
 0xa6e   :  { %2818 = vset.pattern.permute.xlu0 %v5030_v25  ;;  %2819 = vset.pattern.permute.xlu1 %v5031_v60 }
 0xa6f   :  { %2816 = vset.pattern.permute.xlu2 %v5032_v9  ;;  %2348 = vperm.xlu0 %2818, %v4344_v6   ;;  %v2328_v9 = vld [vmem:[#allocation2 + $0xc] ss:$8 sm:$0x7] }
 0xa70   :  { %2303 = vperm.xlu2 %2816, %v4344_v6  }
 0xa77   :  { %2823 = vset.pattern.permute.xlu0 %v5033_v46 }
 0xa78   :  { %2817 = vset.pattern.permute.xlu2 %v5034_v16  ;;  %2441 = vperm.xlu0 %2823, %v4344_v6  }
 0xa79   :  { %2330 = vperm.xlu2 %2817, %v4344_v6  }
 0xa80   :  { %2828 = vset.pattern.permute.xlu0 %v4988_v51 }
 0xa81   :  { %2820 = vset.pattern.permute.xlu2 %v5035_v4  ;;  %2548 = vperm.xlu0 %2828, %v4344_v6  }
 0xa82   :  { %2421 = vperm.xlu2 %2820, %v4344_v6  }
 0xa89   :  { %2833 = vset.pattern.permute.xlu0 %v4989_v59 }
 0xa8a   :  { %2822 = vset.pattern.permute.xlu2 %v5036_v24  ;;  %v4553_v24 = vperm.slane %v2346_v18, 2 }
 0xa8b   :  { %2384 = vperm.xlu2 %2822, %v4344_v6  }
 0xa93   :  { %2825 = vset.pattern.permute.xlu2 %v5037_v40  ;;  %v2382_v40 = vld [vmem:[#allocation2 + $0xf] ss:$8 sm:$0x7] }
 0xa94   :  { %2481 = vperm.xlu2 %2825, %v4344_v6   ;;  %v4566_v57 = vperm.slane %v2382_v40, 0 }
 0xa9c   :  { %2827 = vset.pattern.permute.xlu2 %v4984_v43 }
 0xa9d   :  { %2538 = vperm.xlu2 %2827, %v4344_v6  }
 0xaa5   :  { %2830 = vset.pattern.permute.xlu2 %v4985_v38 }
 0xaa6   :  { %2558 = vperm.xlu2 %2830, %v4344_v6  }
 0xaae   :  { %2832 = vset.pattern.permute.xlu2 %v4989_v59  ;;  %v2287_v59 = vld [vmem:[#allocation2 + $0xe] ss:$8 sm:$0x3] }
 0xaaf   :  { %2568 = vperm.xlu2 %2832, %v4344_v6   ;;  %v2293_v53 = vperm.slane %v2287_v59, 0  ;;  %v2294_v7 = vperm.slane %v2287_v59, 1 }
 0xab9   :  { %v2246_v51 = vpop.permute.xlu2 %2245 }
 0xac1   :  { %v2262_v50 = vpop.permute.xlu2 %2261 }
 0xac2   :  { %v2269_v8 = vmul.f32 %v2265_v27, %v2262_v50  ;;  %v2270_v35 = vmul.f32 %v2266_v62, %v2262_v50  ;;  %v4557_v50 = vperm.slane %v2328_v9, 1 }
 0xaca   :  { %v2304_v10 = vpop.permute.xlu2 %2303 }
 0xacb   :  { %v2311_v19 = vmul.f32 %v2307_v5, %v2304_v10 }
 0xad0   :  { %v2250_v29 = vpop.permute.xlu1 %2249  ;;  %v2248_v37 = vpop.permute.xlu0 %2247 }
 0xad1   :  { %v4518_v22 = vadd.f32 %v2250_v29, %v4464_v44  ;;  %v2251_v61 = vsel %vm344_vm7, %v2246_v51, %v2248_v37  ;;  %v2252_v43 = vsel %vm344_vm7, %v2248_v37, %v2250_v29  ;;  %v4555_v51 = vperm.slane %v2328_v9, 0 }
 0xad2   :  { %v2256_v23 = vadd.f32 %v2251_v61, %v4468_v33  ;;  %v2257_v38 = vadd.f32 %v2252_v43, %v4470_v63  ;;  %v2308_v33 = vperm.slane %v2301_v56, 1  ;;  %v2364_v61 = vld [vmem:[#allocation2 + $0xe] ss:$8 sm:$0x7]  ;;  %v4561_v43 = vperm.slane %v2328_v9, 2 }
 0xad3   :  { %v2331_v49 = vpop.permute.xlu2 %2330  ;;  %v4569_v27 = vperm.slane %v2364_v61, 0  ;;  %v4571_v62 = vperm.slane %v2364_v61, 1 }
 0xad4   :  { %v2312_v54 = vmul.f32 %v2308_v33, %v2304_v10  ;;  %v2340_v28 = vmul.f32 %v4555_v51, %v2331_v49  ;;  %v2342_v59 = vmul.f32 %v4561_v43, %v2331_v49 }
 0xad8   :  { %v2290_v44 = vpop.permute.xlu1 %2289  ;;  %v2276_v2 = vpop.permute.xlu0 %2275 }
 0xad9   :  { %v2283_v30 = vmul.f32 %v2279_v14, %v2276_v2  ;;  %v2284_v36 = vmul.f32 %v2280_v26, %v2276_v2  ;;  %v2297_v63 = vmul.f32 %v2293_v53, %v2290_v44  ;;  %v2298_v11 = vmul.f32 %v2294_v7, %v2290_v44 }
 0xada   :  { %v4573_v14 = vperm.slane %v2364_v61, 2  ;;  %v4575_v7 = vperm.slane %v2382_v40, 1  ;;  %v4577_v44 = vperm.slane %v2382_v40, 2 }
 0xadb   :  { %v2285_v17 = vadd.f32 %v2283_v30, %v2269_v8  ;;  %v2286_v21 = vadd.f32 %v2284_v36, %v2270_v35 }
 0xadc   :  { %v2422_v55 = vpop.permute.xlu2 %2421 }
 0xadd   :  { %v2299_v1 = vadd.f32 %v2297_v63, %v2285_v17  ;;  %v2300_v20 = vadd.f32 %v2298_v11, %v2286_v21  ;;  %v2426_v9 = vmul.f32 %v2422_v55, %v4561_v43 }
 0xadf   :  { %v2314_v41 = vadd.f32 %v2312_v54, %v2300_v20  ;;  %v2313_v0 = vadd.f32 %v2311_v19, %v2299_v1  ;;  %v5042_v1 = vld [vmem:[#allocation17_spill] sm:$0xff] }
 0xae1   :  { %2319 = vrot.lane.b32.xlu0 %v2314_v41, %s2890_s9  ;;  %2317 = vrot.lane.b32.xlu1 %v2313_v0, %s2890_s9  ;;  %v2349_v31 = vpop.permute.xlu0 %2348  ;;  %v5043_v41 = vld [vmem:[#allocation19_spill] sm:$0xff] }
 0xae5   :  { %v2385_v56 = vpop.permute.xlu2 %2384 }
 0xae6   :  { %v2394_v5 = vmul.f32 %v4566_v57, %v2385_v56  ;;  %v2395_v33 = vmul.f32 %v4575_v7, %v2385_v56  ;;  %v2396_v10 = vmul.f32 %v4577_v44, %v2385_v56 }
 0xae9   :  { %2366 = vperm.xlu1 %2819, %v4344_v6  }
 0xaea   :  { %v4537_v58 = vpop.permute.xlu0 %2441 }
 0xaeb   :  { %v2444_v61 = vmul.f32 %v4537_v58, %v4569_v27 }
 0xaf1   :  { %2821 = vset.pattern.permute.xlu1 %v5038_v32  ;;  %v5044_v32 = vld [vmem:[#allocation18_spill] sm:$0xff] }
 0xaf2   :  { %2431 = vperm.xlu1 %2821, %v4344_v6  }
 0xaf3   :  { %v4539_v47 = vpop.permute.xlu0 %2548 }
 0xafa   :  { %2824 = vset.pattern.permute.xlu1 %v5039_v3 }
 0xafb   :  { %2451 = vperm.xlu1 %2824, %v4344_v6  }
 0xb03   :  { %2826 = vset.pattern.permute.xlu1 %v5040_v15 }
 0xb04   :  { %2491 = vperm.xlu1 %2826, %v4344_v6  }
 0xb0c   :  { %2829 = vset.pattern.permute.xlu1 %v5041_v13 }
 0xb0d   :  { %2501 = vperm.xlu1 %2829, %v4344_v6  }
 0xb15   :  { %2831 = vset.pattern.permute.xlu1 %v4986_v42  ;;  %v4547_v42 = vperm.slane %v2346_v18, 0 }
 0xb16   :  { %2511 = vperm.xlu1 %2831, %v4344_v6   ;;  %v4549_v6 = vperm.slane %v2346_v18, 1  ;;  %v2424_v18 = vmul.f32 %v2422_v55, %v4555_v51 }
 0xb17   :  { %v2358_v29 = vmul.f32 %v4547_v42, %v2349_v31 }
 0xb18   :  { %v2359_v37 = vmul.f32 %v4549_v6, %v2349_v31 }
 0xb19   :  { %v2361_v26 = vadd.f32 %v2358_v29, %v2340_v28  ;;  %v2446_v28 = vmul.f32 %v4537_v58, %v4573_v14 }
 0xb53   :  { %v4541_v25 = vpop.permute.xlu0 %2319  ;;  %v2318_v60 = vpop.permute.xlu1 %2317 }
 0xb54   :  { %v2321_v46 = vsel %vm142_vm8, %v2318_v60, %v4541_v25  ;;  %v4545_v16 = vadd.f32 %v2318_v60, %v2256_v23  ;;  %v2360_v23 = vmul.f32 %v4553_v24, %v2349_v31  ;;  %v2425_v60 = vmul.f32 %v2422_v55, %v4557_v50 }
 0xb55   :  { %v4551_v4 = vadd.f32 %v2321_v46, %v2257_v38  ;;  %v2341_v38 = vmul.f32 %v4557_v50, %v2331_v49  ;;  %v2482_v46 = vpop.permute.xlu2 %2481 }
 0xb56   :  { %v2363_v8 = vadd.f32 %v2360_v23, %v2342_v59  ;;  %v2445_v23 = vmul.f32 %v4537_v58, %v4571_v62 }
 0xb57   :  { %v2362_v53 = vadd.f32 %v2359_v37, %v2341_v38 }
 0xb5b   :  { %v2367_v2 = vpop.permute.xlu1 %2366 }
 0xb5c   :  { %v2376_v35 = vmul.f32 %v4569_v27, %v2367_v2  ;;  %v2377_v30 = vmul.f32 %v4571_v62, %v2367_v2  ;;  %v2378_v36 = vmul.f32 %v4573_v14, %v2367_v2 }
 0xb5d   :  { %v2539_v58 = vpop.permute.xlu2 %2538 }
 0xb5e   :  { %v2379_v63 = vadd.f32 %v2376_v35, %v2361_v26  ;;  %v2380_v11 = vadd.f32 %v2377_v30, %v2362_v53  ;;  %v2381_v17 = vadd.f32 %v2378_v36, %v2363_v8 }
 0xb60   :  { %v2397_v21 = vadd.f32 %v2394_v5, %v2379_v63  ;;  %v2398_v19 = vadd.f32 %v2395_v33, %v2380_v11  ;;  %v2399_v54 = vadd.f32 %v2396_v10, %v2381_v17 }
 0xb62   :  { %v2402_v20 = vmul.f32 %v2399_v54, %v5042_v1  ;;  %v2401_v0 = vmul.f32 %v2398_v19, %v5043_v41  ;;  %v2400_v3 = vmul.f32 %v2397_v21, %v5044_v32  ;;  %v2486_v1 = vmul.f32 %v2482_v46, %v4561_v43 }
 0xb63   :  { %v2543_v32 = vmul.f32 %v2539_v58, %v4561_v43 }
 0xb64   :  { %v2432_v15 = vpop.permute.xlu1 %2431  ;;  %2410 = vrot.lane.b32.xlu0 %v2402_v20, %s2919_s15  ;;  %2408 = vrot.lane.b32.xlu2 %v2401_v0, %s2919_s15  ;;  %v2551_v20 = vmul.f32 %v4539_v47, %v4547_v42  ;;  %v2542_v0 = vmul.f32 %v2539_v58, %v4557_v50 }
 0xb65   :  { %v2434_v13 = vmul.f32 %v2432_v15, %v4547_v42  ;;  %v2435_v31 = vmul.f32 %v2432_v15, %v4549_v6  ;;  %2406 = vrot.lane.b32.xlu1 %v2400_v3, %s2919_s15  ;;  %v2436_v49 = vmul.f32 %v2432_v15, %v4553_v24  ;;  %v2559_v63 = vpop.permute.xlu2 %2558 }
 0xb67   :  { %v2437_v40 = vadd.f32 %v2434_v13, %v2424_v18  ;;  %v2438_v29 = vadd.f32 %v2435_v31, %v2425_v60  ;;  %v2439_v37 = vadd.f32 %v2436_v49, %v2426_v9  ;;  %v2552_v13 = vmul.f32 %v4539_v47, %v4549_v6 }
 0xb68   :  { %v2553_v31 = vmul.f32 %v4539_v47, %v4553_v24  ;;  %v2541_v49 = vmul.f32 %v2539_v58, %v4555_v51  ;;  %v2563_v9 = vmul.f32 %v2559_v63, %v4573_v14 }
 0xb69   :  { %v2447_v59 = vadd.f32 %v2444_v61, %v2437_v40  ;;  %v2448_v56 = vadd.f32 %v2445_v23, %v2438_v29  ;;  %v2449_v26 = vadd.f32 %v2446_v28, %v2439_v37  ;;  %v2555_v61 = vadd.f32 %v2552_v13, %v2542_v0 }
 0xb6a   :  { %v2556_v47 = vadd.f32 %v2553_v31, %v2543_v32 }
 0xb6d   :  { %v2452_v38 = vpop.permute.xlu1 %2451  ;;  %v2569_v18 = vpop.permute.xlu2 %2568 }
 0xb6e   :  { %v2454_v53 = vmul.f32 %v2452_v38, %v4566_v57  ;;  %v2455_v55 = vmul.f32 %v2452_v38, %v4575_v7  ;;  %v2456_v2 = vmul.f32 %v2452_v38, %v4577_v44  ;;  %v2554_v38 = vadd.f32 %v2551_v20, %v2541_v49 }
 0xb70   :  { %v2457_v8 = vadd.f32 %v2454_v53, %v2447_v59  ;;  %v2458_v35 = vadd.f32 %v2455_v55, %v2448_v56  ;;  %v2459_v30 = vadd.f32 %v2456_v2, %v2449_v26  ;;  %v2571_v59 = vmul.f32 %v2569_v18, %v4566_v57 }
 0xb71   :  { %v2566_v26 = vadd.f32 %v2563_v9, %v2556_v47  ;;  %v2597_v9 = vld [vmem:[#allocation3] sm:$0xf0] }
 0xb72   :  { %v2462_v36 = vmul.f32 %v2459_v30, %v4924_v12  ;;  %v2461_v5 = vmul.f32 %v2458_v35, %v4937_v34  ;;  %v2460_v33 = vmul.f32 %v2457_v8, %v4932_v39  ;;  %v2484_v34 = vmul.f32 %v2482_v46, %v4555_v51 }
 0xb73   :  { %v2485_v39 = vmul.f32 %v2482_v46, %v4557_v50  ;;  %v2572_v51 = vmul.f32 %v2569_v18, %v4575_v7 }
 0xb74   :  { %2470 = vrot.lane.b32.xlu0 %v2462_v36, %s2926_s17  ;;  %2468 = vrot.lane.b32.xlu2 %v2461_v5, %s2926_s17 }
 0xb75   :  { %2466 = vrot.lane.b32.xlu1 %v2460_v33, %s2926_s17 }
 0xb76   :  { %v2492_v10 = vpop.permute.xlu1 %2491 }
 0xb77   :  { %v2494_v17 = vmul.f32 %v2492_v10, %v4547_v42  ;;  %v2495_v21 = vmul.f32 %v2492_v10, %v4549_v6  ;;  %v2496_v12 = vmul.f32 %v2492_v10, %v4553_v24  ;;  %v2562_v42 = vmul.f32 %v2559_v63, %v4571_v62 }
 0xb78   :  { %v2561_v24 = vmul.f32 %v2559_v63, %v4569_v27 }
 0xb79   :  { %v2497_v3 = vadd.f32 %v2494_v17, %v2484_v34  ;;  %v2498_v15 = vadd.f32 %v2495_v21, %v2485_v39  ;;  %v2499_v60 = vadd.f32 %v2496_v12, %v2486_v1  ;;  %v2565_v56 = vadd.f32 %v2562_v42, %v2555_v61 }
 0xb7a   :  { %v2564_v53 = vadd.f32 %v2561_v24, %v2554_v38 }
 0xb7f   :  { %v2502_v11 = vpop.permute.xlu1 %2501 }
 0xb80   :  { %v2504_v19 = vmul.f32 %v2502_v11, %v4569_v27  ;;  %v2505_v54 = vmul.f32 %v2502_v11, %v4571_v62  ;;  %v2506_v41 = vmul.f32 %v2502_v11, %v4573_v14  ;;  %v2573_v62 = vmul.f32 %v2569_v18, %v4577_v44 }
 0xb81   :  { %v2575_v27 = vadd.f32 %v2572_v51, %v2565_v56 }
 0xb82   :  { %v2507_v46 = vadd.f32 %v2504_v19, %v2497_v3  ;;  %v2508_v50 = vadd.f32 %v2505_v54, %v2498_v15  ;;  %v2509_v43 = vadd.f32 %v2506_v41, %v2499_v60  ;;  %v2576_v55 = vadd.f32 %v2573_v62, %v2566_v26 }
 0xb83   :  { %v2578_v2 = vmul.f32 %v2575_v27, %v5005_v52  ;;  %v2327_v52 = vadd.f32 %v4541_v25, %v4518_v22 }
 0xb88   :  { %v2512_v40 = vpop.permute.xlu1 %2511 }
 0xb89   :  { %v2514_v29 = vmul.f32 %v2512_v40, %v4566_v57  ;;  %v2515_v37 = vmul.f32 %v2512_v40, %v4575_v7  ;;  %v2516_v6 = vmul.f32 %v2512_v40, %v4577_v44  ;;  %v2574_v7 = vadd.f32 %v2571_v59, %v2564_v53 }
 0xb8a   :  { %v2579_v44 = vmul.f32 %v2576_v55, %v5004_v48 }
 0xb8b   :  { %v2517_v23 = vadd.f32 %v2514_v29, %v2507_v46  ;;  %v2518_v14 = vadd.f32 %v2515_v37, %v2508_v50  ;;  %v2519_v28 = vadd.f32 %v2516_v6, %v2509_v43  ;;  %v2577_v8 = vmul.f32 %v2574_v7, %v5006_v45  ;;  %v2598_v46 = vld [vmem:[#allocation3 + $0x8] sm:$0xf0] }
 0xb8d   :  { %2527 = vrot.lane.b32.xlu0 %v2519_v28, %s2931_s18  ;;  %2525 = vrot.lane.b32.xlu2 %v2518_v14, %s2931_s18 }
 0xb8e   :  { %2523 = vrot.lane.b32.xlu1 %v2517_v23, %s2931_s18 }
 0xb95   :  { %2587 = vrot.lane.b32.xlu0 %v2579_v44, %s2935_s22  ;;  %2585 = vrot.lane.b32.xlu2 %v2578_v2, %s2935_s22 }
 0xb96   :  { %2583 = vrot.lane.b32.xlu1 %v2577_v8, %s2935_s22 }
 0xbbe   :  { %v2409_v57 = vpop.permute.xlu2 %2408 }
 0xbce   :  { %v2469_v36 = vpop.permute.xlu2 %2468 }
 0xbd6   :  { %v2411_v35 = vpop.permute.xlu0 %2410 }
 0xbd7   :  { %v2407_v30 = vpop.permute.xlu1 %2406  ;;  %v2413_v48 = vsel %vm519_vm9, %v2409_v57, %v2411_v35 }
 0xbd8   :  { %v2412_v45 = vsel %vm519_vm9, %v2407_v30, %v2409_v57  ;;  %v2419_v17 = vadd.f32 %v2413_v48, %v2327_v52  ;;  %v2417_v21 = vadd.f32 %v2407_v30, %v4545_v16 }
 0xbd9   :  { %v2418_v34 = vadd.f32 %v2412_v45, %v4551_v4 }
 0xbe6   :  { %v2471_v5 = vpop.permute.xlu0 %2470 }
 0xbe7   :  { %v2467_v33 = vpop.permute.xlu1 %2466  ;;  %v2526_v58 = vpop.permute.xlu2 %2525  ;;  %v2473_v11 = vsel %vm589_vm10, %v2469_v36, %v2471_v5 }
 0xbe8   :  { %v2472_v12 = vsel %vm589_vm10, %v2467_v33, %v2469_v36  ;;  %v2479_v19 = vadd.f32 %v2473_v11, %v2419_v17  ;;  %v2477_v54 = vadd.f32 %v2467_v33, %v2417_v21 }
 0xbe9   :  { %v2478_v20 = vadd.f32 %v2472_v12, %v2418_v34 }
 0xbef   :  { %v2586_v41 = vpop.permute.xlu2 %2585 }
 0xbff   :  { %v2528_v10 = vpop.permute.xlu0 %2527 }
 0xc00   :  { %v2524_v63 = vpop.permute.xlu1 %2523  ;;  %v2530_v39 = vsel %vm647_vm11, %v2526_v58, %v2528_v10 }
 0xc01   :  { %v2529_v1 = vsel %vm647_vm11, %v2524_v63, %v2526_v58  ;;  %v2536_v22 = vadd.f32 %v2530_v39, %v2479_v19  ;;  %v2534_v25 = vadd.f32 %v2524_v63, %v2477_v54 }
 0xc02   :  { %v2535_v32 = vadd.f32 %v2529_v1, %v2478_v20 }
 0xc07   :  { %v2588_v0 = vpop.permute.xlu0 %2587 }
 0xc08   :  { %v2590_v3 = vsel %vm717_vm12, %v2586_v41, %v2588_v0  ;;  %v2584_v15 = vpop.permute.xlu1 %2583 }
 0xc09   :  { %v2596_v16 = vadd.f32 %v2590_v3, %v2536_v22  ;;  %v2589_v13 = vsel %vm717_vm12, %v2584_v15, %v2586_v41  ;;  %v2594_v31 = vadd.f32 %v2584_v15, %v2534_v25 }
 0xc0a   :  { %v2595_v4 = vadd.f32 %v2589_v13, %v2535_v32 }
 0xc0b   :  { %v2604_v49 = vrot.slane %v2596_v16, 4  ;;  %v2602_v18 = vrot.slane %v2594_v31, 4 }
 0xc0c   :  { %v2603_v60 = vrot.slane %v2595_v4, 4 }
 0xc0d   :  { %2605 = vrot.lane.b32.xlu1 %v2602_v18, %s2933_s21  ;;  %2609 = vrot.lane.b32.xlu0 %v2604_v49, %s2933_s21 }
 0xc0e   :  { %2607 = vrot.lane.b32.xlu2 %v2603_v60, %s2933_s21 }
 0xc68   :  { %v2608_v42 = vpop.permute.xlu2 %2607 }
 0xc7f   :  { %v2606_v50 = vpop.permute.xlu1 %2605  ;;  %v2610_v40 = vpop.permute.xlu0 %2609 }
 0xc80   :  { %v2611_v43 = vsel %vm700_vm5, %v2606_v50, %v2608_v42  ;;  %v2612_v29 = vsel %vm700_vm5, %v2608_v42, %v2610_v40 }
 0xc81   :  { %v2615_v37 = vadd.f32 %v2611_v43, %v2597_v9  ;;  %v2616_v6 = vadd.f32 %v2612_v29, %v2598_v46 }
 0xc83   :  { %v2617_v61 = vmax.f32 %v2615_v37, 0.0  ;;  %v2618_v47 = vmax.f32 %v2616_v6, 0.0 }
 0xc85   :  { %2619 = vst [vmem:[#allocation6] sm:$0xf0] %v2617_v61 }
 0xc86   :  { %2620 = vst [vmem:[#allocation6 + $0x8] sm:$0xf0] %v2618_v47 }
 0xc87   :  { %2631 = dma.vmem_to_hbm [thread:$0]  %s2627_s4, 256, %s2629_s10, [#allocation5]  }
 0xc88   :  { %2884 = dma.done.wait [#allocation5], 256  }
 0xc89   :  { %2885 = vsyncadd [#allocation5], 4294967040 }
 0xc8a   :  { %2636 = vsyncpa [#allocation4], 1 }
 0xc8b   :  { %2637 = vsyncpa [#allocation5], 1 }

</bundles_post_ra>
